<compile_context>
chip_gen: v5e
topology: v5e:2x2
jax: 0.10.0
libtpu: 0.0.40
codegen_flags: <defaults>
</compile_context>

<pallas_src>
import functools

import jax
import jax.numpy as jnp
from jax.experimental import pallas as pl
from jax.experimental.pallas import tpu as pltpu


def _gemm_bias_kernel(p_ref, w_ref, b_ref, o_ref):
    """o = P @ W + b, accumulated over the K grid axis directly in the resident o_ref."""
    k = pl.program_id(1)

    @pl.when(k == 0)
    def _():
        # Fold the bias into the initialization instead of a final epilogue add.
        o_ref[...] = jnp.broadcast_to(b_ref[...], o_ref.shape)

    # bf16 x bf16 -> f32 on the MXU; no transpose of either operand.
    o_ref[...] += jnp.dot(p_ref[...], w_ref[...], preferred_element_type=jnp.float32)


def prepare_conv_params(weight, bias):
    """One-time, parameter-load-time prep (outside the jitted per-call path).

    (Cout, Cin, KH, KW) f32 -> (K, Cout) bf16 with K ordered (kh, kw, cin), matching
    the NHWC im2col row layout, so the kernel contracts without any transpose.
    """
    Cout, Cin, KH, KW = weight.shape
    w_kc = jnp.transpose(weight, (2, 3, 1, 0)).reshape(KH * KW * Cin, Cout)
    return w_kc.astype(jnp.bfloat16), bias.astype(jnp.float32), (KH, KW)


def conv2d_pallas(x, w_kc, bias, *, kernel_size, tk=6144, m_split=1):
    """Conv2d with stride=1, padding=0 via bf16 im2col + Pallas GEMM.

    x:      (N, Cin, H, W)   float32, NCHW
    w_kc:   (K, Cout)        bfloat16, K ordered (kh, kw, cin)  [from prepare_conv_params]
    bias:   (Cout,)          float32
    returns (N, Cout, OH, OW) float32
    """
    N, Cin, H, W = x.shape
    KH, KW = kernel_size
    K, Cout = w_kc.shape
    assert K == Cin * KH * KW
    OH = H - KH + 1
    OW = W - KW + 1
    M = N * OH * OW

    # --- glue: NHWC im2col (fused by jit), written directly in bf16 -----------------
    # Row order (n, oh, ow); K order (kh, kw, cin) -> contiguous (kw, cin) inner runs.
    x_nhwc = jnp.transpose(x, (0, 2, 3, 1)).astype(jnp.bfloat16)
    rows = []
    for oh in range(OH):
        for ow in range(OW):
            rows.append(x_nhwc[:, oh:oh + KH, ow:ow + KW, :].reshape(N, K))
    patches = jnp.stack(rows, axis=1).reshape(M, K)

    b_mat = bias.reshape(1, Cout).astype(jnp.float32)

    # --- K reduction tiling: keep the split at 2-4 grid steps ------------------------
    tk = min(tk, K)
    Kp = K
    if Kp % tk != 0:
        padk = tk - (Kp % tk)
        patches = jnp.pad(patches, ((0, 0), (0, padk)))
        w_kc = jnp.pad(w_kc, ((0, padk), (0, 0)))
        Kp += padk
    kt = Kp // tk

    # --- optional M split across TensorCores (v7x has 2 per chip) --------------------
    Mp = M
    if m_split > 1:
        padm = (-M) % (16 * m_split)   # per-core rows a multiple of 16 (bf16 sublanes)
        if padm:
            patches = jnp.pad(patches, ((0, padm), (0, 0)))
        Mp = M + padm
    bm = Mp // m_split

    out_flat = pl.pallas_call(
        _gemm_bias_kernel,
        out_shape=jax.ShapeDtypeStruct((Mp, Cout), jnp.float32),
        grid_spec=pltpu.PrefetchScalarGridSpec(
            num_scalar_prefetch=0,
            grid=(m_split, kt),
            in_specs=[
                pl.BlockSpec((bm, tk), lambda m, k: (m, k)),     # P tile (bf16)
                pl.BlockSpec((tk, Cout), lambda m, k: (k, 0)),   # W tile (bf16, (K, Cout))
                pl.BlockSpec((1, Cout), lambda m, k: (0, 0)),    # bias (f32, resident)
            ],
            # Same block for every k -> f32 output stays resident and is the accumulator.
            out_specs=pl.BlockSpec((bm, Cout), lambda m, k: (m, 0)),
        ),
        compiler_params=pltpu.CompilerParams(
            dimension_semantics=("parallel", "arbitrary"),
            vmem_limit_bytes=32 * 1024 * 1024,
        ),
    )(patches, w_kc, b_mat)

    out_flat = out_flat[:M]
    # (N*OH*OW, Cout) -> (N, OH, OW, Cout) -> NCHW  (tiny, ~13 KB)
    return out_flat.reshape(N, OH, OW, Cout).transpose(0, 3, 1, 2)


def reference_conv(x, weight, bias):
    """Pure-JAX reference (lax conv, highest precision) for verification."""
    out = jax.lax.conv_general_dilated(
        x, weight, window_strides=(1, 1), padding="VALID",
        dimension_numbers=("NCHW", "OIHW", "NCHW"),
        precision=jax.lax.Precision.HIGHEST,
    )
    return out + bias.reshape(1, -1, 1, 1)


def _tpu_tensorcores_per_chip():
    """2 for dual-TensorCore chips (v7x); 1 otherwise. Safe fallback on any error."""
    try:
        kind = jax.devices()[0].device_kind.lower()
    except Exception:
        return 1
    return 2 if ("v7" in kind or "tpu7" in kind) else 1


if __name__ == "__main__":
    key = jax.random.PRNGKey(0)
    k_x, k_w, k_b = jax.random.split(key, 3)

    # MyNetwork: nn.Conv2d(3, 64, kernel_size=64), stride 1, no padding.
    # Small spatial size consistent with the 64x64 kernel: 68x68 -> 5x5 output.
    N, Cin, H, W = 2, 3, 68, 68
    Cout, KH, KW = 64, 64, 64

    x = jax.random.normal(k_x, (N, Cin, H, W), dtype=jnp.float32)
    # deterministic "PyTorch-style" small uniform init (synthetic, not a checkpoint)
    fan_in = Cin * KH * KW
    bound = 1.0 / (fan_in ** 0.5)
    weight = jax.random.uniform(k_w, (Cout, Cin, KH, KW), jnp.float32, -bound, bound)
    bias = jax.random.uniform(k_b, (Cout,), jnp.float32, -bound, bound)

    # One-time weight layout change + bf16 cast, outside the jitted hot path.
    w_kc, b_f32, ksz = prepare_conv_params(weight, bias)

    # Split M across TensorCores only when the chip actually has two (v7x);
    # on single-TC chips a split would just re-read the weight.
    m_split = _tpu_tensorcores_per_chip()

    conv_forward = jax.jit(
        functools.partial(conv2d_pallas, kernel_size=ksz, m_split=m_split))
    out = jax.block_until_ready(conv_forward(x, w_kc, b_f32))

    assert out.shape == (N, Cout, H - KH + 1, W - KW + 1)

    # Reference on the same bf16-rounded operands: only accumulation-order differences.
    x_q = x.astype(jnp.bfloat16).astype(jnp.float32)
    w_q = weight.astype(jnp.bfloat16).astype(jnp.float32)
    ref_q = jax.block_until_ready(reference_conv(x_q, w_q, bias))
    assert jnp.allclose(out, ref_q, atol=1e-3, rtol=1e-3)

    # Full-precision reference: error bounded by bf16 operand rounding over K=12288.
    ref = jax.block_until_ready(reference_conv(x, weight, bias))
    assert jnp.allclose(out, ref, atol=5e-2, rtol=5e-2)

    print("KERNEL_OK")
</pallas_src>

<mosaic_0001>
module attributes {stable_mosaic.version = 11 : i64} {
  func.func @_gemm_bias_kernel(%arg0: i32, %arg1: i32, %arg2: memref<50x6144xbf16, #tpu.memory_space<vmem>>, %arg3: memref<6144x64xbf16, #tpu.memory_space<vmem>>, %arg4: memref<1x64xf32, #tpu.memory_space<vmem>>, %arg5: memref<50x64xf32, #tpu.memory_space<vmem>>) attributes {dimension_semantics = [#tpu.dimension_semantics<parallel>, #tpu.dimension_semantics<arbitrary>], iteration_bounds = array<i64: 1, 2>, scalar_prefetch = 0 : i64, scratch_operands = 0 : i64, tpu.core_type = #tpu.core_type<tc>, window_params = [{transform_indices = @transform_0, window_bounds = array<i64: 50, 6144>}, {transform_indices = @transform_1, window_bounds = array<i64: 6144, 64>}, {pipeline_mode = #tpu.pipeline_mode<synchronous>, transform_indices = @transform_2, window_bounds = array<i64: 1, 64>}, {transform_indices = @transform_3, window_bounds = array<i64: 50, 64>}]} {
    %c0_i32 = arith.constant 0 : i32
    %0 = arith.cmpi eq, %arg1, %c0_i32 : i32
    %1 = arith.extui %0 : i1 to i32
    %c0_i32_0 = arith.constant 0 : i32
    %2 = arith.cmpi ne, %1, %c0_i32_0 : i32
    scf.if %2 {
      %c0_8 = arith.constant 0 : index
      %c0_9 = arith.constant 0 : index
      %9 = vector.load %arg4[%c0_8, %c0_9] : memref<1x64xf32, #tpu.memory_space<vmem>>, vector<1x64xf32>
      %10 = vector.shape_cast %9 : vector<1x64xf32> to vector<1x64xf32>
      %11 = vector.broadcast %10 : vector<1x64xf32> to vector<50x64xf32>
      %c0_10 = arith.constant 0 : index
      %c0_11 = arith.constant 0 : index
      %12 = vector.load %arg5[%c0_10, %c0_11] : memref<50x64xf32, #tpu.memory_space<vmem>>, vector<50x64xf32>
      tpu.vector_store %arg5[%c0_10, %c0_11], %11 {strides = array<i32>} : memref<50x64xf32, #tpu.memory_space<vmem>>, vector<50x64xf32>,
    } else {
    }
    %c0 = arith.constant 0 : index
    %c0_1 = arith.constant 0 : index
    %3 = vector.load %arg5[%c0, %c0_1] : memref<50x64xf32, #tpu.memory_space<vmem>>, vector<50x64xf32>
    %c0_2 = arith.constant 0 : index
    %c0_3 = arith.constant 0 : index
    %4 = vector.load %arg2[%c0_2, %c0_3] : memref<50x6144xbf16, #tpu.memory_space<vmem>>, vector<50x6144xbf16>
    %c0_4 = arith.constant 0 : index
    %c0_5 = arith.constant 0 : index
    %5 = vector.load %arg3[%c0_4, %c0_5] : memref<6144x64xbf16, #tpu.memory_space<vmem>>, vector<6144x64xbf16>
    %cst = arith.constant dense<0.000000e+00> : vector<50x64xf32>
    %6 = tpu.matmul %4, %5, %cst {dimension_numbers = #tpu.dot_dimension_numbers<[1], [0], [0], [1], [0, 0, 1, 1], [], []>} : vector<50x6144xbf16>, vector<6144x64xbf16>, vector<50x64xf32> -> vector<50x64xf32>
    %7 = arith.addf %3, %6 : vector<50x64xf32>
    %c0_6 = arith.constant 0 : index
    %c0_7 = arith.constant 0 : index
    %8 = vector.load %arg5[%c0_6, %c0_7] : memref<50x64xf32, #tpu.memory_space<vmem>>, vector<50x64xf32>
    tpu.vector_store %arg5[%c0_6, %c0_7], %7 {strides = array<i32>} : memref<50x64xf32, #tpu.memory_space<vmem>>, vector<50x64xf32>,
    return
  }
  func.func @transform_0(%arg0: i32, %arg1: i32) -> (i32, i32) {
    %c0_i32 = arith.constant 0 : i32
    return %arg0, %arg1 : i32, i32
  }
  func.func @transform_1(%arg0: i32, %arg1: i32) -> (i32, i32) {
    %c0_i32 = arith.constant 0 : i32
    %c0_i32_0 = arith.constant 0 : i32
    return %arg1, %c0_i32 : i32, i32
  }
  func.func @transform_2(%arg0: i32, %arg1: i32) -> (i32, i32) {
    %c0_i32 = arith.constant 0 : i32
    %c0_i32_0 = arith.constant 0 : i32
    %c0_i32_1 = arith.constant 0 : i32
    return %c0_i32, %c0_i32_0 : i32, i32
  }
  func.func @transform_3(%arg0: i32, %arg1: i32) -> (i32, i32) {
    %c0_i32 = arith.constant 0 : i32
    %c0_i32_0 = arith.constant 0 : i32
    return %arg0, %c0_i32 : i32, i32
  }
}

</mosaic_0001>

<bundles_post_ra>
// kernel: conv2d_pallas.1
= control target key start
LH: loop header
LB: loop body
LE: loop exit
PB: predicated region body
PF: predicated region fallthrough
CT: control target
= control target key end

     0   :  { %s8917_s12 = smov 0   ;;  %s8919_s13 = smov 0   ;;  %s10338_s0 = inlined_call_operand.vmem [shape: bf16[50,12288], index: 0, kind: input, shape index: {}]   ;;  %s10339_s1 = inlined_call_operand.vmem [shape: bf16[12288,64], index: 1, kind: input, shape index: {}]   ;;  %s10340_s2 = inlined_call_operand.vmem [shape: f32[1,64], index: 2, kind: input, shape index: {}]   ;;  %s10341_s3 = inlined_call_operand.vmem [shape: f32[50,64], index: 3, kind: output, shape index: {}]  }
   0x1   :  { %s8921_s14 = smov 0   ;;  %s8923_s15 = smov 0  }
   0x2   :  { %s8925_s16 = smov 0  }
   0x3 LB: > { %s22_s17 = sadd.s32 1, %s8891_s15  ;;  %p41_p1 = scmp.ne.s32.totalorder %s8883_s13, %s8879_s12  ;;  %s8895_s16 = sphi %s8925_s16, %s13_s16   ;;  %s8891_s15 = sphi %s8923_s15, %s10345_s15   ;;  %s8887_s14 = sphi %s8921_s14, %s10344_s14   ;;  %s8883_s13 = sphi %s8919_s13, %s10343_s13   ;;  %s8879_s12 = sphi %s8917_s12, %s10342_s12  }
   0x4   : > { %p23_p0 = scmp.ge.s32.totalorder %s22_s17, 2  ;;  %p42_p2 = scmp.eq.s32.totalorder %s8895_s16, 0 }
   0x5   : > { %s34_s19 = sadd.s32 1, %s8883_s13  ;;  %p6164_p5 = scmp.ge.s32.totalorder %s8895_s16, 2 }
   0x6   : > { %s10347_s17 = smov (%p23_p0, %s22_s17), 0  ;;  %p43_p3 = por %p42_p2, %p41_p1 }
   0x7   : > { %s30_s18 = ssub.s32 %s8891_s15, %s10347_s17  ;;  %143 = sbr.rel (%p6164_p5) target bundleno = 185 (0xb9), region = 20 }
   0x8   : > { %p32_p4 = scmp.eq.s32.totalorder %s30_s18, 0 }
   0xa   : > { %s8952_s20 = scalar_select %p32_p4, %s8883_s13, %s34_s19  }
   0xc   : > { %146 = sbr.rel (!%p43_p3) target bundleno = 185 (0xb9), region = 24  ;;  %s148_s21 = sand.u32 (%p43_p3), 1, %s8883_s13  }
   0xd   : > { %s8285_s22 = smul.u32 (%p43_p3), 192, %s8891_s15 }
   0xe   : > { %s8814_s23 = smul.u32 (%p43_p3), 1344, %s148_s21 }
   0xf   : > { %s8960_s26 = scalar_lea.vmem (%p43_p3), %s10338_s0, %s8285_s22 }
  0x10   : > { %v169_v0 = vld [vmem:[%s8960_s26] sm:$0xff] (%p43_p3)  ;;  %v171_v1 = vld [vmem:[%s8960_s26 + $0x8] sm:$0xff] (%p43_p3)  ;;  %v173_v2 = vld [vmem:[%s8960_s26 + $0x10] sm:$0xff] (%p43_p3)  ;;  %s8965_s27 = scalar_lea.vmem (%p43_p3), [#allocation2], %s8814_s23 }
  0x11   : > { %170 = vst [vmem:[%s8965_s27] sm:$0xff] %v169_v0  ;;  %v175_v3 = vld [vmem:[%s8960_s26 + $0x18] sm:$0xff]  ;;  %v177_v4 = vld [vmem:[%s8960_s26 + $0x20] sm:$0xff]  ;;  %v179_v5 = vld [vmem:[%s8960_s26 + $0x28] sm:$0xff] }
  0x12   : > { %172 = vst [vmem:[%s8965_s27 + $0x8] sm:$0xff] %v171_v1  ;;  %v181_v6 = vld [vmem:[%s8960_s26 + $0x30] sm:$0xff]  ;;  %v183_v7 = vld [vmem:[%s8960_s26 + $0x38] sm:$0xff]  ;;  %v185_v8 = vld [vmem:[%s8960_s26 + $0x40] sm:$0xff] }
  0x13   : > { %174 = vst [vmem:[%s8965_s27 + $0x10] sm:$0xff] %v173_v2  ;;  %v187_v9 = vld [vmem:[%s8960_s26 + $0x48] sm:$0xff]  ;;  %v189_v10 = vld [vmem:[%s8960_s26 + $0x50] sm:$0xff]  ;;  %v191_v11 = vld [vmem:[%s8960_s26 + $0x58] sm:$0xff] }
  0x14   : > { %176 = vst [vmem:[%s8965_s27 + $0x18] sm:$0xff] %v175_v3  ;;  %v193_v12 = vld [vmem:[%s8960_s26 + $0x60] sm:$0xff]  ;;  %v195_v13 = vld [vmem:[%s8960_s26 + $0x68] sm:$0xff]  ;;  %v197_v14 = vld [vmem:[%s8960_s26 + $0x70] sm:$0xff] }
  0x15   : > { %178 = vst [vmem:[%s8965_s27 + $0x20] sm:$0xff] %v177_v4  ;;  %v199_v15 = vld [vmem:[%s8960_s26 + $0x78] sm:$0xff]  ;;  %v201_v16 = vld [vmem:[%s8960_s26 + $0x80] sm:$0xff]  ;;  %v203_v17 = vld [vmem:[%s8960_s26 + $0x88] sm:$0xff] }
  0x16   : > { %180 = vst [vmem:[%s8965_s27 + $0x28] sm:$0xff] %v179_v5  ;;  %v205_v18 = vld [vmem:[%s8960_s26 + $0x90] sm:$0xff]  ;;  %v207_v19 = vld [vmem:[%s8960_s26 + $0x98] sm:$0xff]  ;;  %v209_v20 = vld [vmem:[%s8960_s26 + $0xa0] sm:$0xff] }
  0x17   : > { %182 = vst [vmem:[%s8965_s27 + $0x30] sm:$0xff] %v181_v6  ;;  %v211_v21 = vld [vmem:[%s8960_s26 + $0xa8] sm:$0xff]  ;;  %v213_v22 = vld [vmem:[%s8960_s26 + $0xb0] sm:$0xff]  ;;  %v215_v23 = vld [vmem:[%s8960_s26 + $0xb8] sm:$0xff] }
  0x18   : > { %184 = vst [vmem:[%s8965_s27 + $0x38] sm:$0xff] %v183_v7  ;;  %v217_v24 = vld [vmem:[%s8960_s26 + $0x180] sm:$0xff]  ;;  %v219_v25 = vld [vmem:[%s8960_s26 + $0x188] sm:$0xff]  ;;  %v221_v26 = vld [vmem:[%s8960_s26 + $0x190] sm:$0xff] }
  0x19   : > { %186 = vst [vmem:[%s8965_s27 + $0x40] sm:$0xff] %v185_v8  ;;  %v223_v27 = vld [vmem:[%s8960_s26 + $0x198] sm:$0xff]  ;;  %v225_v28 = vld [vmem:[%s8960_s26 + $0x1a0] sm:$0xff]  ;;  %v227_v29 = vld [vmem:[%s8960_s26 + $0x1a8] sm:$0xff] }
  0x1a   : > { %188 = vst [vmem:[%s8965_s27 + $0x48] sm:$0xff] %v187_v9  ;;  %v229_v30 = vld [vmem:[%s8960_s26 + $0x1b0] sm:$0xff]  ;;  %v231_v31 = vld [vmem:[%s8960_s26 + $0x1b8] sm:$0xff]  ;;  %v233_v32 = vld [vmem:[%s8960_s26 + $0x1c0] sm:$0xff] }
  0x1b   : > { %190 = vst [vmem:[%s8965_s27 + $0x50] sm:$0xff] %v189_v10  ;;  %v235_v33 = vld [vmem:[%s8960_s26 + $0x1c8] sm:$0xff]  ;;  %v237_v34 = vld [vmem:[%s8960_s26 + $0x1d0] sm:$0xff]  ;;  %v239_v35 = vld [vmem:[%s8960_s26 + $0x1d8] sm:$0xff] }
  0x1c   : > { %192 = vst [vmem:[%s8965_s27 + $0x58] sm:$0xff] %v191_v11  ;;  %v241_v36 = vld [vmem:[%s8960_s26 + $0x1e0] sm:$0xff]  ;;  %v243_v37 = vld [vmem:[%s8960_s26 + $0x1e8] sm:$0xff]  ;;  %v245_v38 = vld [vmem:[%s8960_s26 + $0x1f0] sm:$0xff] }
  0x1d   : > { %194 = vst [vmem:[%s8965_s27 + $0x60] sm:$0xff] %v193_v12  ;;  %v247_v39 = vld [vmem:[%s8960_s26 + $0x1f8] sm:$0xff]  ;;  %v249_v40 = vld [vmem:[%s8960_s26 + $0x200] sm:$0xff]  ;;  %v251_v41 = vld [vmem:[%s8960_s26 + $0x208] sm:$0xff] }
  0x1e   : > { %196 = vst [vmem:[%s8965_s27 + $0x68] sm:$0xff] %v195_v13  ;;  %v253_v42 = vld [vmem:[%s8960_s26 + $0x210] sm:$0xff]  ;;  %v255_v43 = vld [vmem:[%s8960_s26 + $0x218] sm:$0xff]  ;;  %v257_v44 = vld [vmem:[%s8960_s26 + $0x220] sm:$0xff] }
  0x1f   : > { %198 = vst [vmem:[%s8965_s27 + $0x70] sm:$0xff] %v197_v14  ;;  %v259_v45 = vld [vmem:[%s8960_s26 + $0x228] sm:$0xff]  ;;  %v261_v46 = vld [vmem:[%s8960_s26 + $0x230] sm:$0xff]  ;;  %v263_v47 = vld [vmem:[%s8960_s26 + $0x238] sm:$0xff] }
  0x20   : > { %200 = vst [vmem:[%s8965_s27 + $0x78] sm:$0xff] %v199_v15  ;;  %v265_v48 = vld [vmem:[%s8960_s26 + $0x300] sm:$0xff]  ;;  %v267_v49 = vld [vmem:[%s8960_s26 + $0x308] sm:$0xff]  ;;  %v269_v50 = vld [vmem:[%s8960_s26 + $0x310] sm:$0xff] }
  0x21   : > { %202 = vst [vmem:[%s8965_s27 + $0x80] sm:$0xff] %v201_v16  ;;  %v271_v51 = vld [vmem:[%s8960_s26 + $0x318] sm:$0xff]  ;;  %v273_v52 = vld [vmem:[%s8960_s26 + $0x320] sm:$0xff]  ;;  %v275_v53 = vld [vmem:[%s8960_s26 + $0x328] sm:$0xff] }
  0x22   : > { %204 = vst [vmem:[%s8965_s27 + $0x88] sm:$0xff] %v203_v17  ;;  %v277_v54 = vld [vmem:[%s8960_s26 + $0x330] sm:$0xff]  ;;  %v279_v55 = vld [vmem:[%s8960_s26 + $0x338] sm:$0xff]  ;;  %v281_v56 = vld [vmem:[%s8960_s26 + $0x340] sm:$0xff] }
  0x23   : > { %206 = vst [vmem:[%s8965_s27 + $0x90] sm:$0xff] %v205_v18  ;;  %v283_v57 = vld [vmem:[%s8960_s26 + $0x348] sm:$0xff]  ;;  %v285_v58 = vld [vmem:[%s8960_s26 + $0x350] sm:$0xff]  ;;  %v287_v59 = vld [vmem:[%s8960_s26 + $0x358] sm:$0xff] }
  0x24   : > { %208 = vst [vmem:[%s8965_s27 + $0x98] sm:$0xff] %v207_v19  ;;  %v289_v60 = vld [vmem:[%s8960_s26 + $0x360] sm:$0xff]  ;;  %v291_v61 = vld [vmem:[%s8960_s26 + $0x368] sm:$0xff]  ;;  %v293_v62 = vld [vmem:[%s8960_s26 + $0x370] sm:$0xff] }
  0x25   : > { %210 = vst [vmem:[%s8965_s27 + $0xa0] sm:$0xff] %v209_v20  ;;  %v295_v63 = vld [vmem:[%s8960_s26 + $0x378] sm:$0xff]  ;;  %v297_v0 = vld [vmem:[%s8960_s26 + $0x380] sm:$0xff]  ;;  %v299_v1 = vld [vmem:[%s8960_s26 + $0x388] sm:$0xff] }
  0x26   : > { %212 = vst [vmem:[%s8965_s27 + $0xa8] sm:$0xff] %v211_v21  ;;  %v301_v2 = vld [vmem:[%s8960_s26 + $0x390] sm:$0xff]  ;;  %v303_v3 = vld [vmem:[%s8960_s26 + $0x398] sm:$0xff]  ;;  %v305_v4 = vld [vmem:[%s8960_s26 + $0x3a0] sm:$0xff] }
  0x27   : > { %214 = vst [vmem:[%s8965_s27 + $0xb0] sm:$0xff] %v213_v22  ;;  %v307_v5 = vld [vmem:[%s8960_s26 + $0x3a8] sm:$0xff]  ;;  %v309_v6 = vld [vmem:[%s8960_s26 + $0x3b0] sm:$0xff]  ;;  %v311_v7 = vld [vmem:[%s8960_s26 + $0x3b8] sm:$0xff] }
  0x28   : > { %216 = vst [vmem:[%s8965_s27 + $0xb8] sm:$0xff] %v215_v23  ;;  %v313_v8 = vld [vmem:[%s8960_s26 + $0x480] sm:$0xff]  ;;  %v315_v9 = vld [vmem:[%s8960_s26 + $0x488] sm:$0xff]  ;;  %v317_v10 = vld [vmem:[%s8960_s26 + $0x490] sm:$0xff] }
  0x29   : > { %218 = vst [vmem:[%s8965_s27 + $0xc0] sm:$0xff] %v217_v24  ;;  %v319_v11 = vld [vmem:[%s8960_s26 + $0x498] sm:$0xff]  ;;  %v321_v12 = vld [vmem:[%s8960_s26 + $0x4a0] sm:$0xff]  ;;  %v323_v13 = vld [vmem:[%s8960_s26 + $0x4a8] sm:$0xff] }
  0x2a   : > { %220 = vst [vmem:[%s8965_s27 + $0xc8] sm:$0xff] %v219_v25  ;;  %v325_v14 = vld [vmem:[%s8960_s26 + $0x4b0] sm:$0xff]  ;;  %v327_v15 = vld [vmem:[%s8960_s26 + $0x4b8] sm:$0xff]  ;;  %v329_v16 = vld [vmem:[%s8960_s26 + $0x4c0] sm:$0xff] }
  0x2b   : > { %222 = vst [vmem:[%s8965_s27 + $0xd0] sm:$0xff] %v221_v26  ;;  %v331_v17 = vld [vmem:[%s8960_s26 + $0x4c8] sm:$0xff]  ;;  %v333_v18 = vld [vmem:[%s8960_s26 + $0x4d0] sm:$0xff]  ;;  %v335_v19 = vld [vmem:[%s8960_s26 + $0x4d8] sm:$0xff] }
  0x2c   : > { %224 = vst [vmem:[%s8965_s27 + $0xd8] sm:$0xff] %v223_v27  ;;  %v337_v20 = vld [vmem:[%s8960_s26 + $0x4e0] sm:$0xff]  ;;  %v339_v21 = vld [vmem:[%s8960_s26 + $0x4e8] sm:$0xff]  ;;  %v341_v22 = vld [vmem:[%s8960_s26 + $0x4f0] sm:$0xff] }
  0x2d   : > { %226 = vst [vmem:[%s8965_s27 + $0xe0] sm:$0xff] %v225_v28  ;;  %v343_v23 = vld [vmem:[%s8960_s26 + $0x4f8] sm:$0xff]  ;;  %v345_v24 = vld [vmem:[%s8960_s26 + $0x500] sm:$0xff]  ;;  %v347_v25 = vld [vmem:[%s8960_s26 + $0x508] sm:$0xff] }
  0x2e   : > { %228 = vst [vmem:[%s8965_s27 + $0xe8] sm:$0xff] %v227_v29  ;;  %v349_v26 = vld [vmem:[%s8960_s26 + $0x510] sm:$0xff]  ;;  %v351_v27 = vld [vmem:[%s8960_s26 + $0x518] sm:$0xff]  ;;  %v353_v28 = vld [vmem:[%s8960_s26 + $0x520] sm:$0xff] }
  0x2f   : > { %230 = vst [vmem:[%s8965_s27 + $0xf0] sm:$0xff] %v229_v30  ;;  %v355_v29 = vld [vmem:[%s8960_s26 + $0x528] sm:$0xff]  ;;  %v357_v30 = vld [vmem:[%s8960_s26 + $0x530] sm:$0xff] }
  0x30   : > { %232 = vst [vmem:[%s8965_s27 + $0xf8] sm:$0xff] %v231_v31  ;;  %v359_v31 = vld [vmem:[%s8960_s26 + $0x538] sm:$0xff] }
  0x31   : > { %234 = vst [vmem:[%s8965_s27 + $0x100] sm:$0xff] %v233_v32  ;;  %v361_v32 = vld [vmem:[%s8960_s26 + $0x600] sm:$0xff] }
  0x32   : > { %236 = vst [vmem:[%s8965_s27 + $0x108] sm:$0xff] %v235_v33  ;;  %v363_v33 = vld [vmem:[%s8960_s26 + $0x608] sm:$0xff] }
  0x33   : > { %238 = vst [vmem:[%s8965_s27 + $0x110] sm:$0xff] %v237_v34  ;;  %v365_v34 = vld [vmem:[%s8960_s26 + $0x610] sm:$0xff] }
  0x34   : > { %240 = vst [vmem:[%s8965_s27 + $0x118] sm:$0xff] %v239_v35  ;;  %v367_v35 = vld [vmem:[%s8960_s26 + $0x618] sm:$0xff] }
  0x35   : > { %242 = vst [vmem:[%s8965_s27 + $0x120] sm:$0xff] %v241_v36  ;;  %v369_v36 = vld [vmem:[%s8960_s26 + $0x620] sm:$0xff] }
  0x36   : > { %244 = vst [vmem:[%s8965_s27 + $0x128] sm:$0xff] %v243_v37  ;;  %v371_v37 = vld [vmem:[%s8960_s26 + $0x628] sm:$0xff] }
  0x37   : > { %246 = vst [vmem:[%s8965_s27 + $0x130] sm:$0xff] %v245_v38  ;;  %v373_v38 = vld [vmem:[%s8960_s26 + $0x630] sm:$0xff] }
  0x38   : > { %248 = vst [vmem:[%s8965_s27 + $0x138] sm:$0xff] %v247_v39  ;;  %v375_v39 = vld [vmem:[%s8960_s26 + $0x638] sm:$0xff] }
  0x39   : > { %250 = vst [vmem:[%s8965_s27 + $0x140] sm:$0xff] %v249_v40  ;;  %v377_v40 = vld [vmem:[%s8960_s26 + $0x640] sm:$0xff] }
  0x3a   : > { %252 = vst [vmem:[%s8965_s27 + $0x148] sm:$0xff] %v251_v41  ;;  %v379_v41 = vld [vmem:[%s8960_s26 + $0x648] sm:$0xff] }
  0x3b   : > { %254 = vst [vmem:[%s8965_s27 + $0x150] sm:$0xff] %v253_v42  ;;  %v381_v42 = vld [vmem:[%s8960_s26 + $0x650] sm:$0xff] }
  0x3c   : > { %256 = vst [vmem:[%s8965_s27 + $0x158] sm:$0xff] %v255_v43  ;;  %v383_v43 = vld [vmem:[%s8960_s26 + $0x658] sm:$0xff] }
  0x3d   : > { %258 = vst [vmem:[%s8965_s27 + $0x160] sm:$0xff] %v257_v44  ;;  %v385_v44 = vld [vmem:[%s8960_s26 + $0x660] sm:$0xff] }
  0x3e   : > { %260 = vst [vmem:[%s8965_s27 + $0x168] sm:$0xff] %v259_v45  ;;  %v387_v45 = vld [vmem:[%s8960_s26 + $0x668] sm:$0xff] }
  0x3f   : > { %262 = vst [vmem:[%s8965_s27 + $0x170] sm:$0xff] %v261_v46  ;;  %v389_v46 = vld [vmem:[%s8960_s26 + $0x670] sm:$0xff] }
  0x40   : > { %264 = vst [vmem:[%s8965_s27 + $0x178] sm:$0xff] %v263_v47  ;;  %v391_v47 = vld [vmem:[%s8960_s26 + $0x678] sm:$0xff] }
  0x41   : > { %266 = vst [vmem:[%s8965_s27 + $0x180] sm:$0xff] %v265_v48  ;;  %v393_v48 = vld [vmem:[%s8960_s26 + $0x680] sm:$0xff] }
  0x42   : > { %268 = vst [vmem:[%s8965_s27 + $0x188] sm:$0xff] %v267_v49  ;;  %v395_v49 = vld [vmem:[%s8960_s26 + $0x688] sm:$0xff] }
  0x43   : > { %270 = vst [vmem:[%s8965_s27 + $0x190] sm:$0xff] %v269_v50  ;;  %v397_v50 = vld [vmem:[%s8960_s26 + $0x690] sm:$0xff] }
  0x44   : > { %272 = vst [vmem:[%s8965_s27 + $0x198] sm:$0xff] %v271_v51  ;;  %v399_v51 = vld [vmem:[%s8960_s26 + $0x698] sm:$0xff] }
  0x45   : > { %274 = vst [vmem:[%s8965_s27 + $0x1a0] sm:$0xff] %v273_v52  ;;  %v401_v52 = vld [vmem:[%s8960_s26 + $0x6a0] sm:$0xff] }
  0x46   : > { %276 = vst [vmem:[%s8965_s27 + $0x1a8] sm:$0xff] %v275_v53  ;;  %v403_v53 = vld [vmem:[%s8960_s26 + $0x6a8] sm:$0xff] }
  0x47   : > { %278 = vst [vmem:[%s8965_s27 + $0x1b0] sm:$0xff] %v277_v54  ;;  %v405_v54 = vld [vmem:[%s8960_s26 + $0x6b0] sm:$0xff] }
  0x48   : > { %280 = vst [vmem:[%s8965_s27 + $0x1b8] sm:$0xff] %v279_v55  ;;  %v407_v55 = vld [vmem:[%s8960_s26 + $0x6b8] sm:$0xff] }
  0x49   : > { %282 = vst [vmem:[%s8965_s27 + $0x1c0] sm:$0xff] %v281_v56  ;;  %v409_v56 = vld [vmem:[%s8960_s26 + $0x780] sm:$0xff] }
  0x4a   : > { %284 = vst [vmem:[%s8965_s27 + $0x1c8] sm:$0xff] %v283_v57  ;;  %v411_v57 = vld [vmem:[%s8960_s26 + $0x788] sm:$0xff] }
  0x4b   : > { %286 = vst [vmem:[%s8965_s27 + $0x1d0] sm:$0xff] %v285_v58  ;;  %v413_v58 = vld [vmem:[%s8960_s26 + $0x790] sm:$0xff] }
  0x4c   : > { %288 = vst [vmem:[%s8965_s27 + $0x1d8] sm:$0xff] %v287_v59  ;;  %v415_v59 = vld [vmem:[%s8960_s26 + $0x798] sm:$0xff] }
  0x4d   : > { %290 = vst [vmem:[%s8965_s27 + $0x1e0] sm:$0xff] %v289_v60  ;;  %v417_v60 = vld [vmem:[%s8960_s26 + $0x7a0] sm:$0xff] }
  0x4e   : > { %292 = vst [vmem:[%s8965_s27 + $0x1e8] sm:$0xff] %v291_v61  ;;  %v419_v61 = vld [vmem:[%s8960_s26 + $0x7a8] sm:$0xff] }
  0x4f   : > { %294 = vst [vmem:[%s8965_s27 + $0x1f0] sm:$0xff] %v293_v62  ;;  %v421_v62 = vld [vmem:[%s8960_s26 + $0x7b0] sm:$0xff] }
  0x50   : > { %296 = vst [vmem:[%s8965_s27 + $0x1f8] sm:$0xff] %v295_v63  ;;  %v423_v63 = vld [vmem:[%s8960_s26 + $0x7b8] sm:$0xff] }
  0x51   : > { %298 = vst [vmem:[%s8965_s27 + $0x200] sm:$0xff] %v297_v0  ;;  %v425_v0 = vld [vmem:[%s8960_s26 + $0x7c0] sm:$0xff] }
  0x52   : > { %300 = vst [vmem:[%s8965_s27 + $0x208] sm:$0xff] %v299_v1  ;;  %v427_v1 = vld [vmem:[%s8960_s26 + $0x7c8] sm:$0xff] }
  0x53   : > { %302 = vst [vmem:[%s8965_s27 + $0x210] sm:$0xff] %v301_v2  ;;  %v429_v2 = vld [vmem:[%s8960_s26 + $0x7d0] sm:$0xff] }
  0x54   : > { %304 = vst [vmem:[%s8965_s27 + $0x218] sm:$0xff] %v303_v3  ;;  %v431_v3 = vld [vmem:[%s8960_s26 + $0x7d8] sm:$0xff] }
  0x55   : > { %306 = vst [vmem:[%s8965_s27 + $0x220] sm:$0xff] %v305_v4  ;;  %v433_v4 = vld [vmem:[%s8960_s26 + $0x7e0] sm:$0xff] }
  0x56   : > { %308 = vst [vmem:[%s8965_s27 + $0x228] sm:$0xff] %v307_v5  ;;  %v435_v5 = vld [vmem:[%s8960_s26 + $0x7e8] sm:$0xff] }
  0x57   : > { %310 = vst [vmem:[%s8965_s27 + $0x230] sm:$0xff] %v309_v6  ;;  %v437_v6 = vld [vmem:[%s8960_s26 + $0x7f0] sm:$0xff] }
  0x58   : > { %312 = vst [vmem:[%s8965_s27 + $0x238] sm:$0xff] %v311_v7  ;;  %v439_v7 = vld [vmem:[%s8960_s26 + $0x7f8] sm:$0xff] }
  0x59   : > { %314 = vst [vmem:[%s8965_s27 + $0x240] sm:$0xff] %v313_v8  ;;  %v441_v8 = vld [vmem:[%s8960_s26 + $0x800] sm:$0xff] }
  0x5a   : > { %316 = vst [vmem:[%s8965_s27 + $0x248] sm:$0xff] %v315_v9  ;;  %v443_v9 = vld [vmem:[%s8960_s26 + $0x808] sm:$0xff] }
  0x5b   : > { %318 = vst [vmem:[%s8965_s27 + $0x250] sm:$0xff] %v317_v10  ;;  %v445_v10 = vld [vmem:[%s8960_s26 + $0x810] sm:$0xff] }
  0x5c   : > { %320 = vst [vmem:[%s8965_s27 + $0x258] sm:$0xff] %v319_v11  ;;  %v447_v11 = vld [vmem:[%s8960_s26 + $0x818] sm:$0xff] }
  0x5d   : > { %322 = vst [vmem:[%s8965_s27 + $0x260] sm:$0xff] %v321_v12  ;;  %v449_v12 = vld [vmem:[%s8960_s26 + $0x820] sm:$0xff] }
  0x5e   : > { %324 = vst [vmem:[%s8965_s27 + $0x268] sm:$0xff] %v323_v13  ;;  %v451_v13 = vld [vmem:[%s8960_s26 + $0x828] sm:$0xff] }
  0x5f   : > { %326 = vst [vmem:[%s8965_s27 + $0x270] sm:$0xff] %v325_v14  ;;  %v453_v14 = vld [vmem:[%s8960_s26 + $0x830] sm:$0xff] }
  0x60   : > { %328 = vst [vmem:[%s8965_s27 + $0x278] sm:$0xff] %v327_v15  ;;  %v455_v15 = vld [vmem:[%s8960_s26 + $0x838] sm:$0xff] }
  0x61   : > { %330 = vst [vmem:[%s8965_s27 + $0x280] sm:$0xff] %v329_v16  ;;  %v457_v16 = vld [vmem:[%s8960_s26 + $0x900] sm:$0xff] }
  0x62   : > { %332 = vst [vmem:[%s8965_s27 + $0x288] sm:$0xff] %v331_v17  ;;  %v459_v17 = vld [vmem:[%s8960_s26 + $0x908] sm:$0xff] }
  0x63   : > { %334 = vst [vmem:[%s8965_s27 + $0x290] sm:$0xff] %v333_v18  ;;  %v461_v18 = vld [vmem:[%s8960_s26 + $0x910] sm:$0xff] }
  0x64   : > { %336 = vst [vmem:[%s8965_s27 + $0x298] sm:$0xff] %v335_v19  ;;  %v463_v19 = vld [vmem:[%s8960_s26 + $0x918] sm:$0xff] }
  0x65   : > { %338 = vst [vmem:[%s8965_s27 + $0x2a0] sm:$0xff] %v337_v20  ;;  %v465_v20 = vld [vmem:[%s8960_s26 + $0x920] sm:$0xff] }
  0x66   : > { %340 = vst [vmem:[%s8965_s27 + $0x2a8] sm:$0xff] %v339_v21  ;;  %v467_v21 = vld [vmem:[%s8960_s26 + $0x928] sm:$0xff] }
  0x67   : > { %342 = vst [vmem:[%s8965_s27 + $0x2b0] sm:$0xff] %v341_v22  ;;  %v469_v22 = vld [vmem:[%s8960_s26 + $0x930] sm:$0xff] }
  0x68   : > { %344 = vst [vmem:[%s8965_s27 + $0x2b8] sm:$0xff] %v343_v23  ;;  %v471_v23 = vld [vmem:[%s8960_s26 + $0x938] sm:$0xff] }
  0x69   : > { %346 = vst [vmem:[%s8965_s27 + $0x2c0] sm:$0xff] %v345_v24  ;;  %v473_v24 = vld [vmem:[%s8960_s26 + $0x940] sm:$0xff] }
  0x6a   : > { %348 = vst [vmem:[%s8965_s27 + $0x2c8] sm:$0xff] %v347_v25  ;;  %v475_v25 = vld [vmem:[%s8960_s26 + $0x948] sm:$0xff] }
  0x6b   : > { %350 = vst [vmem:[%s8965_s27 + $0x2d0] sm:$0xff] %v349_v26  ;;  %v477_v26 = vld [vmem:[%s8960_s26 + $0x950] sm:$0xff] }
  0x6c   : > { %352 = vst [vmem:[%s8965_s27 + $0x2d8] sm:$0xff] %v351_v27  ;;  %v479_v27 = vld [vmem:[%s8960_s26 + $0x958] sm:$0xff] }
  0x6d   : > { %354 = vst [vmem:[%s8965_s27 + $0x2e0] sm:$0xff] %v353_v28  ;;  %v481_v28 = vld [vmem:[%s8960_s26 + $0x960] sm:$0xff] }
  0x6e   : > { %356 = vst [vmem:[%s8965_s27 + $0x2e8] sm:$0xff] %v355_v29  ;;  %v483_v29 = vld [vmem:[%s8960_s26 + $0x968] sm:$0xff] }
  0x6f   : > { %358 = vst [vmem:[%s8965_s27 + $0x2f0] sm:$0xff] %v357_v30  ;;  %v485_v30 = vld [vmem:[%s8960_s26 + $0x970] sm:$0xff] }
  0x70   : > { %360 = vst [vmem:[%s8965_s27 + $0x2f8] sm:$0xff] %v359_v31  ;;  %v487_v31 = vld [vmem:[%s8960_s26 + $0x978] sm:$0xff] }
  0x71   : > { %362 = vst [vmem:[%s8965_s27 + $0x300] sm:$0xff] %v361_v32  ;;  %v489_v32 = vld [vmem:[%s8960_s26 + $0x980] sm:$0xff] }
  0x72   : > { %364 = vst [vmem:[%s8965_s27 + $0x308] sm:$0xff] %v363_v33  ;;  %v491_v33 = vld [vmem:[%s8960_s26 + $0x988] sm:$0xff] }
  0x73   : > { %366 = vst [vmem:[%s8965_s27 + $0x310] sm:$0xff] %v365_v34  ;;  %v493_v34 = vld [vmem:[%s8960_s26 + $0x990] sm:$0xff] }
  0x74   : > { %368 = vst [vmem:[%s8965_s27 + $0x318] sm:$0xff] %v367_v35  ;;  %v495_v35 = vld [vmem:[%s8960_s26 + $0x998] sm:$0xff] }
  0x75   : > { %370 = vst [vmem:[%s8965_s27 + $0x320] sm:$0xff] %v369_v36  ;;  %v497_v36 = vld [vmem:[%s8960_s26 + $0x9a0] sm:$0xff] }
  0x76   : > { %372 = vst [vmem:[%s8965_s27 + $0x328] sm:$0xff] %v371_v37  ;;  %v499_v37 = vld [vmem:[%s8960_s26 + $0x9a8] sm:$0xff] }
  0x77   : > { %374 = vst [vmem:[%s8965_s27 + $0x330] sm:$0xff] %v373_v38  ;;  %v501_v38 = vld [vmem:[%s8960_s26 + $0x9b0] sm:$0xff] }
  0x78   : > { %376 = vst [vmem:[%s8965_s27 + $0x338] sm:$0xff] %v375_v39  ;;  %v503_v39 = vld [vmem:[%s8960_s26 + $0x9b8] sm:$0xff] }
  0x79   : > { %378 = vst [vmem:[%s8965_s27 + $0x340] sm:$0xff] %v377_v40 }
  0x7a   : > { %380 = vst [vmem:[%s8965_s27 + $0x348] sm:$0xff] %v379_v41 }
  0x7b   : > { %382 = vst [vmem:[%s8965_s27 + $0x350] sm:$0xff] %v381_v42 }
  0x7c   : > { %384 = vst [vmem:[%s8965_s27 + $0x358] sm:$0xff] %v383_v43 }
  0x7d   : > { %386 = vst [vmem:[%s8965_s27 + $0x360] sm:$0xff] %v385_v44 }
  0x7e   : > { %388 = vst [vmem:[%s8965_s27 + $0x368] sm:$0xff] %v387_v45 }
  0x7f   : > { %390 = vst [vmem:[%s8965_s27 + $0x370] sm:$0xff] %v389_v46 }
  0x80   : > { %392 = vst [vmem:[%s8965_s27 + $0x378] sm:$0xff] %v391_v47 }
  0x81   : > { %394 = vst [vmem:[%s8965_s27 + $0x380] sm:$0xff] %v393_v48 }
  0x82   : > { %396 = vst [vmem:[%s8965_s27 + $0x388] sm:$0xff] %v395_v49 }
  0x83   : > { %398 = vst [vmem:[%s8965_s27 + $0x390] sm:$0xff] %v397_v50 }
  0x84   : > { %400 = vst [vmem:[%s8965_s27 + $0x398] sm:$0xff] %v399_v51 }
  0x85   : > { %402 = vst [vmem:[%s8965_s27 + $0x3a0] sm:$0xff] %v401_v52 }
  0x86   : > { %404 = vst [vmem:[%s8965_s27 + $0x3a8] sm:$0xff] %v403_v53 }
  0x87   : > { %406 = vst [vmem:[%s8965_s27 + $0x3b0] sm:$0xff] %v405_v54 }
  0x88   : > { %408 = vst [vmem:[%s8965_s27 + $0x3b8] sm:$0xff] %v407_v55 }
  0x89   : > { %410 = vst [vmem:[%s8965_s27 + $0x3c0] sm:$0xff] %v409_v56 }
  0x8a   : > { %412 = vst [vmem:[%s8965_s27 + $0x3c8] sm:$0xff] %v411_v57 }
  0x8b   : > { %414 = vst [vmem:[%s8965_s27 + $0x3d0] sm:$0xff] %v413_v58 }
  0x8c   : > { %416 = vst [vmem:[%s8965_s27 + $0x3d8] sm:$0xff] %v415_v59 }
  0x8d   : > { %418 = vst [vmem:[%s8965_s27 + $0x3e0] sm:$0xff] %v417_v60 }
  0x8e   : > { %420 = vst [vmem:[%s8965_s27 + $0x3e8] sm:$0xff] %v419_v61 }
  0x8f   : > { %422 = vst [vmem:[%s8965_s27 + $0x3f0] sm:$0xff] %v421_v62 }
  0x90   : > { %424 = vst [vmem:[%s8965_s27 + $0x3f8] sm:$0xff] %v423_v63 }
  0x91   : > { %426 = vst [vmem:[%s8965_s27 + $0x400] sm:$0xff] %v425_v0 }
  0x92   : > { %428 = vst [vmem:[%s8965_s27 + $0x408] sm:$0xff] %v427_v1 }
  0x93   : > { %430 = vst [vmem:[%s8965_s27 + $0x410] sm:$0xff] %v429_v2 }
  0x94   : > { %432 = vst [vmem:[%s8965_s27 + $0x418] sm:$0xff] %v431_v3 }
  0x95   : > { %434 = vst [vmem:[%s8965_s27 + $0x420] sm:$0xff] %v433_v4 }
  0x96   : > { %436 = vst [vmem:[%s8965_s27 + $0x428] sm:$0xff] %v435_v5 }
  0x97   : > { %438 = vst [vmem:[%s8965_s27 + $0x430] sm:$0xff] %v437_v6 }
  0x98   : > { %440 = vst [vmem:[%s8965_s27 + $0x438] sm:$0xff] %v439_v7 }
  0x99   : > { %442 = vst [vmem:[%s8965_s27 + $0x440] sm:$0xff] %v441_v8 }
  0x9a   : > { %444 = vst [vmem:[%s8965_s27 + $0x448] sm:$0xff] %v443_v9 }
  0x9b   : > { %446 = vst [vmem:[%s8965_s27 + $0x450] sm:$0xff] %v445_v10 }
  0x9c   : > { %448 = vst [vmem:[%s8965_s27 + $0x458] sm:$0xff] %v447_v11 }
  0x9d   : > { %450 = vst [vmem:[%s8965_s27 + $0x460] sm:$0xff] %v449_v12 }
  0x9e   : > { %452 = vst [vmem:[%s8965_s27 + $0x468] sm:$0xff] %v451_v13 }
  0x9f   : > { %454 = vst [vmem:[%s8965_s27 + $0x470] sm:$0xff] %v453_v14 }
  0xa0   : > { %456 = vst [vmem:[%s8965_s27 + $0x478] sm:$0xff] %v455_v15 }
  0xa1   : > { %458 = vst [vmem:[%s8965_s27 + $0x480] sm:$0xff] %v457_v16 }
  0xa2   : > { %460 = vst [vmem:[%s8965_s27 + $0x488] sm:$0xff] %v459_v17 }
  0xa3   : > { %462 = vst [vmem:[%s8965_s27 + $0x490] sm:$0xff] %v461_v18 }
  0xa4   : > { %464 = vst [vmem:[%s8965_s27 + $0x498] sm:$0xff] %v463_v19 }
  0xa5   : > { %466 = vst [vmem:[%s8965_s27 + $0x4a0] sm:$0xff] %v465_v20 }
  0xa6   : > { %468 = vst [vmem:[%s8965_s27 + $0x4a8] sm:$0xff] %v467_v21 }
  0xa7   : > { %470 = vst [vmem:[%s8965_s27 + $0x4b0] sm:$0xff] %v469_v22 }
  0xa8   : > { %472 = vst [vmem:[%s8965_s27 + $0x4b8] sm:$0xff] %v471_v23 }
  0xa9   : > { %474 = vst [vmem:[%s8965_s27 + $0x4c0] sm:$0xff] %v473_v24 }
  0xaa   : > { %476 = vst [vmem:[%s8965_s27 + $0x4c8] sm:$0xff] %v475_v25 }
  0xab   : > { %478 = vst [vmem:[%s8965_s27 + $0x4d0] sm:$0xff] %v477_v26 }
  0xac   : > { %480 = vst [vmem:[%s8965_s27 + $0x4d8] sm:$0xff] %v479_v27 }
  0xad   : > { %482 = vst [vmem:[%s8965_s27 + $0x4e0] sm:$0xff] %v481_v28 }
  0xae   : > { %484 = vst [vmem:[%s8965_s27 + $0x4e8] sm:$0xff] %v483_v29 }
  0xaf   : > { %486 = vst [vmem:[%s8965_s27 + $0x4f0] sm:$0xff] %v485_v30 }
  0xb0   : > { %488 = vst [vmem:[%s8965_s27 + $0x4f8] sm:$0xff] %v487_v31 }
  0xb1   : > { %490 = vst [vmem:[%s8965_s27 + $0x500] sm:$0xff] %v489_v32 }
  0xb2   : > { %492 = vst [vmem:[%s8965_s27 + $0x508] sm:$0xff] %v491_v33 }
  0xb3   : > { %494 = vst [vmem:[%s8965_s27 + $0x510] sm:$0xff] %v493_v34 }
  0xb4   : > { %496 = vst [vmem:[%s8965_s27 + $0x518] sm:$0xff] %v495_v35 }
  0xb5   : > { %498 = vst [vmem:[%s8965_s27 + $0x520] sm:$0xff] %v497_v36 }
  0xb6   : > { %500 = vst [vmem:[%s8965_s27 + $0x528] sm:$0xff] %v499_v37 }
  0xb7   : > { %502 = vst [vmem:[%s8965_s27 + $0x530] sm:$0xff] %v501_v38 }
  0xb8   : > { %504 = vst [vmem:[%s8965_s27 + $0x538] sm:$0xff] %v503_v39 }
  0xb9 PF: > { %p6166_p6 = scmp.ge.s32.totalorder %s8895_s16, 1  ;;  %p518_p7 = scmp.lt.s32.totalorder %s8895_s16, 3 }
  0xbb   : > { %p519_p8 = pnand %p6166_p6, %p518_p7 }
  0xbc   : > { %s525_s28 = sand.u32 (!%p519_p8), 1, %s8879_s12   ;;  %s555_s29 = smul.u32 (!%p519_p8), 768, %s8887_s14 }
  0xbd   : > { %522 = sbr.rel (%p519_p8) target bundleno = 1134 (0x46e), region = 51  ;;  %p6168_p10 = scmp.ne.s32.totalorder (!%p519_p8), %s8887_s14, 0 }
  0xbe   : > { %s8815_s30 = smul.u32 (!%p519_p8), 1344, %s525_s28  ;;  %p556_p9 = scmp.lt.s32.totalorder (!%p519_p8), %s555_s29, 1535 }
  0xc0   : > { %s9309_s8 = scalar_lea.vmem (!%p519_p8), [#allocation2], %s8815_s30 }
  0xc2   : > { %s10349_s29 = smov (!%p556_p9, %s555_s29), 1535  ;;  %570 = sbr.rel (%p6168_p10) target bundleno = 207 (0xcf), region = 59 }
  0xc3   : > { %s6167_s4 = sshll.u32 %s10349_s29, 2 }
  0xc4   : > { %s9307_s7 = scalar_lea.vmem %s10339_s1, %s6167_s4 }
  0xc7   : > { %v8856_v40 = vld [vmem:[%s10340_s2] ss:$0 sm:$0xff]  ;;  %vm575_vm0 = vcmask 523264   ;;  %vm582_vm1 = vcmask 517120  }
  0xc8   : > { %576 = vst.msk [vmem:[%s10341_s3] sm:$0xff] %vm575_vm0, %v8856_v40 }
  0xc9   : > { %577 = vst.msk [vmem:[%s10341_s3 + $0x8] sm:$0xff] %vm575_vm0, %v8856_v40 }
  0xca   : > { %578 = vst.msk [vmem:[%s10341_s3 + $0x10] sm:$0xff] %vm575_vm0, %v8856_v40 }
  0xcb   : > { %579 = vst.msk [vmem:[%s10341_s3 + $0x18] sm:$0xff] %vm575_vm0, %v8856_v40 }
  0xcc   : > { %580 = vst.msk [vmem:[%s10341_s3 + $0x20] sm:$0xff] %vm575_vm0, %v8856_v40 }
  0xcd   : > { %581 = vst.msk [vmem:[%s10341_s3 + $0x28] sm:$0xff] %vm575_vm0, %v8856_v40 }
  0xce   : > { %583 = vst.msk [vmem:[%s10341_s3 + $0x30] sm:$0x3] %vm582_vm1, %v8856_v40 }
  0xcf PF: > { %v8437_v41 = vld [vmem:[%s9307_s7 + $0x38] sm:$0xff]  ;;  %v8436_v45 = vld [vmem:[%s9307_s7 + $0x30] sm:$0xff]  ;;  %v8435_v49 = vld [vmem:[%s9307_s7 + $0x28] sm:$0xff]  ;;  %vm6070_vm2 = vcmask 523264   ;;  %vm6077_vm3 = vcmask 517120  }
  0xd0   : > { %v8445_v42 = vld [vmem:[%s9307_s7 + $0x78] sm:$0xff]  ;;  %4719 = vmatpush.bf16.msra.mxu0 %v8437_v41  ;;  %v8444_v46 = vld [vmem:[%s9307_s7 + $0x70] sm:$0xff]  ;;  %v8443_v50 = vld [vmem:[%s9307_s7 + $0x68] sm:$0xff] }
  0xd1   : > { %v8453_v43 = vld [vmem:[%s9307_s7 + $0xb8] sm:$0xff]  ;;  %4747 = vmatpush.bf16.msra.mxu1 %v8445_v42  ;;  %v8452_v47 = vld [vmem:[%s9307_s7 + $0xb0] sm:$0xff]  ;;  %v8451_v51 = vld [vmem:[%s9307_s7 + $0xa8] sm:$0xff] }
  0xd2   : > { %v8461_v44 = vld [vmem:[%s9307_s7 + $0xf8] sm:$0xff]  ;;  %4775 = vmatpush.bf16.msra.mxu2 %v8453_v43  ;;  %v8460_v48 = vld [vmem:[%s9307_s7 + $0xf0] sm:$0xff]  ;;  %v8459_v52 = vld [vmem:[%s9307_s7 + $0xe8] sm:$0xff] }
  0xd3   : > { %4803 = vmatpush.bf16.msra.mxu3 %v8461_v44  ;;  %v8434_v53 = vld [vmem:[%s9307_s7 + $0x20] sm:$0xff]  ;;  %v8433_v57 = vld [vmem:[%s9307_s7 + $0x18] sm:$0xff]  ;;  %v8432_v61 = vld [vmem:[%s9307_s7 + $0x10] sm:$0xff] }
  0xd4   : > { %4720 = vmatpush.bf16.msra.mxu0 %v8436_v45  ;;  %v8442_v54 = vld [vmem:[%s9307_s7 + $0x60] sm:$0xff]  ;;  %v8441_v58 = vld [vmem:[%s9307_s7 + $0x58] sm:$0xff]  ;;  %v8440_v62 = vld [vmem:[%s9307_s7 + $0x50] sm:$0xff] }
  0xd5   : > { %4748 = vmatpush.bf16.msra.mxu1 %v8444_v46  ;;  %v8450_v55 = vld [vmem:[%s9307_s7 + $0xa0] sm:$0xff]  ;;  %v8449_v59 = vld [vmem:[%s9307_s7 + $0x98] sm:$0xff]  ;;  %v8448_v63 = vld [vmem:[%s9307_s7 + $0x90] sm:$0xff] }
  0xd6   : > { %4776 = vmatpush.bf16.msra.mxu2 %v8452_v47  ;;  %v8458_v56 = vld [vmem:[%s9307_s7 + $0xe0] sm:$0xff]  ;;  %v8457_v60 = vld [vmem:[%s9307_s7 + $0xd8] sm:$0xff]  ;;  %v8456_v0 = vld [vmem:[%s9307_s7 + $0xd0] sm:$0xff] }
  0xd7   : > { %4804 = vmatpush.bf16.msra.mxu3 %v8460_v48  ;;  %v8431_v1 = vld [vmem:[%s9307_s7 + $0x8] sm:$0xff]  ;;  %v8430_v5 = vld [vmem:[%s9307_s7] sm:$0xff]  ;;  %v8485_v17 = vld [vmem:[%s9307_s7 + $0x1b8] sm:$0xff] }
  0xd8   : > { %4721 = vmatpush.bf16.msra.mxu0 %v8435_v49  ;;  %v8439_v2 = vld [vmem:[%s9307_s7 + $0x48] sm:$0xff]  ;;  %v8438_v6 = vld [vmem:[%s9307_s7 + $0x40] sm:$0xff]  ;;  %v8493_v18 = vld [vmem:[%s9307_s7 + $0x1f8] sm:$0xff] }
  0xd9   : > { %4749 = vmatpush.bf16.msra.mxu1 %v8443_v50  ;;  %v8447_v3 = vld [vmem:[%s9307_s7 + $0x88] sm:$0xff]  ;;  %v8446_v7 = vld [vmem:[%s9307_s7 + $0x80] sm:$0xff]  ;;  %v8469_v23 = vld [vmem:[%s9307_s7 + $0x138] sm:$0xff] }
  0xda   : > { %4777 = vmatpush.bf16.msra.mxu2 %v8451_v51  ;;  %v8455_v4 = vld [vmem:[%s9307_s7 + $0xc8] sm:$0xff]  ;;  %v8454_v8 = vld [vmem:[%s9307_s7 + $0xc0] sm:$0xff]  ;;  %v8477_v24 = vld [vmem:[%s9307_s7 + $0x178] sm:$0xff] }
  0xdb   : > { %4805 = vmatpush.bf16.msra.mxu3 %v8459_v52  ;;  %v6171_v9 = vld [vmem:[%s9309_s8] sm:$0xf]  ;;  %v8286_v11 = vld [vmem:[%s9309_s8 + $0x4] sm:$0xf]  ;;  %v6179_v13 = vld [vmem:[%s9309_s8 + $0x8] sm:$0xf] }
  0xdc   : > { %4722 = vmatpush.bf16.msra.mxu0 %v8434_v53  ;;  %v8310_v10 = vld [vmem:[%s9309_s8 + $0xbc] sm:$0xf0]  ;;  %v6173_v12 = vld [vmem:[%s9309_s8 + $0xc0] sm:$0xf0]  ;;  %v8311_v14 = vld [vmem:[%s9309_s8 + $0xc4] sm:$0xf0] }
  0xdd   : > { %4750 = vmatpush.bf16.msra.mxu1 %v8442_v54  ;;  %v8287_v15 = vld [vmem:[%s9309_s8 + $0xc] sm:$0xf]  ;;  %v6172_v19 = vor.u32 %v8310_v10, %v6171_v9  ;;  %v6176_v20 = vor.u32 %v8286_v11, %v6173_v12  ;;  %v6180_v21 = vor.u32 %v8311_v14, %v6179_v13  ;;  %v8484_v25 = vld [vmem:[%s9307_s7 + $0x1b0] sm:$0xff]  ;;  %v6363_v33 = vld [vmem:[%s9309_s8 + $0x180] sm:$0xf] }
  0xde   : > { %4778 = vmatpush.bf16.msra.mxu2 %v8450_v55  ;;  %v6181_v16 = vld [vmem:[%s9309_s8 + $0xc8] sm:$0xf0]  ;;  %v8492_v26 = vld [vmem:[%s9307_s7 + $0x1f0] sm:$0xff]  ;;  %v8482_v34 = vld [vmem:[%s9307_s7 + $0x1a0] sm:$0xff] }
  0xdf   : > { %4806 = vmatpush.bf16.msra.mxu3 %v8458_v56  ;;  %v6184_v22 = vor.u32 %v8287_v15, %v6181_v16  ;;  %v8468_v27 = vld [vmem:[%s9307_s7 + $0x130] sm:$0xff]  ;;  %v8483_v29 = vld [vmem:[%s9307_s7 + $0x1a8] sm:$0xff]  ;;  %v8490_v35 = vld [vmem:[%s9307_s7 + $0x1e0] sm:$0xff] }
  0xe0   : > { %4723 = vmatpush.bf16.msra.mxu0 %v8433_v57  ;;  %v8476_v28 = vld [vmem:[%s9307_s7 + $0x170] sm:$0xff]  ;;  %v8491_v30 = vld [vmem:[%s9307_s7 + $0x1e8] sm:$0xff]  ;;  %v8358_v36 = vld [vmem:[%s9309_s8 + $0x23c] sm:$0xf0] }
  0xe1   : > { %4751 = vmatpush.bf16.msra.mxu1 %v8441_v58  ;;  %v8467_v31 = vld [vmem:[%s9307_s7 + $0x128] sm:$0xff]  ;;  %v8334_v37 = vld [vmem:[%s9309_s8 + $0x184] sm:$0xf]  ;;  %v8481_v45 = vld [vmem:[%s9307_s7 + $0x198] sm:$0xff]  ;;  %v6364_v47 = vor.u32 %v8358_v36, %v6363_v33 }
  0xe2   : > { %4779 = vmatpush.bf16.msra.mxu2 %v8449_v59  ;;  %v8475_v32 = vld [vmem:[%s9307_s7 + $0x168] sm:$0xff]  ;;  %v6365_v38 = vld [vmem:[%s9309_s8 + $0x240] sm:$0xf0]  ;;  %v8489_v46 = vld [vmem:[%s9307_s7 + $0x1d8] sm:$0xff] }
  0xe3   : > { %4807 = vmatpush.bf16.msra.mxu3 %v8457_v60  ;;  %v6371_v39 = vld [vmem:[%s9309_s8 + $0x188] sm:$0xf]  ;;  %v8335_v41 = vld [vmem:[%s9309_s8 + $0x18c] sm:$0xf]  ;;  %v8466_v43 = vld [vmem:[%s9307_s7 + $0x120] sm:$0xff]  ;;  %v6368_v48 = vor.u32 %v8334_v37, %v6365_v38 }
  0xe4   : > { %4724 = vmatpush.bf16.msra.mxu0 %v8432_v61  ;;  %v8359_v40 = vld [vmem:[%s9309_s8 + $0x244] sm:$0xf0]  ;;  %v6373_v42 = vld [vmem:[%s9309_s8 + $0x248] sm:$0xf0]  ;;  %v8474_v44 = vld [vmem:[%s9307_s7 + $0x160] sm:$0xff] }
  0xe5   : > { %4752 = vmatpush.bf16.msra.mxu1 %v8440_v62  ;;  %v6372_v49 = vor.u32 %v8359_v40, %v6371_v39  ;;  %v6376_v50 = vor.u32 %v8335_v41, %v6373_v42  ;;  %v8465_v51 = vld [vmem:[%s9307_s7 + $0x118] sm:$0xff]  ;;  %v8480_v53 = vld [vmem:[%s9307_s7 + $0x190] sm:$0xff]  ;;  %v8479_v57 = vld [vmem:[%s9307_s7 + $0x188] sm:$0xff] }
  0xe6   : > { %4780 = vmatpush.bf16.msra.mxu2 %v8448_v63  ;;  %v8473_v52 = vld [vmem:[%s9307_s7 + $0x158] sm:$0xff]  ;;  %v8488_v54 = vld [vmem:[%s9307_s7 + $0x1d0] sm:$0xff]  ;;  %v8487_v58 = vld [vmem:[%s9307_s7 + $0x1c8] sm:$0xff] }
  0xe7   : > { %4808 = vmatpush.bf16.msra.mxu3 %v8456_v0  ;;  %v8464_v55 = vld [vmem:[%s9307_s7 + $0x110] sm:$0xff]  ;;  %v8463_v59 = vld [vmem:[%s9307_s7 + $0x108] sm:$0xff]  ;;  %v6555_v61 = vld [vmem:[%s9309_s8 + $0x300] sm:$0xf] }
  0xe8   : > { %4725 = vmatpush.bf16.msra.mxu0 %v8431_v1  ;;  %v8472_v56 = vld [vmem:[%s9307_s7 + $0x150] sm:$0xff]  ;;  %v8471_v60 = vld [vmem:[%s9307_s7 + $0x148] sm:$0xff]  ;;  %v8478_v62 = vld [vmem:[%s9307_s7 + $0x180] sm:$0xff] }
  0xe9   : > { %4753 = vmatpush.bf16.msra.mxu1 %v8439_v2  ;;  %v8486_v63 = vld [vmem:[%s9307_s7 + $0x1c0] sm:$0xff]  ;;  %v8517_v13 = vld [vmem:[%s9307_s7 + $0x2b8] sm:$0xff]  ;;  %v8499_v33 = vld [vmem:[%s9307_s7 + $0x228] sm:$0xff] }
  0xea   : > { %4781 = vmatpush.bf16.msra.mxu2 %v8447_v3  ;;  %v8406_v0 = vld [vmem:[%s9309_s8 + $0x3bc] sm:$0xf0]  ;;  %v8382_v1 = vld [vmem:[%s9309_s8 + $0x304] sm:$0xf]  ;;  %v6563_v3 = vld [vmem:[%s9309_s8 + $0x308] sm:$0xf] }
  0xeb   : > { %4809 = vmatpush.bf16.msra.mxu3 %v8455_v4  ;;  %v6557_v2 = vld [vmem:[%s9309_s8 + $0x3c0] sm:$0xf0]  ;;  %v8407_v4 = vld [vmem:[%s9309_s8 + $0x3c4] sm:$0xf0]  ;;  %v6556_v9 = vor.u32 %v8406_v0, %v6555_v61  ;;  %v8525_v14 = vld [vmem:[%s9307_s7 + $0x2f8] sm:$0xff] }
  0xec   : > { %4726 = vmatpush.bf16.msra.mxu0 %v8430_v5  ;;  %v8383_v5 = vld [vmem:[%s9309_s8 + $0x30c] sm:$0xf]  ;;  %v6560_v10 = vor.u32 %v8382_v1, %v6557_v2  ;;  %v6564_v11 = vor.u32 %v8407_v4, %v6563_v3  ;;  %v8501_v15 = vld [vmem:[%s9307_s7 + $0x238] sm:$0xff]  ;;  %v8522_v36 = vld [vmem:[%s9307_s7 + $0x2e0] sm:$0xff] }
  0xed   : > { %4754 = vmatpush.bf16.msra.mxu1 %v8438_v6  ;;  %v6565_v6 = vld [vmem:[%s9309_s8 + $0x3c8] sm:$0xf0]  ;;  %v8509_v16 = vld [vmem:[%s9307_s7 + $0x278] sm:$0xff]  ;;  %v8498_v37 = vld [vmem:[%s9307_s7 + $0x220] sm:$0xff] }
  0xee   : > { %4782 = vmatpush.bf16.msra.mxu2 %v8446_v7  ;;  %v8462_v7 = vld [vmem:[%s9307_s7 + $0x100] sm:$0xff]  ;;  %v6568_v12 = vor.u32 %v8383_v5, %v6565_v6  ;;  %v6187_v39 = vld [vmem:[%s9309_s8 + $0x10] sm:$0xf]  ;;  %v8288_v41 = vld [vmem:[%s9309_s8 + $0x14] sm:$0xf] }
  0xef   : > { %4810 = vmatpush.bf16.msra.mxu3 %v8454_v8  ;;  %4727 = vmatmul.bf16.vlgmr.msra.gmra.mxu0 %v6172_v19  ;;  %v8470_v8 = vld [vmem:[%s9307_s7 + $0x140] sm:$0xff]  ;;  %v8500_v19 = vld [vmem:[%s9307_s7 + $0x230] sm:$0xff]  ;;  %v8361_v0 = vld [vmem:[%s9309_s8 + $0x254] sm:$0xf0] }
  0xf0   : > { %4755 = vmatmul.bf16.vlgmr.msra.gmra.mxu1 %v6176_v20  ;;  %4831 = vmatpush.bf16.msrb.mxu0 %v8469_v23  ;;  %v8508_v20 = vld [vmem:[%s9307_s7 + $0x270] sm:$0xff]  ;;  %v8506_v38 = vld [vmem:[%s9307_s7 + $0x260] sm:$0xff]  ;;  %v8337_v1 = vld [vmem:[%s9309_s8 + $0x19c] sm:$0xf] }
  0xf1   : > { %4783 = vmatmul.bf16.vlgmr.msra.gmra.mxu2 %v6180_v21  ;;  %4859 = vmatpush.bf16.msrb.mxu1 %v8477_v24  ;;  %v735_v21 = vld [vmem:[%s9309_s8 + $0x480] sm:$0x11]  ;;  %v8312_v40 = vld [vmem:[%s9309_s8 + $0xcc] sm:$0xf0]  ;;  %v6189_v42 = vld [vmem:[%s9309_s8 + $0xd0] sm:$0xf0] }
  0xf2   : > { %4887 = vmatpush.bf16.msrb.mxu2 %v8485_v17  ;;  %4811 = vmatmul.bf16.vlgmr.msra.gmra.mxu3 %v6184_v22  ;;  %v8516_v17 = vld [vmem:[%s9307_s7 + $0x2b0] sm:$0xff]  ;;  %v736_v22 = vld [vmem:[%s9309_s8 + $0x488] sm:$0x11]  ;;  %v1983_v23 = vunpack.c.l.b16 %v735_v21  ;;  %v1984_v24 = vunpack.c.h.b16 %v735_v21  ;;  %v6389_v2 = vld [vmem:[%s9309_s8 + $0x258] sm:$0xf0] }
  0xf3   : > { %4915 = vmatpush.bf16.msrb.mxu3 %v8493_v18  ;;  %v8524_v18 = vld [vmem:[%s9307_s7 + $0x2f0] sm:$0xff]  ;;  %v6392_v6 = vor.u32 %v8337_v1, %v6389_v2  ;;  %v6581_v21 = vld [vmem:[%s9309_s8 + $0x3d8] sm:$0xf0]  ;;  %v8530_v2 = vld [vmem:[%s9307_s7 + $0x320] sm:$0xff] }
  0xf4   : > { %4832 = vmatpush.bf16.msrb.mxu0 %v8468_v27  ;;  %v2175_v27 = vpack.c.b16 %v1983_v23, %v1983_v23  ;;  %v8336_v61 = vld [vmem:[%s9309_s8 + $0x194] sm:$0xf] }
  0xf5   : > { %4860 = vmatpush.bf16.msrb.mxu1 %v8476_v28  ;;  %v2176_v28 = vpack.c.b16 %v1984_v24, %v1984_v24  ;;  %v8502_v24 = vld [vmem:[%s9307_s7 + $0x240] sm:$0xff] }
  0xf6   : > { %4888 = vmatpush.bf16.msrb.mxu2 %v8484_v25  ;;  %v1985_v25 = vunpack.c.l.b16 %v736_v22 }
  0xf7   : > { %4916 = vmatpush.bf16.msrb.mxu3 %v8492_v26  ;;  %v1986_v26 = vunpack.c.h.b16 %v736_v22 }
  0xf8   : > { %4833 = vmatpush.bf16.msrb.mxu0 %v8467_v31  ;;  %v8515_v31 = vld [vmem:[%s9307_s7 + $0x2a8] sm:$0xff] }
  0xf9   : > { %4861 = vmatpush.bf16.msrb.mxu1 %v8475_v32  ;;  %v8523_v32 = vld [vmem:[%s9307_s7 + $0x2e8] sm:$0xff] }
  0xfa   : > { %4889 = vmatpush.bf16.msrb.mxu2 %v8483_v29  ;;  %v2177_v29 = vpack.c.b16 %v1985_v25, %v1985_v25 }
  0xfb   : > { %4917 = vmatpush.bf16.msrb.mxu3 %v8491_v30  ;;  %v2178_v30 = vpack.c.b16 %v1986_v26, %v1986_v26 }
  0xfc   : > { %4834 = vmatpush.bf16.msrb.mxu0 %v8466_v43  ;;  %v6195_v43 = vld [vmem:[%s9309_s8 + $0x18] sm:$0xf] }
  0xfd   : > { %4862 = vmatpush.bf16.msrb.mxu1 %v8474_v44  ;;  %v8313_v44 = vld [vmem:[%s9309_s8 + $0xd4] sm:$0xf0] }
  0xfe   : > { %4890 = vmatpush.bf16.msrb.mxu2 %v8482_v34  ;;  %v8507_v34 = vld [vmem:[%s9307_s7 + $0x268] sm:$0xff] }
  0xff   : > { %4918 = vmatpush.bf16.msrb.mxu3 %v8490_v35  ;;  %4732 = vmatmul.bf16.gmra.mxu0 %v6364_v47  ;;  %v8514_v35 = vld [vmem:[%s9307_s7 + $0x2a0] sm:$0xff]  ;;  %v6188_v47 = vor.u32 %v8312_v40, %v6187_v39 }
 0x100   : > { %4760 = vmatmul.bf16.gmra.mxu1 %v6368_v48  ;;  %4835 = vmatpush.bf16.msrb.mxu0 %v8465_v51  ;;  %v6192_v48 = vor.u32 %v8288_v41, %v6189_v42  ;;  %v8513_v51 = vld [vmem:[%s9307_s7 + $0x298] sm:$0xff] }
 0x101   : > { %4788 = vmatmul.bf16.gmra.mxu2 %v6372_v49  ;;  %4863 = vmatpush.bf16.msrb.mxu1 %v8473_v52  ;;  %v6196_v49 = vor.u32 %v8313_v44, %v6195_v43  ;;  %v8521_v52 = vld [vmem:[%s9307_s7 + $0x2d8] sm:$0xff]  ;;  %v8532_v43 = vld [vmem:[%s9307_s7 + $0x330] sm:$0xff] }
 0x102   : > { %4891 = vmatpush.bf16.msrb.mxu2 %v8481_v45  ;;  %4816 = vmatmul.bf16.gmra.mxu3 %v6376_v50  ;;  %v8289_v45 = vld [vmem:[%s9309_s8 + $0x1c] sm:$0xf]  ;;  %v8540_v44 = vld [vmem:[%s9307_s7 + $0x370] sm:$0xff] }
 0x103   : > { %4919 = vmatpush.bf16.msrb.mxu3 %v8489_v46  ;;  %v6197_v46 = vld [vmem:[%s9309_s8 + $0xd8] sm:$0xf0] }
 0x104   : > { %4836 = vmatpush.bf16.msrb.mxu0 %v8464_v55  ;;  %v6200_v50 = vor.u32 %v8289_v45, %v6197_v46  ;;  %v8512_v55 = vld [vmem:[%s9307_s7 + $0x290] sm:$0xff]  ;;  %v8547_v45 = vld [vmem:[%s9307_s7 + $0x3a8] sm:$0xff] }
 0x105   : > { %4864 = vmatpush.bf16.msrb.mxu1 %v8472_v56  ;;  %v8520_v56 = vld [vmem:[%s9307_s7 + $0x2d0] sm:$0xff]  ;;  %v8555_v46 = vld [vmem:[%s9307_s7 + $0x3e8] sm:$0xff] }
 0x106   : > { %4892 = vmatpush.bf16.msrb.mxu2 %v8480_v53  ;;  %v8497_v53 = vld [vmem:[%s9307_s7 + $0x218] sm:$0xff] }
 0x107   : > { %4920 = vmatpush.bf16.msrb.mxu3 %v8488_v54  ;;  %v8505_v54 = vld [vmem:[%s9307_s7 + $0x258] sm:$0xff] }
 0x108   : > { %4837 = vmatpush.bf16.msrb.mxu0 %v8463_v59  ;;  %v6379_v59 = vld [vmem:[%s9309_s8 + $0x190] sm:$0xf] }
 0x109   : > { %4865 = vmatpush.bf16.msrb.mxu1 %v8471_v60  ;;  %v8360_v60 = vld [vmem:[%s9309_s8 + $0x24c] sm:$0xf0] }
 0x10a   : > { %4893 = vmatpush.bf16.msrb.mxu2 %v8479_v57  ;;  %v8496_v57 = vld [vmem:[%s9307_s7 + $0x210] sm:$0xff]  ;;  %v6380_v3 = vor.u32 %v8360_v60, %v6379_v59 }
 0x10b   : > { %4921 = vmatpush.bf16.msrb.mxu3 %v8487_v58  ;;  %v8504_v58 = vld [vmem:[%s9307_s7 + $0x250] sm:$0xff] }
 0x10c   : > { %4838 = vmatpush.bf16.msrb.mxu0 %v8462_v7  ;;  %v8511_v7 = vld [vmem:[%s9307_s7 + $0x288] sm:$0xff] }
 0x10d   : > { %4866 = vmatpush.bf16.msrb.mxu1 %v8470_v8  ;;  %v8519_v8 = vld [vmem:[%s9307_s7 + $0x2c8] sm:$0xff] }
 0x10e   : > { %4894 = vmatpush.bf16.msrb.mxu2 %v8478_v62  ;;  %v6381_v62 = vld [vmem:[%s9309_s8 + $0x250] sm:$0xf0] }
 0x10f   : > { %4922 = vmatpush.bf16.msrb.mxu3 %v8486_v63  ;;  %4737 = vmatmul.bf16.gmra.mxu0 %v6556_v9  ;;  %v6387_v63 = vld [vmem:[%s9309_s8 + $0x198] sm:$0xf]  ;;  %v6384_v4 = vor.u32 %v8336_v61, %v6381_v62  ;;  %v8495_v9 = vld [vmem:[%s9307_s7 + $0x208] sm:$0xff] }
 0x110   : > { %4765 = vmatmul.bf16.gmra.mxu1 %v6560_v10  ;;  %4943 = vmatpush.bf16.msra.mxu0 %v8501_v15  ;;  %v6388_v5 = vor.u32 %v8361_v0, %v6387_v63  ;;  %v8503_v10 = vld [vmem:[%s9307_s7 + $0x248] sm:$0xff]  ;;  %v8408_v15 = vld [vmem:[%s9309_s8 + $0x3cc] sm:$0xf0] }
 0x111   : > { %4793 = vmatmul.bf16.gmra.mxu2 %v6564_v11  ;;  %4971 = vmatpush.bf16.msra.mxu1 %v8509_v16  ;;  %v8510_v11 = vld [vmem:[%s9307_s7 + $0x280] sm:$0xff]  ;;  %v8384_v16 = vld [vmem:[%s9309_s8 + $0x314] sm:$0xf] }
 0x112   : > { %4821 = vmatmul.bf16.gmra.mxu3 %v6568_v12  ;;  %4999 = vmatpush.bf16.msra.mxu2 %v8517_v13  ;;  %v8518_v12 = vld [vmem:[%s9307_s7 + $0x2c0] sm:$0xff] }
 0x113   : > { %5027 = vmatpush.bf16.msra.mxu3 %v8525_v14  ;;  %v8494_v13 = vld [vmem:[%s9307_s7 + $0x200] sm:$0xff]  ;;  %v6571_v14 = vld [vmem:[%s9309_s8 + $0x310] sm:$0xf] }
 0x114   : > { %4944 = vmatpush.bf16.msra.mxu0 %v8500_v19  ;;  %v8409_v19 = vld [vmem:[%s9309_s8 + $0x3d4] sm:$0xf0]  ;;  %v6572_v22 = vor.u32 %v8408_v15, %v6571_v14  ;;  %v8544_v15 = vld [vmem:[%s9307_s7 + $0x390] sm:$0xff] }
 0x115   : > { %4972 = vmatpush.bf16.msra.mxu1 %v8508_v20  ;;  %v8385_v20 = vld [vmem:[%s9309_s8 + $0x31c] sm:$0xf] }
 0x116   : > { %5000 = vmatpush.bf16.msra.mxu2 %v8516_v17  ;;  %v6573_v17 = vld [vmem:[%s9309_s8 + $0x3d0] sm:$0xf0]  ;;  %v6584_v26 = vor.u32 %v8385_v20, %v6581_v21  ;;  %v8537_v14 = vld [vmem:[%s9307_s7 + $0x358] sm:$0xff]  ;;  %v6397_v20 = vld [vmem:[%s9309_s8 + $0x260] sm:$0xf0] }
 0x117   : > { %5028 = vmatpush.bf16.msra.mxu3 %v8524_v18  ;;  %v6579_v18 = vld [vmem:[%s9309_s8 + $0x318] sm:$0xf]  ;;  %v6576_v23 = vor.u32 %v8384_v16, %v6573_v17  ;;  %v6395_v16 = vld [vmem:[%s9309_s8 + $0x1a0] sm:$0xf]  ;;  %v6403_v21 = vld [vmem:[%s9309_s8 + $0x1a8] sm:$0xf] }
 0x118   : > { %4945 = vmatpush.bf16.msra.mxu0 %v8499_v33  ;;  %v6580_v25 = vor.u32 %v8409_v19, %v6579_v18  ;;  %v8548_v33 = vld [vmem:[%s9307_s7 + $0x3b0] sm:$0xff]  ;;  %v8362_v17 = vld [vmem:[%s9309_s8 + $0x25c] sm:$0xf0]  ;;  %v8338_v19 = vld [vmem:[%s9309_s8 + $0x1a4] sm:$0xf] }
 0x119   : > { %4973 = vmatpush.bf16.msra.mxu1 %v8507_v34  ;;  %v8552_v18 = vld [vmem:[%s9307_s7 + $0x3d0] sm:$0xff] }
 0x11a   : > { %5001 = vmatpush.bf16.msra.mxu2 %v8515_v31  ;;  %v8533_v31 = vld [vmem:[%s9307_s7 + $0x338] sm:$0xff] }
 0x11b   : > { %5029 = vmatpush.bf16.msra.mxu3 %v8523_v32  ;;  %v8541_v32 = vld [vmem:[%s9307_s7 + $0x378] sm:$0xff] }
 0x11c   : > { %4946 = vmatpush.bf16.msra.mxu0 %v8498_v37 }
 0x11d   : > { %4974 = vmatpush.bf16.msra.mxu1 %v8506_v38 }
 0x11e   : > { %5002 = vmatpush.bf16.msra.mxu2 %v8514_v35 }
 0x11f   : > { %4742 = vmatmul.bf16.gmra.mxu0 %v2175_v27  ;;  %5030 = vmatpush.bf16.msra.mxu3 %v8522_v36  ;;  %v8549_v27 = vld [vmem:[%s9307_s7 + $0x3b8] sm:$0xff]  ;;  %v8556_v36 = vld [vmem:[%s9307_s7 + $0x3f0] sm:$0xff] }
 0x120   : > { %4770 = vmatmul.bf16.gmra.mxu1 %v2176_v28  ;;  %4947 = vmatpush.bf16.msra.mxu0 %v8497_v53  ;;  %v8557_v28 = vld [vmem:[%s9307_s7 + $0x3f8] sm:$0xff]  ;;  %v8290_v53 = vld [vmem:[%s9309_s8 + $0x24] sm:$0xf] }
 0x121   : > { %4798 = vmatmul.bf16.gmra.mxu2 %v2177_v29  ;;  %4975 = vmatpush.bf16.msra.mxu1 %v8505_v54  ;;  %v737_v29 = vld [vmem:[%s9309_s8 + $0x490] sm:$0x11]  ;;  %v6205_v54 = vld [vmem:[%s9309_s8 + $0xe0] sm:$0xf0] }
 0x122   : > { %4826 = vmatmul.bf16.gmra.mxu3 %v2178_v30  ;;  %5003 = vmatpush.bf16.msra.mxu2 %v8513_v51  ;;  %v738_v30 = vld [vmem:[%s9309_s8 + $0x498] sm:$0x11]  ;;  %v1987_v34 = vunpack.c.l.b16 %v737_v29  ;;  %v1988_v35 = vunpack.c.h.b16 %v737_v29  ;;  %v8314_v51 = vld [vmem:[%s9309_s8 + $0xdc] sm:$0xf0]  ;;  %v6208_v60 = vor.u32 %v8290_v53, %v6205_v54  ;;  %v8386_v53 = vld [vmem:[%s9309_s8 + $0x324] sm:$0xf] }
 0x123   : > { %5031 = vmatpush.bf16.msra.mxu3 %v8521_v52  ;;  %v1989_v37 = vunpack.c.l.b16 %v738_v30  ;;  %v1990_v38 = vunpack.c.h.b16 %v738_v30  ;;  %v8554_v52 = vld [vmem:[%s9307_s7 + $0x3e0] sm:$0xff] }
 0x124   : > { %4948 = vmatpush.bf16.msra.mxu0 %v8496_v57  ;;  %v2179_v39 = vpack.c.b16 %v1987_v34, %v1987_v34  ;;  %v2180_v40 = vpack.c.b16 %v1988_v35, %v1988_v35  ;;  %v8291_v57 = vld [vmem:[%s9309_s8 + $0x2c] sm:$0xf]  ;;  %v6589_v54 = vld [vmem:[%s9309_s8 + $0x3e0] sm:$0xf0] }
 0x125   : > { %4976 = vmatpush.bf16.msra.mxu1 %v8504_v58  ;;  %v2181_v41 = vpack.c.b16 %v1989_v37, %v1989_v37  ;;  %v2182_v42 = vpack.c.b16 %v1990_v38, %v1990_v38  ;;  %v6213_v58 = vld [vmem:[%s9309_s8 + $0xe8] sm:$0xf0]  ;;  %v8536_v37 = vld [vmem:[%s9307_s7 + $0x350] sm:$0xff] }
 0x126   : > { %5004 = vmatpush.bf16.msra.mxu2 %v8512_v55  ;;  %v6211_v55 = vld [vmem:[%s9309_s8 + $0x28] sm:$0xf]  ;;  %v6216_v0 = vor.u32 %v8291_v57, %v6213_v58  ;;  %v8387_v57 = vld [vmem:[%s9309_s8 + $0x32c] sm:$0xf] }
 0x127   : > { %5032 = vmatpush.bf16.msra.mxu3 %v8520_v56  ;;  %v8315_v56 = vld [vmem:[%s9309_s8 + $0xe4] sm:$0xf0]  ;;  %v6597_v58 = vld [vmem:[%s9309_s8 + $0x3e8] sm:$0xf0] }
 0x128   : > { %4949 = vmatpush.bf16.msra.mxu0 %v8495_v9  ;;  %v6212_v63 = vor.u32 %v8315_v56, %v6211_v55  ;;  %v8543_v38 = vld [vmem:[%s9307_s7 + $0x388] sm:$0xff] }
 0x129   : > { %4977 = vmatpush.bf16.msra.mxu1 %v8503_v10  ;;  %v6595_v55 = vld [vmem:[%s9309_s8 + $0x328] sm:$0xf] }
 0x12a   : > { %5005 = vmatpush.bf16.msra.mxu2 %v8511_v7  ;;  %v8411_v56 = vld [vmem:[%s9309_s8 + $0x3e4] sm:$0xf0] }
 0x12b   : > { %5033 = vmatpush.bf16.msra.mxu3 %v8519_v8 }
 0x12c   : > { %4950 = vmatpush.bf16.msra.mxu0 %v8494_v13  ;;  %v8529_v13 = vld [vmem:[%s9307_s7 + $0x318] sm:$0xff] }
 0x12d   : > { %4978 = vmatpush.bf16.msra.mxu1 %v8502_v24  ;;  %v6405_v24 = vld [vmem:[%s9309_s8 + $0x268] sm:$0xf0] }
 0x12e   : > { %5006 = vmatpush.bf16.msra.mxu2 %v8510_v11 }
 0x12f   : > { %4839 = vmatmul.bf16.vlgmr.msrb.gmra.mxu0 %v6188_v47  ;;  %5034 = vmatpush.bf16.msra.mxu3 %v8518_v12  ;;  %v8531_v47 = vld [vmem:[%s9307_s7 + $0x328] sm:$0xff] }
 0x130   : > { %4867 = vmatmul.bf16.vlgmr.msrb.gmra.mxu1 %v6192_v48  ;;  %5055 = vmatpush.bf16.msrb.mxu0 %v8533_v31  ;;  %v8539_v48 = vld [vmem:[%s9307_s7 + $0x368] sm:$0xff] }
 0x131   : > { %4895 = vmatmul.bf16.vlgmr.msrb.gmra.mxu2 %v6196_v49  ;;  %5083 = vmatpush.bf16.msrb.mxu1 %v8541_v32  ;;  %v8546_v49 = vld [vmem:[%s9307_s7 + $0x3a0] sm:$0xff] }
 0x132   : > { %4923 = vmatmul.bf16.vlgmr.msrb.gmra.mxu3 %v6200_v50  ;;  %5111 = vmatpush.bf16.msrb.mxu2 %v8549_v27  ;;  %v6203_v50 = vld [vmem:[%s9309_s8 + $0x20] sm:$0xf]  ;;  %v6396_v27 = vor.u32 %v8362_v17, %v6395_v16 }
 0x133   : > { %5139 = vmatpush.bf16.msrb.mxu3 %v8557_v28  ;;  %v6204_v59 = vor.u32 %v8314_v51, %v6203_v50  ;;  %v6400_v28 = vor.u32 %v8338_v19, %v6397_v20  ;;  %v6587_v50 = vld [vmem:[%s9309_s8 + $0x320] sm:$0xf]  ;;  %v8565_v20 = vld [vmem:[%s9307_s7 + $0x438] sm:$0xff] }
 0x134   : > { %5056 = vmatpush.bf16.msrb.mxu0 %v8532_v43  ;;  %v8410_v51 = vld [vmem:[%s9309_s8 + $0x3dc] sm:$0xf0] }
 0x135   : > { %5084 = vmatpush.bf16.msrb.mxu1 %v8540_v44  ;;  %v739_v16 = vld [vmem:[%s9309_s8 + $0x4a0] sm:$0x11] }
 0x136   : > { %5112 = vmatpush.bf16.msrb.mxu2 %v8548_v33 }
 0x137   : > { %5140 = vmatpush.bf16.msrb.mxu3 %v8556_v36  ;;  %v8528_v36 = vld [vmem:[%s9307_s7 + $0x310] sm:$0xff] }
 0x138   : > { %5057 = vmatpush.bf16.msrb.mxu0 %v8531_v47  ;;  %v8527_v47 = vld [vmem:[%s9307_s7 + $0x308] sm:$0xff] }
 0x139   : > { %5085 = vmatpush.bf16.msrb.mxu1 %v8539_v48  ;;  %v8535_v48 = vld [vmem:[%s9307_s7 + $0x348] sm:$0xff] }
 0x13a   : > { %5113 = vmatpush.bf16.msrb.mxu2 %v8547_v45 }
 0x13b   : > { %5141 = vmatpush.bf16.msrb.mxu3 %v8555_v46 }
 0x13c   : > { %5058 = vmatpush.bf16.msrb.mxu0 %v8530_v2 }
 0x13e   : > { %5114 = vmatpush.bf16.msrb.mxu2 %v8546_v49  ;;  %v8542_v49 = vld [vmem:[%s9307_s7 + $0x380] sm:$0xff] }
 0x13f   : > { %4844 = vmatmul.bf16.gmra.mxu0 %v6380_v3  ;;  %5142 = vmatpush.bf16.msrb.mxu3 %v8554_v52  ;;  %v8538_v3 = vld [vmem:[%s9307_s7 + $0x360] sm:$0xff] }
 0x140   : > { %4872 = vmatmul.bf16.gmra.mxu1 %v6384_v4  ;;  %v8545_v4 = vld [vmem:[%s9307_s7 + $0x398] sm:$0xff]  ;;  %5059 = vmatpush.bf16.msrb.mxu0 %v8529_v13  ;;  %v8550_v52 = vld [vmem:[%s9307_s7 + $0x3c0] sm:$0xff] }
 0x141   : > { %4900 = vmatmul.bf16.gmra.mxu2 %v6388_v5  ;;  %v8553_v5 = vld [vmem:[%s9307_s7 + $0x3d8] sm:$0xff]  ;;  %5086 = vmatpush.bf16.msrb.mxu1 %v8538_v3 }
 0x142   : > { %4928 = vmatmul.bf16.gmra.mxu3 %v6392_v6  ;;  %5115 = vmatpush.bf16.msrb.mxu2 %v8545_v4  ;;  %v6596_v4 = vor.u32 %v8411_v56, %v6595_v55  ;;  %v8578_v55 = vld [vmem:[%s9307_s7 + $0x4a0] sm:$0xff] }
 0x143   : > { %5143 = vmatpush.bf16.msrb.mxu3 %v8553_v5  ;;  %v6600_v5 = vor.u32 %v8387_v57, %v6597_v58  ;;  %v8586_v56 = vld [vmem:[%s9307_s7 + $0x4e0] sm:$0xff]  ;;  %v8292_v57 = vld [vmem:[%s9309_s8 + $0x34] sm:$0xf] }
 0x144   : > { %5060 = vmatpush.bf16.msrb.mxu0 %v8528_v36  ;;  %v6221_v58 = vld [vmem:[%s9309_s8 + $0xf0] sm:$0xf0] }
 0x145   : > { %5087 = vmatpush.bf16.msrb.mxu1 %v8537_v14 }
 0x146   : > { %5116 = vmatpush.bf16.msrb.mxu2 %v8544_v15 }
 0x147   : > { %5144 = vmatpush.bf16.msrb.mxu3 %v8552_v18  ;;  %v740_v18 = vld [vmem:[%s9309_s8 + $0x4a8] sm:$0x11] }
 0x148   : > { %5061 = vmatpush.bf16.msrb.mxu0 %v8527_v47 }
 0x149   : > { %5088 = vmatpush.bf16.msrb.mxu1 %v8536_v37 }
 0x14a   : > { %5117 = vmatpush.bf16.msrb.mxu2 %v8543_v38 }
 0x14d   : > { %5089 = vmatpush.bf16.msrb.mxu1 %v8535_v48 }
 0x14e   : > { %5118 = vmatpush.bf16.msrb.mxu2 %v8542_v49 }
 0x14f   : > { %4849 = vmatmul.bf16.gmra.mxu0 %v6572_v22  ;;  %v8363_v22 = vld [vmem:[%s9309_s8 + $0x264] sm:$0xf0] }
 0x150   : > { %4877 = vmatmul.bf16.gmra.mxu1 %v6576_v23  ;;  %v8339_v23 = vld [vmem:[%s9309_s8 + $0x1ac] sm:$0xf]  ;;  %v6404_v32 = vor.u32 %v8363_v22, %v6403_v21  ;;  %v1991_v21 = vunpack.c.l.b16 %v739_v16  ;;  %v1992_v22 = vunpack.c.h.b16 %v739_v16 }
 0x151   : > { %4905 = vmatmul.bf16.gmra.mxu2 %v6580_v25  ;;  %v6408_v33 = vor.u32 %v8339_v23, %v6405_v24  ;;  %v8573_v23 = vld [vmem:[%s9307_s7 + $0x478] sm:$0xff]  ;;  %v8580_v24 = vld [vmem:[%s9307_s7 + $0x4b0] sm:$0xff] }
 0x152   : > { %4933 = vmatmul.bf16.gmra.mxu3 %v6584_v26 }
 0x15f   : > { %4854 = vmatmul.bf16.gmra.mxu0 %v2179_v39  ;;  %v8551_v39 = vld [vmem:[%s9307_s7 + $0x3c8] sm:$0xff] }
 0x160   : > { %4882 = vmatmul.bf16.gmra.mxu1 %v2180_v40  ;;  %5145 = vmatpush.bf16.msrb.mxu3 %v8551_v39 }
 0x161   : > { %4910 = vmatmul.bf16.gmra.mxu2 %v2181_v41 }
 0x162   : > { %4938 = vmatmul.bf16.gmra.mxu3 %v2182_v42 }
 0x164   : > { %5146 = vmatpush.bf16.msrb.mxu3 %v8550_v52  ;;  %v8316_v52 = vld [vmem:[%s9309_s8 + $0xec] sm:$0xf0] }
 0x16c   : > { %v4728_v61 = vpop.f32.mrf.mxu0 }
 0x16d   : > { %v4756_v62 = vpop.f32.mrf.mxu1 }
 0x16e   : > { %v4757_v1 = vadd.f32 %v4756_v62, %v4728_v61  ;;  %v6588_v61 = vor.u32 %v8410_v51, %v6587_v50  ;;  %v6592_v62 = vor.u32 %v8386_v53, %v6589_v54  ;;  %v6219_v51 = vld [vmem:[%s9309_s8 + $0x30] sm:$0xf]  ;;  %v8563_v53 = vld [vmem:[%s9307_s7 + $0x428] sm:$0xff] }
 0x16f   : > { %4951 = vmatmul.bf16.vlgmr.msra.gmra.mxu0 %v6204_v59  ;;  %v8571_v54 = vld [vmem:[%s9307_s7 + $0x468] sm:$0xff] }
 0x170   : > { %4979 = vmatmul.bf16.vlgmr.msra.gmra.mxu1 %v6208_v60 }
 0x171   : > { %5007 = vmatmul.bf16.vlgmr.msra.gmra.mxu2 %v6212_v63  ;;  %v8526_v63 = vld [vmem:[%s9307_s7 + $0x300] sm:$0xff] }
 0x172   : > { %5035 = vmatmul.bf16.vlgmr.msra.gmra.mxu3 %v6216_v0  ;;  %v8534_v0 = vld [vmem:[%s9307_s7 + $0x340] sm:$0xff]  ;;  %5062 = vmatpush.bf16.msrb.mxu0 %v8526_v63 }
 0x173   : > { %5090 = vmatpush.bf16.msrb.mxu1 %v8534_v0 }
 0x174   : > { %v4784_v6 = vpop.f32.mrf.mxu2  ;;  %v4730_v9 = vpop.f32.mrf.mxu0 }
 0x175   : > { %v4812_v7 = vpop.f32.mrf.mxu3  ;;  %v4785_v8 = vadd.f32 %v4784_v6, %v4757_v1  ;;  %v4758_v10 = vpop.f32.mrf.mxu1 }
 0x176   : > { %v4759_v11 = vadd.f32 %v4758_v10, %v4730_v9  ;;  %v8589_v9 = vld [vmem:[%s9307_s7 + $0x4f8] sm:$0xff]  ;;  %5167 = vmatpush.bf16.msra.mxu0 %v8565_v20 }
 0x177   : > { %v9510_v12 = vadd.f32 %v4812_v7, %v4785_v8  ;;  %v8581_v8 = vld [vmem:[%s9307_s7 + $0x4b8] sm:$0xff]  ;;  %5251 = vmatpush.bf16.msra.mxu3 %v8589_v9  ;;  %5195 = vmatpush.bf16.msra.mxu1 %v8573_v23  ;;  %v8562_v9 = vld [vmem:[%s9307_s7 + $0x420] sm:$0xff]  ;;  %v8364_v23 = vld [vmem:[%s9309_s8 + $0x26c] sm:$0xf0] }
 0x178   : > { %5223 = vmatpush.bf16.msra.mxu2 %v8581_v8 }
 0x17c   : > { %v4786_v25 = vpop.f32.mrf.mxu2  ;;  %v4733_v30 = vpop.f32.mrf.mxu0  ;;  %5224 = vmatpush.bf16.msra.mxu2 %v8580_v24  ;;  %v8561_v24 = vld [vmem:[%s9307_s7 + $0x418] sm:$0xff] }
 0x17d   : > { %v4814_v26 = vpop.f32.mrf.mxu3  ;;  %v4787_v29 = vadd.f32 %v4786_v25, %v4759_v11  ;;  %v4761_v31 = vpop.f32.mrf.mxu1  ;;  %v8588_v25 = vld [vmem:[%s9307_s7 + $0x4f0] sm:$0xff] }
 0x17e   : > { %v4762_v34 = vadd.f32 %v4761_v31, %v4733_v30  ;;  %5252 = vmatpush.bf16.msra.mxu3 %v8588_v25  ;;  %v2183_v30 = vpack.c.b16 %v1991_v21, %v1991_v21  ;;  %v2184_v31 = vpack.c.b16 %v1992_v22, %v1992_v22  ;;  %v6411_v22 = vld [vmem:[%s9309_s8 + $0x1b0] sm:$0xf] }
 0x17f   : > { %v9524_v35 = vadd.f32 %v4814_v26, %v4787_v29  ;;  %4956 = vmatmul.bf16.gmra.mxu0 %v6396_v27  ;;  %v1993_v26 = vunpack.c.l.b16 %v740_v18  ;;  %v1994_v27 = vunpack.c.h.b16 %v740_v18 }
 0x180   : > { %4984 = vmatmul.bf16.gmra.mxu1 %v6400_v28 }
 0x181   : > { %5012 = vmatmul.bf16.gmra.mxu2 %v6404_v32  ;;  %v2185_v36 = vpack.c.b16 %v1993_v26, %v1993_v26  ;;  %v2186_v37 = vpack.c.b16 %v1994_v27, %v1994_v27  ;;  %v8569_v26 = vld [vmem:[%s9307_s7 + $0x458] sm:$0xff]  ;;  %v8576_v27 = vld [vmem:[%s9307_s7 + $0x490] sm:$0xff] }
 0x182   : > { %5040 = vmatmul.bf16.gmra.mxu3 %v6408_v33 }
 0x184   : > { %v4789_v40 = vpop.f32.mrf.mxu2  ;;  %v4735_v43 = vpop.f32.mrf.mxu0 }
 0x185   : > { %v4817_v41 = vpop.f32.mrf.mxu3  ;;  %v4790_v42 = vadd.f32 %v4789_v40, %v4762_v34  ;;  %v4763_v44 = vpop.f32.mrf.mxu1  ;;  %v8564_v40 = vld [vmem:[%s9307_s7 + $0x430] sm:$0xff] }
 0x186   : > { %v4764_v45 = vadd.f32 %v4763_v44, %v4735_v43  ;;  %v8587_v43 = vld [vmem:[%s9307_s7 + $0x4e8] sm:$0xff]  ;;  %5168 = vmatpush.bf16.msra.mxu0 %v8564_v40 }
 0x187   : > { %v9530_v46 = vadd.f32 %v4817_v41, %v4790_v42  ;;  %v8572_v41 = vld [vmem:[%s9307_s7 + $0x470] sm:$0xff]  ;;  %v8579_v42 = vld [vmem:[%s9307_s7 + $0x4a8] sm:$0xff]  ;;  %5253 = vmatpush.bf16.msra.mxu3 %v8587_v43 }
 0x188   : > { %5196 = vmatpush.bf16.msra.mxu1 %v8572_v41  ;;  %5225 = vmatpush.bf16.msra.mxu2 %v8579_v42 }
 0x18a   : > { %5169 = vmatpush.bf16.msra.mxu0 %v8563_v53  ;;  %v8583_v53 = vld [vmem:[%s9307_s7 + $0x4c8] sm:$0xff] }
 0x18b   : > { %5254 = vmatpush.bf16.msra.mxu3 %v8586_v56 }
 0x18c   : > { %v4791_v59 = vpop.f32.mrf.mxu2  ;;  %v4738_v2 = vpop.f32.mrf.mxu0  ;;  %5197 = vmatpush.bf16.msra.mxu1 %v8571_v54  ;;  %5226 = vmatpush.bf16.msra.mxu2 %v8578_v55 }
 0x18d   : > { %v4819_v60 = vpop.f32.mrf.mxu3  ;;  %v4792_v1 = vadd.f32 %v4791_v59, %v4764_v45  ;;  %v4766_v3 = vpop.f32.mrf.mxu1  ;;  %v6227_v59 = vld [vmem:[%s9309_s8 + $0x38] sm:$0xf] }
 0x18e   : > { %v4767_v6 = vadd.f32 %v4766_v3, %v4738_v2  ;;  %v6224_v2 = vor.u32 %v8292_v57, %v6221_v58  ;;  %5170 = vmatpush.bf16.msra.mxu0 %v8562_v9 }
 0x18f   : > { %v9546_v7 = vadd.f32 %v4819_v60, %v4792_v1  ;;  %4961 = vmatmul.bf16.gmra.mxu0 %v6588_v61  ;;  %v8317_v60 = vld [vmem:[%s9309_s8 + $0xf4] sm:$0xf0]  ;;  %v8293_v61 = vld [vmem:[%s9309_s8 + $0x3c] sm:$0xf]  ;;  %v6220_v1 = vor.u32 %v8316_v52, %v6219_v51  ;;  %v8568_v51 = vld [vmem:[%s9307_s7 + $0x450] sm:$0xff] }
 0x190   : > { %4989 = vmatmul.bf16.gmra.mxu1 %v6592_v62  ;;  %v6229_v62 = vld [vmem:[%s9309_s8 + $0xf8] sm:$0xf0]  ;;  %v8575_v52 = vld [vmem:[%s9307_s7 + $0x488] sm:$0xff] }
 0x191   : > { %5017 = vmatmul.bf16.gmra.mxu2 %v6596_v4 }
 0x192   : > { %5045 = vmatmul.bf16.gmra.mxu3 %v6600_v5  ;;  %v6228_v5 = vor.u32 %v8317_v60, %v6227_v59  ;;  %5171 = vmatpush.bf16.msra.mxu0 %v8561_v24  ;;  %v8559_v60 = vld [vmem:[%s9307_s7 + $0x408] sm:$0xff] }
 0x194   : > { %v4794_v10 = vpop.f32.mrf.mxu2  ;;  %v4740_v14 = vpop.f32.mrf.mxu0 }
 0x195   : > { %v4822_v11 = vpop.f32.mrf.mxu3  ;;  %v4795_v13 = vadd.f32 %v4794_v10, %v4767_v6  ;;  %v4768_v15 = vpop.f32.mrf.mxu1  ;;  %v6232_v6 = vor.u32 %v8293_v61, %v6229_v62  ;;  %v8567_v61 = vld [vmem:[%s9307_s7 + $0x448] sm:$0xff]  ;;  %v8574_v62 = vld [vmem:[%s9307_s7 + $0x480] sm:$0xff] }
 0x196   : > { %v4769_v17 = vadd.f32 %v4768_v15, %v4740_v14  ;;  %v8585_v14 = vld [vmem:[%s9307_s7 + $0x4d8] sm:$0xff] }
 0x197   : > { %v9552_v19 = vadd.f32 %v4822_v11, %v4795_v13  ;;  %v8570_v11 = vld [vmem:[%s9307_s7 + $0x460] sm:$0xff]  ;;  %v8577_v13 = vld [vmem:[%s9307_s7 + $0x498] sm:$0xff]  ;;  %5255 = vmatpush.bf16.msra.mxu3 %v8585_v14 }
 0x198   : > { %5198 = vmatpush.bf16.msra.mxu1 %v8570_v11  ;;  %5227 = vmatpush.bf16.msra.mxu2 %v8577_v13  ;;  %v8558_v14 = vld [vmem:[%s9307_s7 + $0x400] sm:$0xff] }
 0x19c   : > { %v4796_v28 = vpop.f32.mrf.mxu2  ;;  %v4743_v33 = vpop.f32.mrf.mxu0  ;;  %5199 = vmatpush.bf16.msra.mxu1 %v8569_v26  ;;  %5228 = vmatpush.bf16.msra.mxu2 %v8576_v27  ;;  %v8621_v26 = vld [vmem:[%s9307_s7 + $0x5f8] sm:$0xff] }
 0x19d   : > { %v4824_v29 = vpop.f32.mrf.mxu3  ;;  %v4797_v32 = vadd.f32 %v4796_v28, %v4769_v17  ;;  %v4771_v34 = vpop.f32.mrf.mxu1  ;;  %v8584_v28 = vld [vmem:[%s9307_s7 + $0x4d0] sm:$0xff] }
 0x19e   : > { %v4772_v38 = vadd.f32 %v4771_v34, %v4743_v33  ;;  %v8341_v33 = vld [vmem:[%s9309_s8 + $0x1bc] sm:$0xf]  ;;  %5256 = vmatpush.bf16.msra.mxu3 %v8584_v28 }
 0x19f   : > { %v9558_v39 = vadd.f32 %v4824_v29, %v4797_v32  ;;  %4966 = vmatmul.bf16.gmra.mxu0 %v2183_v30  ;;  %v8340_v29 = vld [vmem:[%s9309_s8 + $0x1b4] sm:$0xf]  ;;  %v8365_v32 = vld [vmem:[%s9309_s8 + $0x274] sm:$0xf0]  ;;  %v6421_v34 = vld [vmem:[%s9309_s8 + $0x278] sm:$0xf0] }
 0x1a0   : > { %4994 = vmatmul.bf16.gmra.mxu1 %v2184_v31  ;;  %v6413_v30 = vld [vmem:[%s9309_s8 + $0x270] sm:$0xf0]  ;;  %v6419_v31 = vld [vmem:[%s9309_s8 + $0x1b8] sm:$0xf]  ;;  %5229 = vmatpush.bf16.msra.mxu2 %v8575_v52 }
 0x1a1   : > { %5022 = vmatmul.bf16.gmra.mxu2 %v2185_v36  ;;  %v6420_v43 = vor.u32 %v8365_v32, %v6419_v31  ;;  %5200 = vmatpush.bf16.msra.mxu1 %v8568_v51  ;;  %v741_v31 = vld [vmem:[%s9309_s8 + $0x4b0] sm:$0x11] }
 0x1a2   : > { %5050 = vmatmul.bf16.gmra.mxu3 %v2186_v37  ;;  %v6412_v37 = vor.u32 %v8364_v23, %v6411_v22 }
 0x1a3   : > { %5257 = vmatpush.bf16.msra.mxu3 %v8583_v53 }
 0x1a4   : > { %v4799_v44 = vpop.f32.mrf.mxu2  ;;  %v4745_v48 = vpop.f32.mrf.mxu0  ;;  %5230 = vmatpush.bf16.msra.mxu2 %v8574_v62  ;;  %v8619_v62 = vld [vmem:[%s9307_s7 + $0x5e8] sm:$0xff] }
 0x1a5   : > { %v4827_v45 = vpop.f32.mrf.mxu3  ;;  %v4800_v47 = vadd.f32 %v4799_v44, %v4772_v38  ;;  %v4773_v49 = vpop.f32.mrf.mxu1  ;;  %v6416_v38 = vor.u32 %v8340_v29, %v6413_v30  ;;  %v6424_v44 = vor.u32 %v8341_v33, %v6421_v34  ;;  %v8560_v48 = vld [vmem:[%s9307_s7 + $0x410] sm:$0xff]  ;;  %5201 = vmatpush.bf16.msra.mxu1 %v8567_v61  ;;  %v742_v33 = vld [vmem:[%s9309_s8 + $0x4b8] sm:$0x11]  ;;  %v8611_v61 = vld [vmem:[%s9307_s7 + $0x5a8] sm:$0xff] }
 0x1a6   : > { %5172 = vmatpush.bf16.msra.mxu0 %v8560_v48 }
 0x1a7   : > { %v9564_v50 = vadd.f32 %v4827_v45, %v4800_v47 }
 0x1aa   : > { %5173 = vmatpush.bf16.msra.mxu0 %v8559_v60  ;;  %v8604_v60 = vld [vmem:[%s9307_s7 + $0x570] sm:$0xff] }
 0x1ac   : > { %v4801_v63 = vpop.f32.mrf.mxu2  ;;  %v4840_v3 = vpop.f32.mrf.mxu0 }
 0x1ad   : > { %v4829_v0 = vpop.f32.mrf.mxu3  ;;  %v4868_v4 = vpop.f32.mrf.mxu1  ;;  %v4841_v8 = vadd.f32 %v4840_v3, %v9510_v12  ;;  %v8388_v3 = vld [vmem:[%s9309_s8 + $0x334] sm:$0xf] }
 0x1ae   : > { %v6603_v0 = vld [vmem:[%s9309_s8 + $0x330] sm:$0xf]  ;;  %5174 = vmatpush.bf16.msra.mxu0 %v8558_v14  ;;  %v8319_v14 = vld [vmem:[%s9309_s8 + $0x104] sm:$0xf0] }
 0x1af   : > { %v4869_v10 = vadd.f32 %v4868_v4, %v4841_v8  ;;  %5063 = vmatmul.bf16.vlgmr.msrb.gmra.mxu0 %v6220_v1  ;;  %v8412_v1 = vld [vmem:[%s9309_s8 + $0x3ec] sm:$0xf0]  ;;  %v6605_v4 = vld [vmem:[%s9309_s8 + $0x3f0] sm:$0xf0]  ;;  %v8389_v8 = vld [vmem:[%s9309_s8 + $0x33c] sm:$0xf] }
 0x1b0   : > { %5091 = vmatmul.bf16.vlgmr.msrb.gmra.mxu1 %v6224_v2  ;;  %v8582_v2 = vld [vmem:[%s9307_s7 + $0x4c0] sm:$0xff]  ;;  %v6604_v11 = vor.u32 %v8412_v1, %v6603_v0  ;;  %v6608_v13 = vor.u32 %v8388_v3, %v6605_v4 }
 0x1b1   : > { %5119 = vmatmul.bf16.vlgmr.msrb.gmra.mxu2 %v6228_v5  ;;  %v6611_v5 = vld [vmem:[%s9309_s8 + $0x338] sm:$0xf]  ;;  %5258 = vmatpush.bf16.msra.mxu3 %v8582_v2  ;;  %v6235_v4 = vld [vmem:[%s9309_s8 + $0x40] sm:$0xf] }
 0x1b2   : > { %5147 = vmatmul.bf16.vlgmr.msrb.gmra.mxu3 %v6232_v6  ;;  %v8413_v6 = vld [vmem:[%s9309_s8 + $0x3f4] sm:$0xf0] }
 0x1b4   : > { %v4896_v12 = vpop.f32.mrf.mxu2  ;;  %v4842_v17 = vpop.f32.mrf.mxu0 }
 0x1b5   : > { %v4924_v15 = vpop.f32.mrf.mxu3  ;;  %v4897_v16 = vadd.f32 %v4896_v12, %v4869_v10  ;;  %v4870_v18 = vpop.f32.mrf.mxu1  ;;  %v4843_v20 = vadd.f32 %v4842_v17, %v9524_v35  ;;  %v8566_v12 = vld [vmem:[%s9307_s7 + $0x440] sm:$0xff]  ;;  %5363 = vmatpush.bf16.msrb.mxu3 %v8621_v26 }
 0x1b6   : > { %5202 = vmatpush.bf16.msra.mxu1 %v8566_v12  ;;  %v8295_v12 = vld [vmem:[%s9309_s8 + $0x4c] sm:$0xf] }
 0x1b7   : > { %v9584_v21 = vadd.f32 %v4924_v15, %v4897_v16  ;;  %v4871_v25 = vadd.f32 %v4870_v18, %v4843_v20  ;;  %v6612_v18 = vor.u32 %v8413_v6, %v6611_v5  ;;  %v8318_v5 = vld [vmem:[%s9309_s8 + $0xfc] sm:$0xf0]  ;;  %v8595_v6 = vld [vmem:[%s9307_s7 + $0x528] sm:$0xff] }
 0x1bc   : > { %v4898_v35 = vpop.f32.mrf.mxu2  ;;  %v4845_v41 = vpop.f32.mrf.mxu0 }
 0x1bd   : > { %v4926_v36 = vpop.f32.mrf.mxu3  ;;  %v4899_v40 = vadd.f32 %v4898_v35, %v4871_v25  ;;  %v4873_v42 = vpop.f32.mrf.mxu1  ;;  %v4846_v45 = vadd.f32 %v4845_v41, %v9530_v46  ;;  %v8613_v25 = vld [vmem:[%s9307_s7 + $0x5b8] sm:$0xff]  ;;  %v8612_v41 = vld [vmem:[%s9307_s7 + $0x5b0] sm:$0xff] }
 0x1be   : > { %5335 = vmatpush.bf16.msrb.mxu2 %v8613_v25  ;;  %v8597_v35 = vld [vmem:[%s9307_s7 + $0x538] sm:$0xff] }
 0x1bf   : > { %v9599_v47 = vadd.f32 %v4926_v36, %v4899_v40  ;;  %v4874_v49 = vadd.f32 %v4873_v42, %v4846_v45  ;;  %5068 = vmatmul.bf16.gmra.mxu0 %v6412_v37  ;;  %v1995_v37 = vunpack.c.l.b16 %v741_v31  ;;  %v8605_v40 = vld [vmem:[%s9307_s7 + $0x578] sm:$0xff]  ;;  %v8620_v42 = vld [vmem:[%s9307_s7 + $0x5f0] sm:$0xff] }
 0x1c0   : > { %5096 = vmatmul.bf16.gmra.mxu1 %v6416_v38  ;;  %v1996_v38 = vunpack.c.h.b16 %v741_v31  ;;  %5279 = vmatpush.bf16.msrb.mxu0 %v8597_v35  ;;  %v8617_v31 = vld [vmem:[%s9307_s7 + $0x5d8] sm:$0xff] }
 0x1c1   : > { %5124 = vmatmul.bf16.gmra.mxu2 %v6420_v43  ;;  %v1997_v43 = vunpack.c.l.b16 %v742_v33  ;;  %5307 = vmatpush.bf16.msrb.mxu1 %v8605_v40  ;;  %v2187_v48 = vpack.c.b16 %v1995_v37, %v1995_v37  ;;  %v6427_v40 = vld [vmem:[%s9309_s8 + $0x1c0] sm:$0xf] }
 0x1c2   : > { %5152 = vmatmul.bf16.gmra.mxu3 %v6424_v44  ;;  %v1998_v44 = vunpack.c.h.b16 %v742_v33  ;;  %5336 = vmatpush.bf16.msrb.mxu2 %v8612_v41  ;;  %v8366_v41 = vld [vmem:[%s9309_s8 + $0x27c] sm:$0xf0] }
 0x1c3   : > { %5364 = vmatpush.bf16.msrb.mxu3 %v8620_v42  ;;  %v8593_v42 = vld [vmem:[%s9307_s7 + $0x518] sm:$0xff] }
 0x1c4   : > { %v4901_v46 = vpop.f32.mrf.mxu2  ;;  %v4847_v56 = vpop.f32.mrf.mxu0 }
 0x1c5   : > { %v4929_v54 = vpop.f32.mrf.mxu3  ;;  %v4902_v55 = vadd.f32 %v4901_v46, %v4874_v49  ;;  %v4875_v57 = vpop.f32.mrf.mxu1  ;;  %v4848_v58 = vadd.f32 %v4847_v56, %v9546_v7  ;;  %v6613_v7 = vld [vmem:[%s9309_s8 + $0x3f8] sm:$0xf0]  ;;  %v2188_v49 = vpack.c.b16 %v1996_v38, %v1996_v38  ;;  %v2189_v46 = vpack.c.b16 %v1997_v43, %v1997_v43  ;;  %5308 = vmatpush.bf16.msrb.mxu1 %v8604_v60 }
 0x1c6   : > { %v6616_v20 = vor.u32 %v8389_v8, %v6613_v7  ;;  %5337 = vmatpush.bf16.msrb.mxu2 %v8611_v61  ;;  %v8603_v8 = vld [vmem:[%s9307_s7 + $0x568] sm:$0xff]  ;;  %v8610_v7 = vld [vmem:[%s9307_s7 + $0x5a0] sm:$0xff] }
 0x1c7   : > { %v9606_v59 = vadd.f32 %v4929_v54, %v4902_v55  ;;  %v4876_v63 = vadd.f32 %v4875_v57, %v4848_v58  ;;  %v2190_v54 = vpack.c.b16 %v1998_v44, %v1998_v44  ;;  %v8596_v57 = vld [vmem:[%s9307_s7 + $0x530] sm:$0xff]  ;;  %5365 = vmatpush.bf16.msrb.mxu3 %v8619_v62  ;;  %v8601_v44 = vld [vmem:[%s9307_s7 + $0x558] sm:$0xff] }
 0x1c8   : > { %5280 = vmatpush.bf16.msrb.mxu0 %v8596_v57 }
 0x1c9   : > { %5309 = vmatpush.bf16.msrb.mxu1 %v8603_v8 }
 0x1ca   : > { %5338 = vmatpush.bf16.msrb.mxu2 %v8610_v7 }
 0x1cc   : > { %v4903_v9 = vpop.f32.mrf.mxu2  ;;  %v4850_v16 = vpop.f32.mrf.mxu0  ;;  %5281 = vmatpush.bf16.msrb.mxu0 %v8595_v6  ;;  %v8615_v6 = vld [vmem:[%s9307_s7 + $0x5c8] sm:$0xff] }
 0x1cd   : > { %v4931_v10 = vpop.f32.mrf.mxu3  ;;  %v4904_v15 = vadd.f32 %v4903_v9, %v4876_v63  ;;  %v4878_v17 = vpop.f32.mrf.mxu1  ;;  %v4851_v22 = vadd.f32 %v4850_v16, %v9552_v19  ;;  %v8618_v9 = vld [vmem:[%s9307_s7 + $0x5e0] sm:$0xff] }
 0x1ce   : > { %5366 = vmatpush.bf16.msrb.mxu3 %v8618_v9 }
 0x1cf   : > { %v9623_v23 = vadd.f32 %v4931_v10, %v4904_v15  ;;  %v4879_v24 = vadd.f32 %v4878_v17, %v4851_v22  ;;  %5073 = vmatmul.bf16.gmra.mxu0 %v6604_v11  ;;  %v8294_v10 = vld [vmem:[%s9309_s8 + $0x44] sm:$0xf]  ;;  %v6245_v15 = vld [vmem:[%s9309_s8 + $0x108] sm:$0xf0] }
 0x1d0   : > { %5101 = vmatmul.bf16.gmra.mxu1 %v6608_v13  ;;  %v6237_v11 = vld [vmem:[%s9309_s8 + $0x100] sm:$0xf0]  ;;  %v6243_v13 = vld [vmem:[%s9309_s8 + $0x48] sm:$0xf]  ;;  %v6248_v26 = vor.u32 %v8295_v12, %v6245_v15 }
 0x1d1   : > { %5129 = vmatmul.bf16.gmra.mxu2 %v6612_v18  ;;  %v6236_v18 = vor.u32 %v8318_v5, %v6235_v4  ;;  %v6244_v25 = vor.u32 %v8319_v14, %v6243_v13  ;;  %v8600_v4 = vld [vmem:[%s9307_s7 + $0x550] sm:$0xff]  ;;  %v8607_v5 = vld [vmem:[%s9307_s7 + $0x588] sm:$0xff]  ;;  %v8606_v15 = vld [vmem:[%s9307_s7 + $0x580] sm:$0xff] }
 0x1d2   : > { %5157 = vmatmul.bf16.gmra.mxu3 %v6616_v20  ;;  %v6240_v20 = vor.u32 %v8294_v10, %v6237_v11  ;;  %v8591_v14 = vld [vmem:[%s9307_s7 + $0x508] sm:$0xff] }
 0x1d3   : > { %5367 = vmatpush.bf16.msrb.mxu3 %v8617_v31  ;;  %v8599_v12 = vld [vmem:[%s9307_s7 + $0x548] sm:$0xff]  ;;  %v8590_v31 = vld [vmem:[%s9307_s7 + $0x500] sm:$0xff] }
 0x1d4   : > { %v4906_v19 = vpop.f32.mrf.mxu2  ;;  %v4852_v29 = vpop.f32.mrf.mxu0 }
 0x1d5   : > { %v4934_v27 = vpop.f32.mrf.mxu3  ;;  %v4907_v28 = vadd.f32 %v4906_v19, %v4879_v24  ;;  %v4880_v30 = vpop.f32.mrf.mxu1  ;;  %v4853_v32 = vadd.f32 %v4852_v29, %v9558_v39  ;;  %v8602_v29 = vld [vmem:[%s9307_s7 + $0x560] sm:$0xff] }
 0x1d6   : > { %5310 = vmatpush.bf16.msrb.mxu1 %v8602_v29 }
 0x1d7   : > { %v9630_v34 = vadd.f32 %v4934_v27, %v4907_v28  ;;  %v4881_v36 = vadd.f32 %v4880_v30, %v4853_v32  ;;  %v8594_v27 = vld [vmem:[%s9307_s7 + $0x520] sm:$0xff]  ;;  %v8609_v30 = vld [vmem:[%s9307_s7 + $0x598] sm:$0xff] }
 0x1d8   : > { %5282 = vmatpush.bf16.msrb.mxu0 %v8594_v27  ;;  %5339 = vmatpush.bf16.msrb.mxu2 %v8609_v30 }
 0x1da   : > { %5311 = vmatpush.bf16.msrb.mxu1 %v8601_v44  ;;  %v8653_v44 = vld [vmem:[%s9307_s7 + $0x6f8] sm:$0xff] }
 0x1dc   : > { %v4908_v45 = vpop.f32.mrf.mxu2  ;;  %v4855_v52 = vpop.f32.mrf.mxu0  ;;  %5283 = vmatpush.bf16.msrb.mxu0 %v8593_v42 }
 0x1dd   : > { %v4936_v39 = vpop.f32.mrf.mxu3  ;;  %v4909_v51 = vadd.f32 %v4908_v45, %v4881_v36  ;;  %v4883_v53 = vpop.f32.mrf.mxu1  ;;  %v4856_v55 = vadd.f32 %v4855_v52, %v9564_v50  ;;  %v8608_v45 = vld [vmem:[%s9307_s7 + $0x590] sm:$0xff]  ;;  %v8367_v52 = vld [vmem:[%s9309_s8 + $0x284] sm:$0xf0] }
 0x1de   : > { %5340 = vmatpush.bf16.msrb.mxu2 %v8608_v45  ;;  %5312 = vmatpush.bf16.msrb.mxu1 %v8600_v4 }
 0x1df   : > { %v9637_v56 = vadd.f32 %v4936_v39, %v4909_v51  ;;  %v4884_v58 = vadd.f32 %v4883_v53, %v4856_v55  ;;  %5078 = vmatmul.bf16.gmra.mxu0 %v2187_v48  ;;  %v8616_v39 = vld [vmem:[%s9307_s7 + $0x5d0] sm:$0xff]  ;;  %v8342_v48 = vld [vmem:[%s9309_s8 + $0x1c4] sm:$0xf]  ;;  %v6435_v51 = vld [vmem:[%s9309_s8 + $0x1c8] sm:$0xf]  ;;  %v6428_v55 = vor.u32 %v8366_v41, %v6427_v40 }
 0x1e0   : > { %5106 = vmatmul.bf16.gmra.mxu1 %v2188_v49  ;;  %v6429_v49 = vld [vmem:[%s9309_s8 + $0x280] sm:$0xf0]  ;;  %v8343_v53 = vld [vmem:[%s9309_s8 + $0x1cc] sm:$0xf]  ;;  %5368 = vmatpush.bf16.msrb.mxu3 %v8616_v39  ;;  %v6436_v62 = vor.u32 %v8367_v52, %v6435_v51 }
 0x1e1   : > { %5134 = vmatmul.bf16.gmra.mxu2 %v2189_v46  ;;  %v6437_v46 = vld [vmem:[%s9309_s8 + $0x288] sm:$0xf0]  ;;  %v6432_v57 = vor.u32 %v8342_v48, %v6429_v49  ;;  %v743_v51 = vld [vmem:[%s9309_s8 + $0x4c0] sm:$0x11] }
 0x1e2   : > { %5162 = vmatmul.bf16.gmra.mxu3 %v2190_v54  ;;  %5341 = vmatpush.bf16.msrb.mxu2 %v8607_v5 }
 0x1e3   : > { %5313 = vmatpush.bf16.msrb.mxu1 %v8599_v12  ;;  %v8643_v12 = vld [vmem:[%s9307_s7 + $0x6a8] sm:$0xff] }
 0x1e4   : > { %v4911_v50 = vpop.f32.mrf.mxu2  ;;  %v4857_v1 = vpop.f32.mrf.mxu0  ;;  %5369 = vmatpush.bf16.msrb.mxu3 %v8615_v6 }
 0x1e5   : > { %v4939_v63 = vpop.f32.mrf.mxu3  ;;  %v4912_v0 = vadd.f32 %v4911_v50, %v4884_v58  ;;  %v4885_v2 = vpop.f32.mrf.mxu1  ;;  %v6440_v50 = vor.u32 %v8343_v53, %v6437_v46  ;;  %v8592_v1 = vld [vmem:[%s9307_s7 + $0x510] sm:$0xff]  ;;  %v744_v53 = vld [vmem:[%s9309_s8 + $0x4c8] sm:$0x11] }
 0x1e6   : > { %5284 = vmatpush.bf16.msrb.mxu0 %v8592_v1  ;;  %5342 = vmatpush.bf16.msrb.mxu2 %v8606_v15  ;;  %v8651_v15 = vld [vmem:[%s9307_s7 + $0x6e8] sm:$0xff] }
 0x1e7   : > { %v9643_v3 = vadd.f32 %v4939_v63, %v4912_v0 }
 0x1ea   : > { %5285 = vmatpush.bf16.msrb.mxu0 %v8591_v14  ;;  %v8636_v14 = vld [vmem:[%s9307_s7 + $0x670] sm:$0xff] }
 0x1ec   : > { %v4913_v16 = vpop.f32.mrf.mxu2  ;;  %v4952_v22 = vpop.f32.mrf.mxu0 }
 0x1ed   : > { %v4941_v17 = vpop.f32.mrf.mxu3  ;;  %v4980_v24 = vpop.f32.mrf.mxu1  ;;  %v4953_v19 = vadd.f32 %v4952_v22, %v9584_v21  ;;  %v8390_v22 = vld [vmem:[%s9309_s8 + $0x344] sm:$0xf] }
 0x1ee   : > { %v6619_v17 = vld [vmem:[%s9309_s8 + $0x340] sm:$0xf]  ;;  %5286 = vmatpush.bf16.msrb.mxu0 %v8590_v31  ;;  %v8321_v31 = vld [vmem:[%s9309_s8 + $0x114] sm:$0xf0] }
 0x1ef   : > { %v4981_v28 = vadd.f32 %v4980_v24, %v4953_v19  ;;  %5175 = vmatmul.bf16.vlgmr.msra.gmra.mxu0 %v6236_v18  ;;  %v8414_v18 = vld [vmem:[%s9309_s8 + $0x3fc] sm:$0xf0]  ;;  %v6621_v24 = vld [vmem:[%s9309_s8 + $0x400] sm:$0xf0]  ;;  %v8391_v19 = vld [vmem:[%s9309_s8 + $0x34c] sm:$0xf] }
 0x1f0   : > { %5203 = vmatmul.bf16.vlgmr.msra.gmra.mxu1 %v6240_v20  ;;  %v8614_v20 = vld [vmem:[%s9307_s7 + $0x5c0] sm:$0xff]  ;;  %v6620_v29 = vor.u32 %v8414_v18, %v6619_v17  ;;  %v6624_v30 = vor.u32 %v8390_v22, %v6621_v24  ;;  %v6251_v24 = vld [vmem:[%s9309_s8 + $0x50] sm:$0xf] }
 0x1f1   : > { %5231 = vmatmul.bf16.vlgmr.msra.gmra.mxu2 %v6244_v25  ;;  %v6627_v25 = vld [vmem:[%s9309_s8 + $0x348] sm:$0xf]  ;;  %5370 = vmatpush.bf16.msrb.mxu3 %v8614_v20 }
 0x1f2   : > { %5259 = vmatmul.bf16.vlgmr.msra.gmra.mxu3 %v6248_v26  ;;  %v8415_v26 = vld [vmem:[%s9309_s8 + $0x404] sm:$0xf0] }
 0x1f4   : > { %v5008_v21 = vpop.f32.mrf.mxu2  ;;  %v4954_v35 = vpop.f32.mrf.mxu0 }
 0x1f5   : > { %v5036_v32 = vpop.f32.mrf.mxu3  ;;  %v5009_v33 = vadd.f32 %v5008_v21, %v4981_v28  ;;  %v4982_v36 = vpop.f32.mrf.mxu1  ;;  %v4955_v37 = vadd.f32 %v4954_v35, %v9599_v47  ;;  %v8598_v21 = vld [vmem:[%s9307_s7 + $0x540] sm:$0xff]  ;;  %5475 = vmatpush.bf16.msra.mxu3 %v8653_v44 }
 0x1f6   : > { %5314 = vmatpush.bf16.msrb.mxu1 %v8598_v21  ;;  %v8297_v21 = vld [vmem:[%s9309_s8 + $0x5c] sm:$0xf] }
 0x1f7   : > { %v9663_v38 = vadd.f32 %v5036_v32, %v5009_v33  ;;  %v4983_v43 = vadd.f32 %v4982_v36, %v4955_v37  ;;  %v6628_v36 = vor.u32 %v8415_v26, %v6627_v25  ;;  %v8320_v25 = vld [vmem:[%s9309_s8 + $0x10c] sm:$0xf0]  ;;  %v8627_v26 = vld [vmem:[%s9307_s7 + $0x628] sm:$0xff] }
 0x1fc   : > { %v5010_v47 = vpop.f32.mrf.mxu2  ;;  %v4957_v60 = vpop.f32.mrf.mxu0 }
 0x1fd   : > { %v5038_v54 = vpop.f32.mrf.mxu3  ;;  %v5011_v58 = vadd.f32 %v5010_v47, %v4983_v43  ;;  %v4985_v61 = vpop.f32.mrf.mxu1  ;;  %v4958_v63 = vadd.f32 %v4957_v60, %v9606_v59  ;;  %v8645_v43 = vld [vmem:[%s9307_s7 + $0x6b8] sm:$0xff]  ;;  %v8644_v60 = vld [vmem:[%s9307_s7 + $0x6b0] sm:$0xff] }
 0x1fe   : > { %5447 = vmatpush.bf16.msra.mxu2 %v8645_v43  ;;  %v8629_v47 = vld [vmem:[%s9307_s7 + $0x638] sm:$0xff] }
 0x1ff   : > { %v9678_v0 = vadd.f32 %v5038_v54, %v5011_v58  ;;  %v4986_v2 = vadd.f32 %v4985_v61, %v4958_v63  ;;  %5180 = vmatmul.bf16.gmra.mxu0 %v6428_v55  ;;  %v1999_v55 = vunpack.c.l.b16 %v743_v51  ;;  %v8637_v58 = vld [vmem:[%s9307_s7 + $0x678] sm:$0xff]  ;;  %v8652_v61 = vld [vmem:[%s9307_s7 + $0x6f0] sm:$0xff] }
 0x200   : > { %5208 = vmatmul.bf16.gmra.mxu1 %v6432_v57  ;;  %v2000_v57 = vunpack.c.h.b16 %v743_v51  ;;  %5391 = vmatpush.bf16.msra.mxu0 %v8629_v47  ;;  %v8649_v51 = vld [vmem:[%s9307_s7 + $0x6d8] sm:$0xff] }
 0x201   : > { %5236 = vmatmul.bf16.gmra.mxu2 %v6436_v62  ;;  %v2001_v62 = vunpack.c.l.b16 %v744_v53  ;;  %5419 = vmatpush.bf16.msra.mxu1 %v8637_v58  ;;  %v2191_v1 = vpack.c.b16 %v1999_v55, %v1999_v55  ;;  %v6443_v58 = vld [vmem:[%s9309_s8 + $0x1d0] sm:$0xf] }
 0x202   : > { %5264 = vmatmul.bf16.gmra.mxu3 %v6440_v50  ;;  %v2002_v50 = vunpack.c.h.b16 %v744_v53  ;;  %5448 = vmatpush.bf16.msra.mxu2 %v8644_v60  ;;  %v8368_v60 = vld [vmem:[%s9309_s8 + $0x28c] sm:$0xf0] }
 0x203   : > { %5476 = vmatpush.bf16.msra.mxu3 %v8652_v61  ;;  %v8625_v61 = vld [vmem:[%s9307_s7 + $0x618] sm:$0xff] }
 0x204   : > { %v5013_v59 = vpop.f32.mrf.mxu2  ;;  %v4959_v9 = vpop.f32.mrf.mxu0 }
 0x205   : > { %v5041_v8 = vpop.f32.mrf.mxu3  ;;  %v5014_v7 = vadd.f32 %v5013_v59, %v4986_v2  ;;  %v4987_v10 = vpop.f32.mrf.mxu1  ;;  %v4960_v11 = vadd.f32 %v4959_v9, %v9623_v23  ;;  %v6629_v23 = vld [vmem:[%s9309_s8 + $0x408] sm:$0xf0]  ;;  %v2192_v2 = vpack.c.b16 %v2000_v57, %v2000_v57  ;;  %v2193_v59 = vpack.c.b16 %v2001_v62, %v2001_v62  ;;  %5420 = vmatpush.bf16.msra.mxu1 %v8636_v14 }
 0x206   : > { %v6632_v37 = vor.u32 %v8391_v19, %v6629_v23  ;;  %5449 = vmatpush.bf16.msra.mxu2 %v8643_v12  ;;  %v8635_v19 = vld [vmem:[%s9307_s7 + $0x668] sm:$0xff]  ;;  %v8642_v23 = vld [vmem:[%s9307_s7 + $0x6a0] sm:$0xff] }
 0x207   : > { %v9685_v13 = vadd.f32 %v5041_v8, %v5014_v7  ;;  %v4988_v16 = vadd.f32 %v4987_v10, %v4960_v11  ;;  %v2194_v8 = vpack.c.b16 %v2002_v50, %v2002_v50  ;;  %v8628_v10 = vld [vmem:[%s9307_s7 + $0x630] sm:$0xff]  ;;  %5477 = vmatpush.bf16.msra.mxu3 %v8651_v15  ;;  %v8633_v50 = vld [vmem:[%s9307_s7 + $0x658] sm:$0xff] }
 0x208   : > { %5392 = vmatpush.bf16.msra.mxu0 %v8628_v10 }
 0x209   : > { %5421 = vmatpush.bf16.msra.mxu1 %v8635_v19 }
 0x20a   : > { %5450 = vmatpush.bf16.msra.mxu2 %v8642_v23 }
 0x20c   : > { %v5015_v27 = vpop.f32.mrf.mxu2  ;;  %v4962_v33 = vpop.f32.mrf.mxu0  ;;  %5393 = vmatpush.bf16.msra.mxu0 %v8627_v26  ;;  %v8647_v26 = vld [vmem:[%s9307_s7 + $0x6c8] sm:$0xff] }
 0x20d   : > { %v5043_v28 = vpop.f32.mrf.mxu3  ;;  %v5016_v32 = vadd.f32 %v5015_v27, %v4988_v16  ;;  %v4990_v35 = vpop.f32.mrf.mxu1  ;;  %v4963_v40 = vadd.f32 %v4962_v33, %v9630_v34  ;;  %v8650_v27 = vld [vmem:[%s9307_s7 + $0x6e0] sm:$0xff] }
 0x20e   : > { %5478 = vmatpush.bf16.msra.mxu3 %v8650_v27 }
 0x20f   : > { %v9702_v41 = vadd.f32 %v5043_v28, %v5016_v32  ;;  %v4991_v42 = vadd.f32 %v4990_v35, %v4963_v40  ;;  %5185 = vmatmul.bf16.gmra.mxu0 %v6620_v29  ;;  %v8296_v28 = vld [vmem:[%s9309_s8 + $0x54] sm:$0xf]  ;;  %v6261_v32 = vld [vmem:[%s9309_s8 + $0x118] sm:$0xf0] }
 0x210   : > { %5213 = vmatmul.bf16.gmra.mxu1 %v6624_v30  ;;  %v6253_v29 = vld [vmem:[%s9309_s8 + $0x110] sm:$0xf0]  ;;  %v6259_v30 = vld [vmem:[%s9309_s8 + $0x58] sm:$0xf]  ;;  %v6264_v44 = vor.u32 %v8297_v21, %v6261_v32  ;;  %v8631_v21 = vld [vmem:[%s9307_s7 + $0x648] sm:$0xff] }
 0x211   : > { %5241 = vmatmul.bf16.gmra.mxu2 %v6628_v36  ;;  %v6252_v36 = vor.u32 %v8320_v25, %v6251_v24  ;;  %v6260_v43 = vor.u32 %v8321_v31, %v6259_v30  ;;  %v8632_v24 = vld [vmem:[%s9307_s7 + $0x650] sm:$0xff]  ;;  %v8639_v25 = vld [vmem:[%s9307_s7 + $0x688] sm:$0xff]  ;;  %v8638_v32 = vld [vmem:[%s9307_s7 + $0x680] sm:$0xff] }
 0x212   : > { %5269 = vmatmul.bf16.gmra.mxu3 %v6632_v37  ;;  %v6256_v37 = vor.u32 %v8296_v28, %v6253_v29  ;;  %v8623_v31 = vld [vmem:[%s9307_s7 + $0x608] sm:$0xff] }
 0x213   : > { %5479 = vmatpush.bf16.msra.mxu3 %v8649_v51  ;;  %v8622_v51 = vld [vmem:[%s9307_s7 + $0x600] sm:$0xff] }
 0x214   : > { %v5018_v34 = vpop.f32.mrf.mxu2  ;;  %v4964_v48 = vpop.f32.mrf.mxu0 }
 0x215   : > { %v5046_v45 = vpop.f32.mrf.mxu3  ;;  %v5019_v39 = vadd.f32 %v5018_v34, %v4991_v42  ;;  %v4992_v49 = vpop.f32.mrf.mxu1  ;;  %v4965_v52 = vadd.f32 %v4964_v48, %v9637_v56  ;;  %v8634_v48 = vld [vmem:[%s9307_s7 + $0x660] sm:$0xff] }
 0x216   : > { %5422 = vmatpush.bf16.msra.mxu1 %v8634_v48 }
 0x217   : > { %v9709_v46 = vadd.f32 %v5046_v45, %v5019_v39  ;;  %v4993_v54 = vadd.f32 %v4992_v49, %v4965_v52  ;;  %v8626_v45 = vld [vmem:[%s9307_s7 + $0x620] sm:$0xff]  ;;  %v8641_v49 = vld [vmem:[%s9307_s7 + $0x698] sm:$0xff] }
 0x218   : > { %5394 = vmatpush.bf16.msra.mxu0 %v8626_v45  ;;  %5451 = vmatpush.bf16.msra.mxu2 %v8641_v49 }
 0x21a   : > { %5423 = vmatpush.bf16.msra.mxu1 %v8633_v50  ;;  %v8685_v50 = vld [vmem:[%s9307_s7 + $0x7f8] sm:$0xff] }
 0x21c   : > { %v5020_v63 = vpop.f32.mrf.mxu2  ;;  %v4967_v5 = vpop.f32.mrf.mxu0  ;;  %5395 = vmatpush.bf16.msra.mxu0 %v8625_v61 }
 0x21d   : > { %v5048_v56 = vpop.f32.mrf.mxu3  ;;  %v5021_v4 = vadd.f32 %v5020_v63, %v4993_v54  ;;  %v4995_v6 = vpop.f32.mrf.mxu1  ;;  %v4968_v7 = vadd.f32 %v4967_v5, %v9643_v3  ;;  %v8640_v63 = vld [vmem:[%s9307_s7 + $0x690] sm:$0xff]  ;;  %v8369_v5 = vld [vmem:[%s9309_s8 + $0x294] sm:$0xf0] }
 0x21e   : > { %5452 = vmatpush.bf16.msra.mxu2 %v8640_v63  ;;  %5424 = vmatpush.bf16.msra.mxu1 %v8632_v24 }
 0x21f   : > { %v9716_v9 = vadd.f32 %v5048_v56, %v5021_v4  ;;  %v4996_v11 = vadd.f32 %v4995_v6, %v4968_v7  ;;  %5190 = vmatmul.bf16.gmra.mxu0 %v2191_v1  ;;  %v8648_v56 = vld [vmem:[%s9307_s7 + $0x6d0] sm:$0xff]  ;;  %v6451_v4 = vld [vmem:[%s9309_s8 + $0x1d8] sm:$0xf]  ;;  %v8345_v6 = vld [vmem:[%s9309_s8 + $0x1dc] sm:$0xf]  ;;  %v6444_v7 = vor.u32 %v8368_v60, %v6443_v58 }
 0x220   : > { %5218 = vmatmul.bf16.gmra.mxu1 %v2192_v2  ;;  %v8344_v1 = vld [vmem:[%s9309_s8 + $0x1d4] sm:$0xf]  ;;  %5480 = vmatpush.bf16.msra.mxu3 %v8648_v56  ;;  %v6452_v15 = vor.u32 %v8369_v5, %v6451_v4 }
 0x221   : > { %5246 = vmatmul.bf16.gmra.mxu2 %v2193_v59  ;;  %v6445_v2 = vld [vmem:[%s9309_s8 + $0x290] sm:$0xf0]  ;;  %v6453_v59 = vld [vmem:[%s9309_s8 + $0x298] sm:$0xf0] }
 0x222   : > { %5274 = vmatmul.bf16.gmra.mxu3 %v2194_v8  ;;  %v6448_v10 = vor.u32 %v8344_v1, %v6445_v2  ;;  %5453 = vmatpush.bf16.msra.mxu2 %v8639_v25  ;;  %v745_v4 = vld [vmem:[%s9309_s8 + $0x4d0] sm:$0x11] }
 0x223   : > { %5425 = vmatpush.bf16.msra.mxu1 %v8631_v21  ;;  %v8675_v21 = vld [vmem:[%s9307_s7 + $0x7a8] sm:$0xff] }
 0x224   : > { %v5023_v3 = vpop.f32.mrf.mxu2  ;;  %v4969_v18 = vpop.f32.mrf.mxu0  ;;  %5481 = vmatpush.bf16.msra.mxu3 %v8647_v26 }
 0x225   : > { %v5051_v16 = vpop.f32.mrf.mxu3  ;;  %v5024_v17 = vadd.f32 %v5023_v3, %v4996_v11  ;;  %v4997_v20 = vpop.f32.mrf.mxu1  ;;  %v6456_v3 = vor.u32 %v8345_v6, %v6453_v59  ;;  %v8624_v18 = vld [vmem:[%s9307_s7 + $0x610] sm:$0xff]  ;;  %v746_v6 = vld [vmem:[%s9309_s8 + $0x4d8] sm:$0x11] }
 0x226   : > { %5396 = vmatpush.bf16.msra.mxu0 %v8624_v18  ;;  %5454 = vmatpush.bf16.msra.mxu2 %v8638_v32  ;;  %v8683_v32 = vld [vmem:[%s9307_s7 + $0x7e8] sm:$0xff] }
 0x227   : > { %v9722_v22 = vadd.f32 %v5051_v16, %v5024_v17 }
 0x22a   : > { %5397 = vmatpush.bf16.msra.mxu0 %v8623_v31  ;;  %v8668_v31 = vld [vmem:[%s9307_s7 + $0x770] sm:$0xff] }
 0x22c   : > { %v5025_v33 = vpop.f32.mrf.mxu2  ;;  %v5064_v40 = vpop.f32.mrf.mxu0 }
 0x22d   : > { %v5053_v35 = vpop.f32.mrf.mxu3  ;;  %v5092_v42 = vpop.f32.mrf.mxu1  ;;  %v5065_v34 = vadd.f32 %v5064_v40, %v9663_v38  ;;  %v8392_v40 = vld [vmem:[%s9309_s8 + $0x354] sm:$0xf] }
 0x22e   : > { %v6635_v35 = vld [vmem:[%s9309_s8 + $0x350] sm:$0xf]  ;;  %5398 = vmatpush.bf16.msra.mxu0 %v8622_v51  ;;  %v8323_v51 = vld [vmem:[%s9309_s8 + $0x124] sm:$0xf0] }
 0x22f   : > { %v5093_v39 = vadd.f32 %v5092_v42, %v5065_v34  ;;  %5287 = vmatmul.bf16.vlgmr.msrb.gmra.mxu0 %v6252_v36  ;;  %v8416_v36 = vld [vmem:[%s9309_s8 + $0x40c] sm:$0xf0]  ;;  %v6637_v42 = vld [vmem:[%s9309_s8 + $0x410] sm:$0xf0]  ;;  %v8393_v34 = vld [vmem:[%s9309_s8 + $0x35c] sm:$0xf] }
 0x230   : > { %5315 = vmatmul.bf16.vlgmr.msrb.gmra.mxu1 %v6256_v37  ;;  %v8646_v37 = vld [vmem:[%s9307_s7 + $0x6c0] sm:$0xff]  ;;  %v6636_v48 = vor.u32 %v8416_v36, %v6635_v35  ;;  %v6640_v49 = vor.u32 %v8392_v40, %v6637_v42 }
 0x231   : > { %5343 = vmatmul.bf16.vlgmr.msrb.gmra.mxu2 %v6260_v43  ;;  %v6643_v43 = vld [vmem:[%s9309_s8 + $0x358] sm:$0xf]  ;;  %5482 = vmatpush.bf16.msra.mxu3 %v8646_v37  ;;  %v6267_v42 = vld [vmem:[%s9309_s8 + $0x60] sm:$0xf] }
 0x232   : > { %5371 = vmatmul.bf16.vlgmr.msrb.gmra.mxu3 %v6264_v44  ;;  %v8417_v44 = vld [vmem:[%s9309_s8 + $0x414] sm:$0xf0] }
 0x234   : > { %v5120_v38 = vpop.f32.mrf.mxu2  ;;  %v5066_v47 = vpop.f32.mrf.mxu0 }
 0x235   : > { %v5148_v52 = vpop.f32.mrf.mxu3  ;;  %v5121_v53 = vadd.f32 %v5120_v38, %v5093_v39  ;;  %v5094_v54 = vpop.f32.mrf.mxu1  ;;  %v5067_v55 = vadd.f32 %v5066_v47, %v9678_v0  ;;  %v8630_v38 = vld [vmem:[%s9307_s7 + $0x640] sm:$0xff]  ;;  %5587 = vmatpush.bf16.msrb.mxu3 %v8685_v50 }
 0x236   : > { %5426 = vmatpush.bf16.msra.mxu1 %v8630_v38  ;;  %v8299_v38 = vld [vmem:[%s9309_s8 + $0x6c] sm:$0xf] }
 0x237   : > { %v9742_v57 = vadd.f32 %v5148_v52, %v5121_v53  ;;  %v5095_v62 = vadd.f32 %v5094_v54, %v5067_v55  ;;  %v6644_v54 = vor.u32 %v8417_v44, %v6643_v43  ;;  %v8322_v43 = vld [vmem:[%s9309_s8 + $0x11c] sm:$0xf0]  ;;  %v8659_v44 = vld [vmem:[%s9307_s7 + $0x728] sm:$0xff] }
 0x23c   : > { %v5122_v0 = vpop.f32.mrf.mxu2  ;;  %v5069_v14 = vpop.f32.mrf.mxu0 }
 0x23d   : > { %v5150_v8 = vpop.f32.mrf.mxu3  ;;  %v5123_v11 = vadd.f32 %v5122_v0, %v5095_v62  ;;  %v5097_v12 = vpop.f32.mrf.mxu1  ;;  %v5070_v16 = vadd.f32 %v5069_v14, %v9685_v13  ;;  %v8677_v62 = vld [vmem:[%s9307_s7 + $0x7b8] sm:$0xff]  ;;  %v8676_v14 = vld [vmem:[%s9307_s7 + $0x7b0] sm:$0xff] }
 0x23e   : > { %5559 = vmatpush.bf16.msrb.mxu2 %v8677_v62  ;;  %v8661_v0 = vld [vmem:[%s9307_s7 + $0x738] sm:$0xff] }
 0x23f   : > { %v9757_v17 = vadd.f32 %v5150_v8, %v5123_v11  ;;  %v5098_v20 = vadd.f32 %v5097_v12, %v5070_v16  ;;  %5292 = vmatmul.bf16.gmra.mxu0 %v6444_v7  ;;  %v2003_v7 = vunpack.c.l.b16 %v745_v4  ;;  %v8669_v11 = vld [vmem:[%s9307_s7 + $0x778] sm:$0xff]  ;;  %v8684_v12 = vld [vmem:[%s9307_s7 + $0x7f0] sm:$0xff] }
 0x240   : > { %5320 = vmatmul.bf16.gmra.mxu1 %v6448_v10  ;;  %v2004_v10 = vunpack.c.h.b16 %v745_v4  ;;  %5503 = vmatpush.bf16.msrb.mxu0 %v8661_v0  ;;  %v8681_v4 = vld [vmem:[%s9307_s7 + $0x7d8] sm:$0xff] }
 0x241   : > { %5348 = vmatmul.bf16.gmra.mxu2 %v6452_v15  ;;  %v2005_v15 = vunpack.c.l.b16 %v746_v6  ;;  %5531 = vmatpush.bf16.msrb.mxu1 %v8669_v11  ;;  %v2195_v18 = vpack.c.b16 %v2003_v7, %v2003_v7  ;;  %v6459_v11 = vld [vmem:[%s9309_s8 + $0x1e0] sm:$0xf] }
 0x242   : > { %5376 = vmatmul.bf16.gmra.mxu3 %v6456_v3  ;;  %v2006_v3 = vunpack.c.h.b16 %v746_v6  ;;  %5560 = vmatpush.bf16.msrb.mxu2 %v8676_v14  ;;  %v8370_v14 = vld [vmem:[%s9309_s8 + $0x29c] sm:$0xf0] }
 0x243   : > { %5588 = vmatpush.bf16.msrb.mxu3 %v8684_v12  ;;  %v8657_v12 = vld [vmem:[%s9307_s7 + $0x718] sm:$0xff] }
 0x244   : > { %v5125_v13 = vpop.f32.mrf.mxu2  ;;  %v5071_v27 = vpop.f32.mrf.mxu0 }
 0x245   : > { %v5153_v19 = vpop.f32.mrf.mxu3  ;;  %v5126_v23 = vadd.f32 %v5125_v13, %v5098_v20  ;;  %v5099_v28 = vpop.f32.mrf.mxu1  ;;  %v5072_v29 = vadd.f32 %v5071_v27, %v9702_v41  ;;  %v6645_v41 = vld [vmem:[%s9309_s8 + $0x418] sm:$0xf0]  ;;  %v2196_v20 = vpack.c.b16 %v2004_v10, %v2004_v10  ;;  %v2197_v13 = vpack.c.b16 %v2005_v15, %v2005_v15  ;;  %5532 = vmatpush.bf16.msrb.mxu1 %v8668_v31 }
 0x246   : > { %v6648_v55 = vor.u32 %v8393_v34, %v6645_v41  ;;  %5561 = vmatpush.bf16.msrb.mxu2 %v8675_v21  ;;  %v8667_v34 = vld [vmem:[%s9307_s7 + $0x768] sm:$0xff]  ;;  %v8674_v41 = vld [vmem:[%s9307_s7 + $0x7a0] sm:$0xff] }
 0x247   : > { %v9764_v30 = vadd.f32 %v5153_v19, %v5126_v23  ;;  %v5100_v33 = vadd.f32 %v5099_v28, %v5072_v29  ;;  %v2198_v19 = vpack.c.b16 %v2006_v3, %v2006_v3  ;;  %v8660_v28 = vld [vmem:[%s9307_s7 + $0x730] sm:$0xff]  ;;  %5589 = vmatpush.bf16.msrb.mxu3 %v8683_v32  ;;  %v8665_v3 = vld [vmem:[%s9307_s7 + $0x758] sm:$0xff] }
 0x248   : > { %5504 = vmatpush.bf16.msrb.mxu0 %v8660_v28 }
 0x249   : > { %5533 = vmatpush.bf16.msrb.mxu1 %v8667_v34 }
 0x24a   : > { %5562 = vmatpush.bf16.msrb.mxu2 %v8674_v41 }
 0x24c   : > { %v5127_v45 = vpop.f32.mrf.mxu2  ;;  %v5074_v53 = vpop.f32.mrf.mxu0  ;;  %5505 = vmatpush.bf16.msrb.mxu0 %v8659_v44  ;;  %v8679_v44 = vld [vmem:[%s9307_s7 + $0x7c8] sm:$0xff] }
 0x24d   : > { %v5155_v39 = vpop.f32.mrf.mxu3  ;;  %v5128_v52 = vadd.f32 %v5127_v45, %v5100_v33  ;;  %v5102_v47 = vpop.f32.mrf.mxu1  ;;  %v5075_v58 = vadd.f32 %v5074_v53, %v9709_v46  ;;  %v8682_v45 = vld [vmem:[%s9307_s7 + $0x7e0] sm:$0xff] }
 0x24e   : > { %5590 = vmatpush.bf16.msrb.mxu3 %v8682_v45 }
 0x24f   : > { %v9781_v60 = vadd.f32 %v5155_v39, %v5128_v52  ;;  %v5103_v61 = vadd.f32 %v5102_v47, %v5075_v58  ;;  %5297 = vmatmul.bf16.gmra.mxu0 %v6636_v48  ;;  %v8298_v39 = vld [vmem:[%s9309_s8 + $0x64] sm:$0xf]  ;;  %v6277_v52 = vld [vmem:[%s9309_s8 + $0x128] sm:$0xf0] }
 0x250   : > { %5325 = vmatmul.bf16.gmra.mxu1 %v6640_v49  ;;  %v6269_v48 = vld [vmem:[%s9309_s8 + $0x120] sm:$0xf0]  ;;  %v6275_v49 = vld [vmem:[%s9309_s8 + $0x68] sm:$0xf]  ;;  %v6280_v50 = vor.u32 %v8299_v38, %v6277_v52 }
 0x251   : > { %5353 = vmatmul.bf16.gmra.mxu2 %v6644_v54  ;;  %v6268_v54 = vor.u32 %v8322_v43, %v6267_v42  ;;  %v6276_v62 = vor.u32 %v8323_v51, %v6275_v49  ;;  %v8664_v42 = vld [vmem:[%s9307_s7 + $0x750] sm:$0xff]  ;;  %v8671_v43 = vld [vmem:[%s9307_s7 + $0x788] sm:$0xff]  ;;  %v8670_v52 = vld [vmem:[%s9307_s7 + $0x780] sm:$0xff] }
 0x252   : > { %5381 = vmatmul.bf16.gmra.mxu3 %v6648_v55  ;;  %v6272_v55 = vor.u32 %v8298_v39, %v6269_v48  ;;  %v8655_v51 = vld [vmem:[%s9307_s7 + $0x708] sm:$0xff] }
 0x253   : > { %5591 = vmatpush.bf16.msrb.mxu3 %v8681_v4  ;;  %v8663_v38 = vld [vmem:[%s9307_s7 + $0x748] sm:$0xff]  ;;  %v8654_v4 = vld [vmem:[%s9307_s7 + $0x700] sm:$0xff] }
 0x254   : > { %v5130_v46 = vpop.f32.mrf.mxu2  ;;  %v5076_v1 = vpop.f32.mrf.mxu0 }
 0x255   : > { %v5158_v63 = vpop.f32.mrf.mxu3  ;;  %v5131_v56 = vadd.f32 %v5130_v46, %v5103_v61  ;;  %v5104_v2 = vpop.f32.mrf.mxu1  ;;  %v5077_v5 = vadd.f32 %v5076_v1, %v9716_v9  ;;  %v8666_v1 = vld [vmem:[%s9307_s7 + $0x760] sm:$0xff] }
 0x256   : > { %5534 = vmatpush.bf16.msrb.mxu1 %v8666_v1 }
 0x257   : > { %v9788_v59 = vadd.f32 %v5158_v63, %v5131_v56  ;;  %v5105_v8 = vadd.f32 %v5104_v2, %v5077_v5  ;;  %v8658_v63 = vld [vmem:[%s9307_s7 + $0x720] sm:$0xff]  ;;  %v8673_v2 = vld [vmem:[%s9307_s7 + $0x798] sm:$0xff] }
 0x258   : > { %5506 = vmatpush.bf16.msrb.mxu0 %v8658_v63  ;;  %5563 = vmatpush.bf16.msrb.mxu2 %v8673_v2 }
 0x25a   : > { %5535 = vmatpush.bf16.msrb.mxu1 %v8665_v3  ;;  %v8717_v3 = vld [vmem:[%s9307_s7 + $0x8f8] sm:$0xff] }
 0x25c   : > { %v5132_v16 = vpop.f32.mrf.mxu2  ;;  %v5079_v25 = vpop.f32.mrf.mxu0  ;;  %5507 = vmatpush.bf16.msrb.mxu0 %v8657_v12 }
 0x25d   : > { %v5160_v9 = vpop.f32.mrf.mxu3  ;;  %v5133_v24 = vadd.f32 %v5132_v16, %v5105_v8  ;;  %v5107_v26 = vpop.f32.mrf.mxu1  ;;  %v5080_v23 = vadd.f32 %v5079_v25, %v9722_v22  ;;  %v8672_v16 = vld [vmem:[%s9307_s7 + $0x790] sm:$0xff]  ;;  %v8371_v25 = vld [vmem:[%s9309_s8 + $0x2a4] sm:$0xf0] }
 0x25e   : > { %5564 = vmatpush.bf16.msrb.mxu2 %v8672_v16  ;;  %5536 = vmatpush.bf16.msrb.mxu1 %v8664_v42 }
 0x25f   : > { %v9795_v27 = vadd.f32 %v5160_v9, %v5133_v24  ;;  %v5108_v29 = vadd.f32 %v5107_v26, %v5080_v23  ;;  %5302 = vmatmul.bf16.gmra.mxu0 %v2195_v18  ;;  %v8680_v9 = vld [vmem:[%s9307_s7 + $0x7d0] sm:$0xff]  ;;  %v8346_v18 = vld [vmem:[%s9309_s8 + $0x1e4] sm:$0xf]  ;;  %v6467_v24 = vld [vmem:[%s9309_s8 + $0x1e8] sm:$0xf]  ;;  %v6460_v23 = vor.u32 %v8370_v14, %v6459_v11 }
 0x260   : > { %5330 = vmatmul.bf16.gmra.mxu1 %v2196_v20  ;;  %v6461_v20 = vld [vmem:[%s9309_s8 + $0x2a0] sm:$0xf0]  ;;  %v8347_v26 = vld [vmem:[%s9309_s8 + $0x1ec] sm:$0xf]  ;;  %5592 = vmatpush.bf16.msrb.mxu3 %v8680_v9  ;;  %v6468_v32 = vor.u32 %v8371_v25, %v6467_v24 }
 0x261   : > { %5358 = vmatmul.bf16.gmra.mxu2 %v2197_v13  ;;  %v6469_v13 = vld [vmem:[%s9309_s8 + $0x2a8] sm:$0xf0]  ;;  %v6464_v28 = vor.u32 %v8346_v18, %v6461_v20  ;;  %v747_v24 = vld [vmem:[%s9309_s8 + $0x4e0] sm:$0x11] }
 0x262   : > { %5386 = vmatmul.bf16.gmra.mxu3 %v2198_v19  ;;  %5565 = vmatpush.bf16.msrb.mxu2 %v8671_v43 }
 0x263   : > { %5537 = vmatpush.bf16.msrb.mxu1 %v8663_v38  ;;  %v8707_v38 = vld [vmem:[%s9307_s7 + $0x8a8] sm:$0xff] }
 0x264   : > { %v5135_v22 = vpop.f32.mrf.mxu2  ;;  %v5081_v36 = vpop.f32.mrf.mxu0  ;;  %5593 = vmatpush.bf16.msrb.mxu3 %v8679_v44 }
 0x265   : > { %v5163_v33 = vpop.f32.mrf.mxu3  ;;  %v5136_v35 = vadd.f32 %v5135_v22, %v5108_v29  ;;  %v5109_v37 = vpop.f32.mrf.mxu1  ;;  %v6472_v22 = vor.u32 %v8347_v26, %v6469_v13  ;;  %v8656_v36 = vld [vmem:[%s9307_s7 + $0x710] sm:$0xff]  ;;  %v748_v26 = vld [vmem:[%s9309_s8 + $0x4e8] sm:$0x11] }
 0x266   : > { %5508 = vmatpush.bf16.msrb.mxu0 %v8656_v36  ;;  %5566 = vmatpush.bf16.msrb.mxu2 %v8670_v52  ;;  %v8715_v52 = vld [vmem:[%s9307_s7 + $0x8e8] sm:$0xff] }
 0x267   : > { %v9801_v40 = vadd.f32 %v5163_v33, %v5136_v35 }
 0x26a   : > { %5509 = vmatpush.bf16.msrb.mxu0 %v8655_v51  ;;  %v8700_v51 = vld [vmem:[%s9307_s7 + $0x870] sm:$0xff] }
 0x26c   : > { %v5137_v53 = vpop.f32.mrf.mxu2  ;;  %v5176_v58 = vpop.f32.mrf.mxu0 }
 0x26d   : > { %v5165_v47 = vpop.f32.mrf.mxu3  ;;  %v5204_v61 = vpop.f32.mrf.mxu1  ;;  %v5177_v46 = vadd.f32 %v5176_v58, %v9742_v57  ;;  %v8394_v58 = vld [vmem:[%s9309_s8 + $0x364] sm:$0xf] }
 0x26e   : > { %v6651_v47 = vld [vmem:[%s9309_s8 + $0x360] sm:$0xf]  ;;  %5510 = vmatpush.bf16.msrb.mxu0 %v8654_v4  ;;  %v8325_v4 = vld [vmem:[%s9309_s8 + $0x134] sm:$0xf0] }
 0x26f   : > { %v5205_v56 = vadd.f32 %v5204_v61, %v5177_v46  ;;  %5399 = vmatmul.bf16.vlgmr.msra.gmra.mxu0 %v6268_v54  ;;  %v8418_v54 = vld [vmem:[%s9309_s8 + $0x41c] sm:$0xf0]  ;;  %v6653_v61 = vld [vmem:[%s9309_s8 + $0x420] sm:$0xf0]  ;;  %v8395_v46 = vld [vmem:[%s9309_s8 + $0x36c] sm:$0xf] }
 0x270   : > { %5427 = vmatmul.bf16.vlgmr.msra.gmra.mxu1 %v6272_v55  ;;  %v8678_v55 = vld [vmem:[%s9307_s7 + $0x7c0] sm:$0xff]  ;;  %v6652_v1 = vor.u32 %v8418_v54, %v6651_v47  ;;  %v6656_v2 = vor.u32 %v8394_v58, %v6653_v61  ;;  %v6283_v61 = vld [vmem:[%s9309_s8 + $0x70] sm:$0xf] }
 0x271   : > { %5455 = vmatmul.bf16.vlgmr.msra.gmra.mxu2 %v6276_v62  ;;  %v6659_v62 = vld [vmem:[%s9309_s8 + $0x368] sm:$0xf]  ;;  %5594 = vmatpush.bf16.msrb.mxu3 %v8678_v55 }
 0x272   : > { %5483 = vmatmul.bf16.vlgmr.msra.gmra.mxu3 %v6280_v50  ;;  %v8419_v50 = vld [vmem:[%s9309_s8 + $0x424] sm:$0xf0] }
 0x274   : > { %v5232_v57 = vpop.f32.mrf.mxu2  ;;  %v5178_v0 = vpop.f32.mrf.mxu0 }
 0x275   : > { %v5260_v5 = vpop.f32.mrf.mxu3  ;;  %v5233_v6 = vadd.f32 %v5232_v57, %v5205_v56  ;;  %v5206_v8 = vpop.f32.mrf.mxu1  ;;  %v5179_v7 = vadd.f32 %v5178_v0, %v9757_v17  ;;  %v8662_v57 = vld [vmem:[%s9307_s7 + $0x740] sm:$0xff]  ;;  %5699 = vmatpush.bf16.msra.mxu3 %v8717_v3 }
 0x276   : > { %5538 = vmatpush.bf16.msrb.mxu1 %v8662_v57  ;;  %v8301_v57 = vld [vmem:[%s9309_s8 + $0x7c] sm:$0xf] }
 0x277   : > { %v9821_v10 = vadd.f32 %v5260_v5, %v5233_v6  ;;  %v5207_v15 = vadd.f32 %v5206_v8, %v5179_v7  ;;  %v6660_v8 = vor.u32 %v8419_v50, %v6659_v62  ;;  %v8324_v62 = vld [vmem:[%s9309_s8 + $0x12c] sm:$0xf0]  ;;  %v8691_v50 = vld [vmem:[%s9307_s7 + $0x828] sm:$0xff] }
 0x27c   : > { %v5234_v17 = vpop.f32.mrf.mxu2  ;;  %v5181_v31 = vpop.f32.mrf.mxu0 }
 0x27d   : > { %v5262_v19 = vpop.f32.mrf.mxu3  ;;  %v5235_v29 = vadd.f32 %v5234_v17, %v5207_v15  ;;  %v5209_v21 = vpop.f32.mrf.mxu1  ;;  %v5182_v33 = vadd.f32 %v5181_v31, %v9764_v30  ;;  %v8709_v15 = vld [vmem:[%s9307_s7 + $0x8b8] sm:$0xff]  ;;  %v8708_v31 = vld [vmem:[%s9307_s7 + $0x8b0] sm:$0xff] }
 0x27e   : > { %5671 = vmatpush.bf16.msra.mxu2 %v8709_v15  ;;  %v8693_v17 = vld [vmem:[%s9307_s7 + $0x838] sm:$0xff] }
 0x27f   : > { %v9836_v35 = vadd.f32 %v5262_v19, %v5235_v29  ;;  %v5210_v37 = vadd.f32 %v5209_v21, %v5182_v33  ;;  %5404 = vmatmul.bf16.gmra.mxu0 %v6460_v23  ;;  %v2007_v23 = vunpack.c.l.b16 %v747_v24  ;;  %v8701_v29 = vld [vmem:[%s9307_s7 + $0x878] sm:$0xff]  ;;  %v8716_v21 = vld [vmem:[%s9307_s7 + $0x8f0] sm:$0xff] }
 0x280   : > { %5432 = vmatmul.bf16.gmra.mxu1 %v6464_v28  ;;  %v2008_v28 = vunpack.c.h.b16 %v747_v24  ;;  %5615 = vmatpush.bf16.msra.mxu0 %v8693_v17  ;;  %v8713_v24 = vld [vmem:[%s9307_s7 + $0x8d8] sm:$0xff] }
 0x281   : > { %5460 = vmatmul.bf16.gmra.mxu2 %v6468_v32  ;;  %v2009_v32 = vunpack.c.l.b16 %v748_v26  ;;  %5643 = vmatpush.bf16.msra.mxu1 %v8701_v29  ;;  %v2199_v36 = vpack.c.b16 %v2007_v23, %v2007_v23  ;;  %v6475_v29 = vld [vmem:[%s9309_s8 + $0x1f0] sm:$0xf] }
 0x282   : > { %5488 = vmatmul.bf16.gmra.mxu3 %v6472_v22  ;;  %v2010_v22 = vunpack.c.h.b16 %v748_v26  ;;  %5672 = vmatpush.bf16.msra.mxu2 %v8708_v31  ;;  %v8372_v31 = vld [vmem:[%s9309_s8 + $0x2ac] sm:$0xf0] }
 0x283   : > { %5700 = vmatpush.bf16.msra.mxu3 %v8716_v21  ;;  %v8689_v21 = vld [vmem:[%s9307_s7 + $0x818] sm:$0xff] }
 0x284   : > { %v5237_v30 = vpop.f32.mrf.mxu2  ;;  %v5183_v45 = vpop.f32.mrf.mxu0 }
 0x285   : > { %v5265_v34 = vpop.f32.mrf.mxu3  ;;  %v5238_v41 = vadd.f32 %v5237_v30, %v5210_v37  ;;  %v5211_v39 = vpop.f32.mrf.mxu1  ;;  %v5184_v48 = vadd.f32 %v5183_v45, %v9781_v60  ;;  %v6661_v60 = vld [vmem:[%s9309_s8 + $0x428] sm:$0xf0]  ;;  %v2200_v37 = vpack.c.b16 %v2008_v28, %v2008_v28  ;;  %v2201_v30 = vpack.c.b16 %v2009_v32, %v2009_v32  ;;  %5644 = vmatpush.bf16.msra.mxu1 %v8700_v51 }
 0x286   : > { %v6664_v7 = vor.u32 %v8395_v46, %v6661_v60  ;;  %5673 = vmatpush.bf16.msra.mxu2 %v8707_v38  ;;  %v8699_v46 = vld [vmem:[%s9307_s7 + $0x868] sm:$0xff]  ;;  %v8706_v60 = vld [vmem:[%s9307_s7 + $0x8a0] sm:$0xff] }
 0x287   : > { %v9843_v49 = vadd.f32 %v5265_v34, %v5238_v41  ;;  %v5212_v53 = vadd.f32 %v5211_v39, %v5184_v48  ;;  %v2202_v34 = vpack.c.b16 %v2010_v22, %v2010_v22  ;;  %v8692_v39 = vld [vmem:[%s9307_s7 + $0x830] sm:$0xff]  ;;  %5701 = vmatpush.bf16.msra.mxu3 %v8715_v52  ;;  %v8697_v22 = vld [vmem:[%s9307_s7 + $0x858] sm:$0xff] }
 0x288   : > { %5616 = vmatpush.bf16.msra.mxu0 %v8692_v39 }
 0x289   : > { %5645 = vmatpush.bf16.msra.mxu1 %v8699_v46 }
 0x28a   : > { %5674 = vmatpush.bf16.msra.mxu2 %v8706_v60 }
 0x28c   : > { %v5239_v63 = vpop.f32.mrf.mxu2  ;;  %v5186_v6 = vpop.f32.mrf.mxu0  ;;  %5617 = vmatpush.bf16.msra.mxu0 %v8691_v50  ;;  %v8711_v50 = vld [vmem:[%s9307_s7 + $0x8c8] sm:$0xff] }
 0x28d   : > { %v5267_v56 = vpop.f32.mrf.mxu3  ;;  %v5240_v5 = vadd.f32 %v5239_v63, %v5212_v53  ;;  %v5214_v0 = vpop.f32.mrf.mxu1  ;;  %v5187_v11 = vadd.f32 %v5186_v6, %v9788_v59  ;;  %v8714_v63 = vld [vmem:[%s9307_s7 + $0x8e0] sm:$0xff] }
 0x28e   : > { %5702 = vmatpush.bf16.msra.mxu3 %v8714_v63 }
 0x28f   : > { %v9860_v14 = vadd.f32 %v5267_v56, %v5240_v5  ;;  %v5215_v12 = vadd.f32 %v5214_v0, %v5187_v11  ;;  %5409 = vmatmul.bf16.gmra.mxu0 %v6652_v1  ;;  %v8300_v56 = vld [vmem:[%s9309_s8 + $0x74] sm:$0xf]  ;;  %v6293_v5 = vld [vmem:[%s9309_s8 + $0x138] sm:$0xf0] }
 0x290   : > { %5437 = vmatmul.bf16.gmra.mxu1 %v6656_v2  ;;  %v6285_v1 = vld [vmem:[%s9309_s8 + $0x130] sm:$0xf0]  ;;  %v6291_v2 = vld [vmem:[%s9309_s8 + $0x78] sm:$0xf]  ;;  %v6296_v3 = vor.u32 %v8301_v57, %v6293_v5  ;;  %v8695_v57 = vld [vmem:[%s9307_s7 + $0x848] sm:$0xff] }
 0x291   : > { %5465 = vmatmul.bf16.gmra.mxu2 %v6660_v8  ;;  %v6284_v8 = vor.u32 %v8324_v62, %v6283_v61  ;;  %v6292_v15 = vor.u32 %v8325_v4, %v6291_v2  ;;  %v8696_v61 = vld [vmem:[%s9307_s7 + $0x850] sm:$0xff]  ;;  %v8703_v62 = vld [vmem:[%s9307_s7 + $0x888] sm:$0xff]  ;;  %v8702_v5 = vld [vmem:[%s9307_s7 + $0x880] sm:$0xff] }
 0x292   : > { %5493 = vmatmul.bf16.gmra.mxu3 %v6664_v7  ;;  %v6288_v7 = vor.u32 %v8300_v56, %v6285_v1  ;;  %v8687_v4 = vld [vmem:[%s9307_s7 + $0x808] sm:$0xff] }
 0x293   : > { %5703 = vmatpush.bf16.msra.mxu3 %v8713_v24  ;;  %v8686_v24 = vld [vmem:[%s9307_s7 + $0x800] sm:$0xff] }
 0x294   : > { %v5242_v59 = vpop.f32.mrf.mxu2  ;;  %v5188_v18 = vpop.f32.mrf.mxu0 }
 0x295   : > { %v5270_v16 = vpop.f32.mrf.mxu3  ;;  %v5243_v9 = vadd.f32 %v5242_v59, %v5215_v12  ;;  %v5216_v20 = vpop.f32.mrf.mxu1  ;;  %v5189_v25 = vadd.f32 %v5188_v18, %v9795_v27  ;;  %v8698_v18 = vld [vmem:[%s9307_s7 + $0x860] sm:$0xff] }
 0x296   : > { %5646 = vmatpush.bf16.msra.mxu1 %v8698_v18 }
 0x297   : > { %v9867_v13 = vadd.f32 %v5270_v16, %v5243_v9  ;;  %v5217_v19 = vadd.f32 %v5216_v20, %v5189_v25  ;;  %v8690_v16 = vld [vmem:[%s9307_s7 + $0x820] sm:$0xff]  ;;  %v8705_v20 = vld [vmem:[%s9307_s7 + $0x898] sm:$0xff] }
 0x298   : > { %5618 = vmatpush.bf16.msra.mxu0 %v8690_v16  ;;  %5675 = vmatpush.bf16.msra.mxu2 %v8705_v20 }
 0x29a   : > { %5647 = vmatpush.bf16.msra.mxu1 %v8697_v22  ;;  %v8749_v22 = vld [vmem:[%s9307_s7 + $0x9f8] sm:$0xff] }
 0x29c   : > { %v5244_v33 = vpop.f32.mrf.mxu2  ;;  %v5191_v43 = vpop.f32.mrf.mxu0  ;;  %5619 = vmatpush.bf16.msra.mxu0 %v8689_v21 }
 0x29d   : > { %v5272_v27 = vpop.f32.mrf.mxu3  ;;  %v5245_v42 = vadd.f32 %v5244_v33, %v5217_v19  ;;  %v5219_v44 = vpop.f32.mrf.mxu1  ;;  %v5192_v41 = vadd.f32 %v5191_v43, %v9801_v40  ;;  %v8704_v33 = vld [vmem:[%s9307_s7 + $0x890] sm:$0xff]  ;;  %v8373_v43 = vld [vmem:[%s9309_s8 + $0x2b4] sm:$0xf0] }
 0x29e   : > { %5676 = vmatpush.bf16.msra.mxu2 %v8704_v33  ;;  %5648 = vmatpush.bf16.msra.mxu1 %v8696_v61 }
 0x29f   : > { %v9874_v45 = vadd.f32 %v5272_v27, %v5245_v42  ;;  %v5220_v48 = vadd.f32 %v5219_v44, %v5192_v41  ;;  %5414 = vmatmul.bf16.gmra.mxu0 %v2199_v36  ;;  %v8712_v27 = vld [vmem:[%s9307_s7 + $0x8d0] sm:$0xff]  ;;  %v6483_v42 = vld [vmem:[%s9309_s8 + $0x1f8] sm:$0xf]  ;;  %v8349_v44 = vld [vmem:[%s9309_s8 + $0x1fc] sm:$0xf]  ;;  %v6476_v41 = vor.u32 %v8372_v31, %v6475_v29 }
 0x2a0   : > { %5442 = vmatmul.bf16.gmra.mxu1 %v2200_v37  ;;  %v8348_v36 = vld [vmem:[%s9309_s8 + $0x1f4] sm:$0xf]  ;;  %5704 = vmatpush.bf16.msra.mxu3 %v8712_v27  ;;  %v6484_v52 = vor.u32 %v8373_v43, %v6483_v42 }
 0x2a1   : > { %5470 = vmatmul.bf16.gmra.mxu2 %v2201_v30  ;;  %v6477_v37 = vld [vmem:[%s9309_s8 + $0x2b0] sm:$0xf0]  ;;  %v6485_v30 = vld [vmem:[%s9309_s8 + $0x2b8] sm:$0xf0] }
 0x2a2   : > { %5498 = vmatmul.bf16.gmra.mxu3 %v2202_v34  ;;  %v6480_v39 = vor.u32 %v8348_v36, %v6477_v37  ;;  %5677 = vmatpush.bf16.msra.mxu2 %v8703_v62  ;;  %v749_v42 = vld [vmem:[%s9309_s8 + $0x4f0] sm:$0x11] }
 0x2a3   : > { %5649 = vmatpush.bf16.msra.mxu1 %v8695_v57  ;;  %v8739_v57 = vld [vmem:[%s9307_s7 + $0x9a8] sm:$0xff] }
 0x2a4   : > { %v5247_v40 = vpop.f32.mrf.mxu2  ;;  %v5193_v54 = vpop.f32.mrf.mxu0  ;;  %5705 = vmatpush.bf16.msra.mxu3 %v8711_v50 }
 0x2a5   : > { %v5275_v53 = vpop.f32.mrf.mxu3  ;;  %v5248_v47 = vadd.f32 %v5247_v40, %v5220_v48  ;;  %v5221_v55 = vpop.f32.mrf.mxu1  ;;  %v6488_v40 = vor.u32 %v8349_v44, %v6485_v30  ;;  %v8688_v54 = vld [vmem:[%s9307_s7 + $0x810] sm:$0xff]  ;;  %v750_v44 = vld [vmem:[%s9309_s8 + $0x4f8] sm:$0x11] }
 0x2a6   : > { %5620 = vmatpush.bf16.msra.mxu0 %v8688_v54  ;;  %5678 = vmatpush.bf16.msra.mxu2 %v8702_v5  ;;  %v8747_v5 = vld [vmem:[%s9307_s7 + $0x9e8] sm:$0xff] }
 0x2a7   : > { %v9880_v58 = vadd.f32 %v5275_v53, %v5248_v47 }
 0x2aa   : > { %5621 = vmatpush.bf16.msra.mxu0 %v8687_v4  ;;  %v8732_v4 = vld [vmem:[%s9307_s7 + $0x970] sm:$0xff] }
 0x2ac   : > { %v5249_v6 = vpop.f32.mrf.mxu2  ;;  %v5288_v11 = vpop.f32.mrf.mxu0 }
 0x2ad   : > { %v5277_v0 = vpop.f32.mrf.mxu3  ;;  %v5316_v12 = vpop.f32.mrf.mxu1  ;;  %v5289_v59 = vadd.f32 %v5288_v11, %v9821_v10  ;;  %v8396_v11 = vld [vmem:[%s9309_s8 + $0x374] sm:$0xf] }
 0x2ae   : > { %v6667_v0 = vld [vmem:[%s9309_s8 + $0x370] sm:$0xf]  ;;  %5622 = vmatpush.bf16.msra.mxu0 %v8686_v24  ;;  %v8327_v24 = vld [vmem:[%s9309_s8 + $0x144] sm:$0xf0] }
 0x2af   : > { %v5317_v9 = vadd.f32 %v5316_v12, %v5289_v59  ;;  %5511 = vmatmul.bf16.vlgmr.msrb.gmra.mxu0 %v6284_v8  ;;  %v8420_v8 = vld [vmem:[%s9309_s8 + $0x42c] sm:$0xf0]  ;;  %v6669_v12 = vld [vmem:[%s9309_s8 + $0x430] sm:$0xf0]  ;;  %v8397_v59 = vld [vmem:[%s9309_s8 + $0x37c] sm:$0xf] }
 0x2b0   : > { %5539 = vmatmul.bf16.vlgmr.msrb.gmra.mxu1 %v6288_v7  ;;  %v8710_v7 = vld [vmem:[%s9307_s7 + $0x8c0] sm:$0xff]  ;;  %v6668_v18 = vor.u32 %v8420_v8, %v6667_v0  ;;  %v6672_v20 = vor.u32 %v8396_v11, %v6669_v12 }
 0x2b1   : > { %5567 = vmatmul.bf16.vlgmr.msrb.gmra.mxu2 %v6292_v15  ;;  %v6675_v15 = vld [vmem:[%s9309_s8 + $0x378] sm:$0xf]  ;;  %5706 = vmatpush.bf16.msra.mxu3 %v8710_v7  ;;  %v6299_v12 = vld [vmem:[%s9309_s8 + $0x80] sm:$0xf] }
 0x2b2   : > { %5595 = vmatmul.bf16.vlgmr.msrb.gmra.mxu3 %v6296_v3  ;;  %v8421_v3 = vld [vmem:[%s9309_s8 + $0x434] sm:$0xf0] }
 0x2b4   : > { %v5344_v10 = vpop.f32.mrf.mxu2  ;;  %v5290_v17 = vpop.f32.mrf.mxu0 }
 0x2b5   : > { %v5372_v25 = vpop.f32.mrf.mxu3  ;;  %v5345_v26 = vadd.f32 %v5344_v10, %v5317_v9  ;;  %v5318_v19 = vpop.f32.mrf.mxu1  ;;  %v5291_v23 = vadd.f32 %v5290_v17, %v9836_v35  ;;  %v8694_v10 = vld [vmem:[%s9307_s7 + $0x840] sm:$0xff]  ;;  %5811 = vmatpush.bf16.msrb.mxu3 %v8749_v22 }
 0x2b6   : > { %5650 = vmatpush.bf16.msra.mxu1 %v8694_v10  ;;  %v8303_v10 = vld [vmem:[%s9309_s8 + $0x8c] sm:$0xf] }
 0x2b7   : > { %v9900_v28 = vadd.f32 %v5372_v25, %v5345_v26  ;;  %v5319_v32 = vadd.f32 %v5318_v19, %v5291_v23  ;;  %v6676_v19 = vor.u32 %v8421_v3, %v6675_v15  ;;  %v8326_v15 = vld [vmem:[%s9309_s8 + $0x13c] sm:$0xf0]  ;;  %v8723_v3 = vld [vmem:[%s9307_s7 + $0x928] sm:$0xff] }
 0x2bc   : > { %v5346_v35 = vpop.f32.mrf.mxu2  ;;  %v5293_v51 = vpop.f32.mrf.mxu0 }
 0x2bd   : > { %v5374_v34 = vpop.f32.mrf.mxu3  ;;  %v5347_v48 = vadd.f32 %v5346_v35, %v5319_v32  ;;  %v5321_v38 = vpop.f32.mrf.mxu1  ;;  %v5294_v53 = vadd.f32 %v5293_v51, %v9843_v49  ;;  %v8741_v32 = vld [vmem:[%s9307_s7 + $0x9b8] sm:$0xff]  ;;  %v8740_v51 = vld [vmem:[%s9307_s7 + $0x9b0] sm:$0xff] }
 0x2be   : > { %5783 = vmatpush.bf16.msrb.mxu2 %v8741_v32  ;;  %v8725_v35 = vld [vmem:[%s9307_s7 + $0x938] sm:$0xff] }
 0x2bf   : > { %v9915_v47 = vadd.f32 %v5374_v34, %v5347_v48  ;;  %v5322_v55 = vadd.f32 %v5321_v38, %v5294_v53  ;;  %5516 = vmatmul.bf16.gmra.mxu0 %v6476_v41  ;;  %v2011_v41 = vunpack.c.l.b16 %v749_v42  ;;  %v8733_v48 = vld [vmem:[%s9307_s7 + $0x978] sm:$0xff]  ;;  %v8748_v38 = vld [vmem:[%s9307_s7 + $0x9f0] sm:$0xff] }
 0x2c0   : > { %5544 = vmatmul.bf16.gmra.mxu1 %v6480_v39  ;;  %v2012_v39 = vunpack.c.h.b16 %v749_v42  ;;  %5727 = vmatpush.bf16.msrb.mxu0 %v8725_v35  ;;  %v8745_v42 = vld [vmem:[%s9307_s7 + $0x9d8] sm:$0xff] }
 0x2c1   : > { %5572 = vmatmul.bf16.gmra.mxu2 %v6484_v52  ;;  %v2013_v52 = vunpack.c.l.b16 %v750_v44  ;;  %5755 = vmatpush.bf16.msrb.mxu1 %v8733_v48  ;;  %v2203_v54 = vpack.c.b16 %v2011_v41, %v2011_v41  ;;  %v6491_v48 = vld [vmem:[%s9309_s8 + $0x200] sm:$0xf] }
 0x2c2   : > { %5600 = vmatmul.bf16.gmra.mxu3 %v6488_v40  ;;  %v2014_v40 = vunpack.c.h.b16 %v750_v44  ;;  %5784 = vmatpush.bf16.msrb.mxu2 %v8740_v51  ;;  %v8374_v51 = vld [vmem:[%s9309_s8 + $0x2bc] sm:$0xf0] }
 0x2c3   : > { %5812 = vmatpush.bf16.msrb.mxu3 %v8748_v38  ;;  %v8721_v38 = vld [vmem:[%s9307_s7 + $0x918] sm:$0xff] }
 0x2c4   : > { %v5349_v49 = vpop.f32.mrf.mxu2  ;;  %v5295_v63 = vpop.f32.mrf.mxu0 }
 0x2c5   : > { %v5377_v46 = vpop.f32.mrf.mxu3  ;;  %v5350_v60 = vadd.f32 %v5349_v49, %v5322_v55  ;;  %v5323_v56 = vpop.f32.mrf.mxu1  ;;  %v5296_v1 = vadd.f32 %v5295_v63, %v9860_v14  ;;  %v6677_v14 = vld [vmem:[%s9309_s8 + $0x438] sm:$0xf0]  ;;  %v2204_v55 = vpack.c.b16 %v2012_v39, %v2012_v39  ;;  %v2205_v49 = vpack.c.b16 %v2013_v52, %v2013_v52  ;;  %5756 = vmatpush.bf16.msrb.mxu1 %v8732_v4 }
 0x2c6   : > { %v6680_v23 = vor.u32 %v8397_v59, %v6677_v14  ;;  %5785 = vmatpush.bf16.msrb.mxu2 %v8739_v57  ;;  %v8731_v59 = vld [vmem:[%s9307_s7 + $0x968] sm:$0xff]  ;;  %v8738_v14 = vld [vmem:[%s9307_s7 + $0x9a0] sm:$0xff] }
 0x2c7   : > { %v9922_v2 = vadd.f32 %v5377_v46, %v5350_v60  ;;  %v5324_v6 = vadd.f32 %v5323_v56, %v5296_v1  ;;  %v2206_v46 = vpack.c.b16 %v2014_v40, %v2014_v40  ;;  %v8724_v56 = vld [vmem:[%s9307_s7 + $0x930] sm:$0xff]  ;;  %5813 = vmatpush.bf16.msrb.mxu3 %v8747_v5  ;;  %v8729_v40 = vld [vmem:[%s9307_s7 + $0x958] sm:$0xff] }
 0x2c8   : > { %5728 = vmatpush.bf16.msrb.mxu0 %v8724_v56 }
 0x2c9   : > { %5757 = vmatpush.bf16.msrb.mxu1 %v8731_v59 }
 0x2ca   : > { %5786 = vmatpush.bf16.msrb.mxu2 %v8738_v14 }
 0x2cc   : > { %v5351_v16 = vpop.f32.mrf.mxu2  ;;  %v5298_v26 = vpop.f32.mrf.mxu0  ;;  %5729 = vmatpush.bf16.msrb.mxu0 %v8723_v3  ;;  %v8743_v3 = vld [vmem:[%s9307_s7 + $0x9c8] sm:$0xff] }
 0x2cd   : > { %v5379_v9 = vpop.f32.mrf.mxu3  ;;  %v5352_v25 = vadd.f32 %v5351_v16, %v5324_v6  ;;  %v5326_v17 = vpop.f32.mrf.mxu1  ;;  %v5299_v29 = vadd.f32 %v5298_v26, %v9867_v13  ;;  %v8746_v16 = vld [vmem:[%s9307_s7 + $0x9e0] sm:$0xff] }
 0x2ce   : > { %5814 = vmatpush.bf16.msrb.mxu3 %v8746_v16 }
 0x2cf   : > { %v9939_v31 = vadd.f32 %v5379_v9, %v5352_v25  ;;  %v5327_v21 = vadd.f32 %v5326_v17, %v5299_v29  ;;  %5521 = vmatmul.bf16.gmra.mxu0 %v6668_v18  ;;  %v8302_v9 = vld [vmem:[%s9309_s8 + $0x84] sm:$0xf]  ;;  %v6309_v25 = vld [vmem:[%s9309_s8 + $0x148] sm:$0xf0] }
 0x2d0   : > { %5549 = vmatmul.bf16.gmra.mxu1 %v6672_v20  ;;  %v6301_v18 = vld [vmem:[%s9309_s8 + $0x140] sm:$0xf0]  ;;  %v6307_v20 = vld [vmem:[%s9309_s8 + $0x88] sm:$0xf]  ;;  %v6312_v22 = vor.u32 %v8303_v10, %v6309_v25 }
 0x2d1   : > { %5577 = vmatmul.bf16.gmra.mxu2 %v6676_v19  ;;  %v6300_v19 = vor.u32 %v8326_v15, %v6299_v12  ;;  %v6308_v32 = vor.u32 %v8327_v24, %v6307_v20  ;;  %v8728_v12 = vld [vmem:[%s9307_s7 + $0x950] sm:$0xff]  ;;  %v8735_v15 = vld [vmem:[%s9307_s7 + $0x988] sm:$0xff]  ;;  %v8734_v25 = vld [vmem:[%s9307_s7 + $0x980] sm:$0xff] }
 0x2d2   : > { %5605 = vmatmul.bf16.gmra.mxu3 %v6680_v23  ;;  %v6304_v23 = vor.u32 %v8302_v9, %v6301_v18  ;;  %v8719_v24 = vld [vmem:[%s9307_s7 + $0x908] sm:$0xff] }
 0x2d3   : > { %5815 = vmatpush.bf16.msrb.mxu3 %v8745_v42  ;;  %v8727_v10 = vld [vmem:[%s9307_s7 + $0x948] sm:$0xff]  ;;  %v8718_v42 = vld [vmem:[%s9307_s7 + $0x900] sm:$0xff] }
 0x2d4   : > { %v5354_v13 = vpop.f32.mrf.mxu2  ;;  %v5300_v36 = vpop.f32.mrf.mxu0 }
 0x2d5   : > { %v5382_v33 = vpop.f32.mrf.mxu3  ;;  %v5355_v27 = vadd.f32 %v5354_v13, %v5327_v21  ;;  %v5328_v37 = vpop.f32.mrf.mxu1  ;;  %v5301_v43 = vadd.f32 %v5300_v36, %v9874_v45  ;;  %v8730_v36 = vld [vmem:[%s9307_s7 + $0x960] sm:$0xff] }
 0x2d6   : > { %5758 = vmatpush.bf16.msrb.mxu1 %v8730_v36 }
 0x2d7   : > { %v9946_v30 = vadd.f32 %v5382_v33, %v5355_v27  ;;  %v5329_v34 = vadd.f32 %v5328_v37, %v5301_v43  ;;  %v8722_v33 = vld [vmem:[%s9307_s7 + $0x920] sm:$0xff]  ;;  %v8737_v37 = vld [vmem:[%s9307_s7 + $0x998] sm:$0xff] }
 0x2d8   : > { %5730 = vmatpush.bf16.msrb.mxu0 %v8722_v33  ;;  %5787 = vmatpush.bf16.msrb.mxu2 %v8737_v37 }
 0x2da   : > { %5759 = vmatpush.bf16.msrb.mxu1 %v8729_v40  ;;  %v8781_v40 = vld [vmem:[%s9307_s7 + $0xaf8] sm:$0xff] }
 0x2dc   : > { %v5356_v53 = vpop.f32.mrf.mxu2  ;;  %v5303_v62 = vpop.f32.mrf.mxu0  ;;  %5731 = vmatpush.bf16.msrb.mxu0 %v8721_v38 }
 0x2dd   : > { %v5384_v45 = vpop.f32.mrf.mxu3  ;;  %v5357_v61 = vadd.f32 %v5356_v53, %v5329_v34  ;;  %v5331_v50 = vpop.f32.mrf.mxu1  ;;  %v5304_v60 = vadd.f32 %v5303_v62, %v9880_v58  ;;  %v8736_v53 = vld [vmem:[%s9307_s7 + $0x990] sm:$0xff]  ;;  %v8375_v62 = vld [vmem:[%s9309_s8 + $0x2c4] sm:$0xf0] }
 0x2de   : > { %5788 = vmatpush.bf16.msrb.mxu2 %v8736_v53  ;;  %5760 = vmatpush.bf16.msrb.mxu1 %v8728_v12 }
 0x2df   : > { %v9953_v63 = vadd.f32 %v5384_v45, %v5357_v61  ;;  %v5332_v1 = vadd.f32 %v5331_v50, %v5304_v60  ;;  %5526 = vmatmul.bf16.gmra.mxu0 %v2203_v54  ;;  %v8744_v45 = vld [vmem:[%s9307_s7 + $0x9d0] sm:$0xff]  ;;  %v8350_v54 = vld [vmem:[%s9309_s8 + $0x204] sm:$0xf]  ;;  %v6499_v61 = vld [vmem:[%s9309_s8 + $0x208] sm:$0xf]  ;;  %v6492_v60 = vor.u32 %v8374_v51, %v6491_v48 }
 0x2e0   : > { %5554 = vmatmul.bf16.gmra.mxu1 %v2204_v55  ;;  %v6493_v55 = vld [vmem:[%s9309_s8 + $0x2c0] sm:$0xf0]  ;;  %v8351_v50 = vld [vmem:[%s9309_s8 + $0x20c] sm:$0xf]  ;;  %5816 = vmatpush.bf16.msrb.mxu3 %v8744_v45  ;;  %v6500_v5 = vor.u32 %v8375_v62, %v6499_v61 }
 0x2e1   : > { %5582 = vmatmul.bf16.gmra.mxu2 %v2205_v49  ;;  %v6501_v49 = vld [vmem:[%s9309_s8 + $0x2c8] sm:$0xf0]  ;;  %v6496_v56 = vor.u32 %v8350_v54, %v6493_v55  ;;  %v751_v61 = vld [vmem:[%s9309_s8 + $0x500] sm:$0x11] }
 0x2e2   : > { %5610 = vmatmul.bf16.gmra.mxu3 %v2206_v46  ;;  %5789 = vmatpush.bf16.msrb.mxu2 %v8735_v15 }
 0x2e3   : > { %5761 = vmatpush.bf16.msrb.mxu1 %v8727_v10  ;;  %v8771_v10 = vld [vmem:[%s9307_s7 + $0xaa8] sm:$0xff] }
 0x2e4   : > { %v5359_v58 = vpop.f32.mrf.mxu2  ;;  %v5305_v8 = vpop.f32.mrf.mxu0  ;;  %5817 = vmatpush.bf16.msrb.mxu3 %v8743_v3 }
 0x2e5   : > { %v5387_v6 = vpop.f32.mrf.mxu3  ;;  %v5360_v0 = vadd.f32 %v5359_v58, %v5332_v1  ;;  %v5333_v7 = vpop.f32.mrf.mxu1  ;;  %v6504_v58 = vor.u32 %v8351_v50, %v6501_v49  ;;  %v8720_v8 = vld [vmem:[%s9307_s7 + $0x910] sm:$0xff]  ;;  %v752_v50 = vld [vmem:[%s9309_s8 + $0x508] sm:$0x11] }
 0x2e6   : > { %5732 = vmatpush.bf16.msrb.mxu0 %v8720_v8  ;;  %5790 = vmatpush.bf16.msrb.mxu2 %v8734_v25  ;;  %v8779_v25 = vld [vmem:[%s9307_s7 + $0xae8] sm:$0xff] }
 0x2e7   : > { %v9959_v11 = vadd.f32 %v5387_v6, %v5360_v0 }
 0x2ea   : > { %5733 = vmatpush.bf16.msrb.mxu0 %v8719_v24  ;;  %v8764_v24 = vld [vmem:[%s9307_s7 + $0xa70] sm:$0xff] }
 0x2ec   : > { %v5361_v26 = vpop.f32.mrf.mxu2  ;;  %v5400_v29 = vpop.f32.mrf.mxu0 }
 0x2ed   : > { %v5389_v17 = vpop.f32.mrf.mxu3  ;;  %v5428_v21 = vpop.f32.mrf.mxu1  ;;  %v5401_v13 = vadd.f32 %v5400_v29, %v9900_v28  ;;  %v8398_v29 = vld [vmem:[%s9309_s8 + $0x384] sm:$0xf] }
 0x2ee   : > { %v6683_v17 = vld [vmem:[%s9309_s8 + $0x380] sm:$0xf]  ;;  %5734 = vmatpush.bf16.msrb.mxu0 %v8718_v42  ;;  %v8329_v42 = vld [vmem:[%s9309_s8 + $0x154] sm:$0xf0] }
 0x2ef   : > { %v5429_v27 = vadd.f32 %v5428_v21, %v5401_v13  ;;  %5623 = vmatmul.bf16.vlgmr.msra.gmra.mxu0 %v6300_v19  ;;  %v8422_v19 = vld [vmem:[%s9309_s8 + $0x43c] sm:$0xf0]  ;;  %v6685_v21 = vld [vmem:[%s9309_s8 + $0x440] sm:$0xf0]  ;;  %v8399_v13 = vld [vmem:[%s9309_s8 + $0x38c] sm:$0xf] }
 0x2f0   : > { %5651 = vmatmul.bf16.vlgmr.msra.gmra.mxu1 %v6304_v23  ;;  %v8742_v23 = vld [vmem:[%s9307_s7 + $0x9c0] sm:$0xff]  ;;  %v6684_v36 = vor.u32 %v8422_v19, %v6683_v17  ;;  %v6688_v37 = vor.u32 %v8398_v29, %v6685_v21  ;;  %v6315_v21 = vld [vmem:[%s9309_s8 + $0x90] sm:$0xf] }
 0x2f1   : > { %5679 = vmatmul.bf16.vlgmr.msra.gmra.mxu2 %v6308_v32  ;;  %v6691_v32 = vld [vmem:[%s9309_s8 + $0x388] sm:$0xf]  ;;  %5818 = vmatpush.bf16.msrb.mxu3 %v8742_v23 }
 0x2f2   : > { %5707 = vmatmul.bf16.vlgmr.msra.gmra.mxu3 %v6312_v22  ;;  %v8423_v22 = vld [vmem:[%s9309_s8 + $0x444] sm:$0xf0] }
 0x2f4   : > { %v5456_v28 = vpop.f32.mrf.mxu2  ;;  %v5402_v35 = vpop.f32.mrf.mxu0 }
 0x2f5   : > { %v5484_v43 = vpop.f32.mrf.mxu3  ;;  %v5457_v44 = vadd.f32 %v5456_v28, %v5429_v27  ;;  %v5430_v34 = vpop.f32.mrf.mxu1  ;;  %v5403_v41 = vadd.f32 %v5402_v35, %v9915_v47  ;;  %v8726_v28 = vld [vmem:[%s9307_s7 + $0x940] sm:$0xff]  ;;  %5923 = vmatpush.bf16.msra.mxu3 %v8781_v40 }
 0x2f6   : > { %5762 = vmatpush.bf16.msrb.mxu1 %v8726_v28  ;;  %v8305_v28 = vld [vmem:[%s9309_s8 + $0x9c] sm:$0xf] }
 0x2f7   : > { %v9979_v39 = vadd.f32 %v5484_v43, %v5457_v44  ;;  %v5431_v52 = vadd.f32 %v5430_v34, %v5403_v41  ;;  %v6692_v34 = vor.u32 %v8423_v22, %v6691_v32  ;;  %v8328_v32 = vld [vmem:[%s9309_s8 + $0x14c] sm:$0xf0]  ;;  %v8755_v22 = vld [vmem:[%s9307_s7 + $0xa28] sm:$0xff] }
 0x2fc   : > { %v5458_v47 = vpop.f32.mrf.mxu2  ;;  %v5405_v4 = vpop.f32.mrf.mxu0 }
 0x2fd   : > { %v5486_v46 = vpop.f32.mrf.mxu3  ;;  %v5459_v1 = vadd.f32 %v5458_v47, %v5431_v52  ;;  %v5433_v57 = vpop.f32.mrf.mxu1  ;;  %v5406_v6 = vadd.f32 %v5405_v4, %v9922_v2  ;;  %v8773_v52 = vld [vmem:[%s9307_s7 + $0xab8] sm:$0xff]  ;;  %v8772_v4 = vld [vmem:[%s9307_s7 + $0xab0] sm:$0xff] }
 0x2fe   : > { %5895 = vmatpush.bf16.msra.mxu2 %v8773_v52  ;;  %v8757_v47 = vld [vmem:[%s9307_s7 + $0xa38] sm:$0xff] }
 0x2ff   : > { %v9994_v0 = vadd.f32 %v5486_v46, %v5459_v1  ;;  %v5434_v7 = vadd.f32 %v5433_v57, %v5406_v6  ;;  %5628 = vmatmul.bf16.gmra.mxu0 %v6492_v60  ;;  %v2015_v60 = vunpack.c.l.b16 %v751_v61  ;;  %v8765_v1 = vld [vmem:[%s9307_s7 + $0xa78] sm:$0xff]  ;;  %v8780_v57 = vld [vmem:[%s9307_s7 + $0xaf0] sm:$0xff] }
 0x300   : > { %5656 = vmatmul.bf16.gmra.mxu1 %v6496_v56  ;;  %v2016_v56 = vunpack.c.h.b16 %v751_v61  ;;  %5839 = vmatpush.bf16.msra.mxu0 %v8757_v47  ;;  %v8777_v61 = vld [vmem:[%s9307_s7 + $0xad8] sm:$0xff] }
 0x301   : > { %5684 = vmatmul.bf16.gmra.mxu2 %v6500_v5  ;;  %v2017_v5 = vunpack.c.l.b16 %v752_v50  ;;  %5867 = vmatpush.bf16.msra.mxu1 %v8765_v1  ;;  %v2207_v8 = vpack.c.b16 %v2015_v60, %v2015_v60  ;;  %v6507_v1 = vld [vmem:[%s9309_s8 + $0x210] sm:$0xf] }
 0x302   : > { %5712 = vmatmul.bf16.gmra.mxu3 %v6504_v58  ;;  %v2018_v58 = vunpack.c.h.b16 %v752_v50  ;;  %5896 = vmatpush.bf16.msra.mxu2 %v8772_v4  ;;  %v8376_v4 = vld [vmem:[%s9309_s8 + $0x2cc] sm:$0xf0] }
 0x303   : > { %5924 = vmatpush.bf16.msra.mxu3 %v8780_v57  ;;  %v8753_v57 = vld [vmem:[%s9307_s7 + $0xa18] sm:$0xff] }
 0x304   : > { %v5461_v2 = vpop.f32.mrf.mxu2  ;;  %v5407_v16 = vpop.f32.mrf.mxu0 }
 0x305   : > { %v5489_v59 = vpop.f32.mrf.mxu3  ;;  %v5462_v14 = vadd.f32 %v5461_v2, %v5434_v7  ;;  %v5435_v9 = vpop.f32.mrf.mxu1  ;;  %v5408_v18 = vadd.f32 %v5407_v16, %v9939_v31  ;;  %v6693_v31 = vld [vmem:[%s9309_s8 + $0x448] sm:$0xf0]  ;;  %v2208_v7 = vpack.c.b16 %v2016_v56, %v2016_v56  ;;  %v2209_v2 = vpack.c.b16 %v2017_v5, %v2017_v5  ;;  %5868 = vmatpush.bf16.msra.mxu1 %v8764_v24 }
 0x306   : > { %v6696_v41 = vor.u32 %v8399_v13, %v6693_v31  ;;  %5897 = vmatpush.bf16.msra.mxu2 %v8771_v10  ;;  %v8763_v13 = vld [vmem:[%s9307_s7 + $0xa68] sm:$0xff]  ;;  %v8770_v31 = vld [vmem:[%s9307_s7 + $0xaa0] sm:$0xff] }
 0x307   : > { %v10001_v20 = vadd.f32 %v5489_v59, %v5462_v14  ;;  %v5436_v26 = vadd.f32 %v5435_v9, %v5408_v18  ;;  %v2210_v59 = vpack.c.b16 %v2018_v58, %v2018_v58  ;;  %v8756_v9 = vld [vmem:[%s9307_s7 + $0xa30] sm:$0xff]  ;;  %5925 = vmatpush.bf16.msra.mxu3 %v8779_v25  ;;  %v8761_v58 = vld [vmem:[%s9307_s7 + $0xa58] sm:$0xff] }
 0x308   : > { %5840 = vmatpush.bf16.msra.mxu0 %v8756_v9 }
 0x309   : > { %5869 = vmatpush.bf16.msra.mxu1 %v8763_v13 }
 0x30a   : > { %5898 = vmatpush.bf16.msra.mxu2 %v8770_v31 }
 0x30c   : > { %v5463_v33 = vpop.f32.mrf.mxu2  ;;  %v5410_v44 = vpop.f32.mrf.mxu0  ;;  %5841 = vmatpush.bf16.msra.mxu0 %v8755_v22  ;;  %v8775_v22 = vld [vmem:[%s9307_s7 + $0xac8] sm:$0xff] }
 0x30d   : > { %v5491_v27 = vpop.f32.mrf.mxu3  ;;  %v5464_v43 = vadd.f32 %v5463_v33, %v5436_v26  ;;  %v5438_v35 = vpop.f32.mrf.mxu1  ;;  %v5411_v48 = vadd.f32 %v5410_v44, %v9946_v30  ;;  %v8778_v33 = vld [vmem:[%s9307_s7 + $0xae0] sm:$0xff] }
 0x30e   : > { %5926 = vmatpush.bf16.msra.mxu3 %v8778_v33 }
 0x30f   : > { %v10018_v51 = vadd.f32 %v5491_v27, %v5464_v43  ;;  %v5439_v38 = vadd.f32 %v5438_v35, %v5411_v48  ;;  %5633 = vmatmul.bf16.gmra.mxu0 %v6684_v36  ;;  %v8304_v27 = vld [vmem:[%s9309_s8 + $0x94] sm:$0xf]  ;;  %v6325_v43 = vld [vmem:[%s9309_s8 + $0x158] sm:$0xf0] }
 0x310   : > { %5661 = vmatmul.bf16.gmra.mxu1 %v6688_v37  ;;  %v6317_v36 = vld [vmem:[%s9309_s8 + $0x150] sm:$0xf0]  ;;  %v6323_v37 = vld [vmem:[%s9309_s8 + $0x98] sm:$0xf]  ;;  %v6328_v40 = vor.u32 %v8305_v28, %v6325_v43  ;;  %v8759_v28 = vld [vmem:[%s9307_s7 + $0xa48] sm:$0xff] }
 0x311   : > { %5689 = vmatmul.bf16.gmra.mxu2 %v6692_v34  ;;  %v6316_v34 = vor.u32 %v8328_v32, %v6315_v21  ;;  %v6324_v52 = vor.u32 %v8329_v42, %v6323_v37  ;;  %v8760_v21 = vld [vmem:[%s9307_s7 + $0xa50] sm:$0xff]  ;;  %v8767_v32 = vld [vmem:[%s9307_s7 + $0xa88] sm:$0xff]  ;;  %v8766_v43 = vld [vmem:[%s9307_s7 + $0xa80] sm:$0xff] }
 0x312   : > { %5717 = vmatmul.bf16.gmra.mxu3 %v6696_v41  ;;  %v6320_v41 = vor.u32 %v8304_v27, %v6317_v36  ;;  %v8751_v42 = vld [vmem:[%s9307_s7 + $0xa08] sm:$0xff] }
 0x313   : > { %5927 = vmatpush.bf16.msra.mxu3 %v8777_v61  ;;  %v8750_v61 = vld [vmem:[%s9307_s7 + $0xa00] sm:$0xff] }
 0x314   : > { %v5466_v30 = vpop.f32.mrf.mxu2  ;;  %v5412_v54 = vpop.f32.mrf.mxu0 }
 0x315   : > { %v5494_v53 = vpop.f32.mrf.mxu3  ;;  %v5467_v45 = vadd.f32 %v5466_v30, %v5439_v38  ;;  %v5440_v55 = vpop.f32.mrf.mxu1  ;;  %v5413_v62 = vadd.f32 %v5412_v54, %v9953_v63  ;;  %v8762_v54 = vld [vmem:[%s9307_s7 + $0xa60] sm:$0xff] }
 0x316   : > { %5870 = vmatpush.bf16.msra.mxu1 %v8762_v54 }
 0x317   : > { %v10025_v49 = vadd.f32 %v5494_v53, %v5467_v45  ;;  %v5441_v46 = vadd.f32 %v5440_v55, %v5413_v62  ;;  %v8754_v53 = vld [vmem:[%s9307_s7 + $0xa20] sm:$0xff]  ;;  %v8769_v55 = vld [vmem:[%s9307_s7 + $0xa98] sm:$0xff] }
 0x318   : > { %5842 = vmatpush.bf16.msra.mxu0 %v8754_v53  ;;  %5899 = vmatpush.bf16.msra.mxu2 %v8769_v55 }
 0x31a   : > { %5871 = vmatpush.bf16.msra.mxu1 %v8761_v58  ;;  %v8813_v58 = vld [vmem:[%s9307_s7 + $0xbf8] sm:$0xff] }
 0x31c   : > { %v5468_v6 = vpop.f32.mrf.mxu2  ;;  %v5415_v15 = vpop.f32.mrf.mxu0  ;;  %5843 = vmatpush.bf16.msra.mxu0 %v8753_v57 }
 0x31d   : > { %v5496_v63 = vpop.f32.mrf.mxu3  ;;  %v5469_v12 = vadd.f32 %v5468_v6, %v5441_v46  ;;  %v5443_v3 = vpop.f32.mrf.mxu1  ;;  %v5416_v14 = vadd.f32 %v5415_v15, %v9959_v11  ;;  %v8768_v6 = vld [vmem:[%s9307_s7 + $0xa90] sm:$0xff]  ;;  %v8377_v15 = vld [vmem:[%s9309_s8 + $0x2d4] sm:$0xf0] }
 0x31e   : > { %5900 = vmatpush.bf16.msra.mxu2 %v8768_v6  ;;  %5872 = vmatpush.bf16.msra.mxu1 %v8760_v21 }
 0x31f   : > { %v10032_v16 = vadd.f32 %v5496_v63, %v5469_v12  ;;  %v5444_v18 = vadd.f32 %v5443_v3, %v5416_v14  ;;  %5638 = vmatmul.bf16.gmra.mxu0 %v2207_v8  ;;  %v8776_v63 = vld [vmem:[%s9307_s7 + $0xad0] sm:$0xff]  ;;  %v6515_v12 = vld [vmem:[%s9309_s8 + $0x218] sm:$0xf]  ;;  %v8353_v3 = vld [vmem:[%s9309_s8 + $0x21c] sm:$0xf]  ;;  %v6508_v14 = vor.u32 %v8376_v4, %v6507_v1 }
 0x320   : > { %5666 = vmatmul.bf16.gmra.mxu1 %v2208_v7  ;;  %v8352_v8 = vld [vmem:[%s9309_s8 + $0x214] sm:$0xf]  ;;  %5928 = vmatpush.bf16.msra.mxu3 %v8776_v63  ;;  %v6516_v25 = vor.u32 %v8377_v15, %v6515_v12 }
 0x321   : > { %5694 = vmatmul.bf16.gmra.mxu2 %v2209_v2  ;;  %v6509_v7 = vld [vmem:[%s9309_s8 + $0x2d0] sm:$0xf0]  ;;  %v6517_v2 = vld [vmem:[%s9309_s8 + $0x2d8] sm:$0xf0] }
 0x322   : > { %5722 = vmatmul.bf16.gmra.mxu3 %v2210_v59  ;;  %v6512_v9 = vor.u32 %v8352_v8, %v6509_v7  ;;  %5901 = vmatpush.bf16.msra.mxu2 %v8767_v32  ;;  %v753_v12 = vld [vmem:[%s9309_s8 + $0x510] sm:$0x11] }
 0x323   : > { %5873 = vmatpush.bf16.msra.mxu1 %v8759_v28  ;;  %v8803_v28 = vld [vmem:[%s9307_s7 + $0xba8] sm:$0xff] }
 0x324   : > { %v5471_v11 = vpop.f32.mrf.mxu2  ;;  %v5417_v19 = vpop.f32.mrf.mxu0  ;;  %5929 = vmatpush.bf16.msra.mxu3 %v8775_v22 }
 0x325   : > { %v5499_v26 = vpop.f32.mrf.mxu3  ;;  %v5472_v17 = vadd.f32 %v5471_v11, %v5444_v18  ;;  %v5445_v23 = vpop.f32.mrf.mxu1  ;;  %v6520_v11 = vor.u32 %v8353_v3, %v6517_v2  ;;  %v8752_v19 = vld [vmem:[%s9307_s7 + $0xa10] sm:$0xff]  ;;  %v754_v3 = vld [vmem:[%s9309_s8 + $0x518] sm:$0x11] }
 0x326   : > { %5844 = vmatpush.bf16.msra.mxu0 %v8752_v19  ;;  %5902 = vmatpush.bf16.msra.mxu2 %v8766_v43  ;;  %v8811_v43 = vld [vmem:[%s9307_s7 + $0xbe8] sm:$0xff] }
 0x327   : > { %v10038_v29 = vadd.f32 %v5499_v26, %v5472_v17 }
 0x32a   : > { %5845 = vmatpush.bf16.msra.mxu0 %v8751_v42  ;;  %v8796_v42 = vld [vmem:[%s9307_s7 + $0xb70] sm:$0xff] }
 0x32c   : > { %v5473_v44 = vpop.f32.mrf.mxu2  ;;  %v5512_v48 = vpop.f32.mrf.mxu0 }
 0x32d   : > { %v5501_v35 = vpop.f32.mrf.mxu3  ;;  %v5540_v38 = vpop.f32.mrf.mxu1  ;;  %v5513_v30 = vadd.f32 %v5512_v48, %v9979_v39  ;;  %v8400_v48 = vld [vmem:[%s9309_s8 + $0x394] sm:$0xf] }
 0x32e   : > { %v6699_v35 = vld [vmem:[%s9309_s8 + $0x390] sm:$0xf]  ;;  %5846 = vmatpush.bf16.msra.mxu0 %v8750_v61  ;;  %v8331_v61 = vld [vmem:[%s9309_s8 + $0x164] sm:$0xf0] }
 0x32f   : > { %v5541_v45 = vadd.f32 %v5540_v38, %v5513_v30  ;;  %5735 = vmatmul.bf16.vlgmr.msrb.gmra.mxu0 %v6316_v34  ;;  %v8424_v34 = vld [vmem:[%s9309_s8 + $0x44c] sm:$0xf0]  ;;  %v6701_v38 = vld [vmem:[%s9309_s8 + $0x450] sm:$0xf0]  ;;  %v8401_v30 = vld [vmem:[%s9309_s8 + $0x39c] sm:$0xf] }
 0x330   : > { %5763 = vmatmul.bf16.vlgmr.msrb.gmra.mxu1 %v6320_v41  ;;  %v8774_v41 = vld [vmem:[%s9307_s7 + $0xac0] sm:$0xff]  ;;  %v6700_v54 = vor.u32 %v8424_v34, %v6699_v35  ;;  %v6704_v55 = vor.u32 %v8400_v48, %v6701_v38 }
 0x331   : > { %5791 = vmatmul.bf16.vlgmr.msrb.gmra.mxu2 %v6324_v52  ;;  %v6707_v52 = vld [vmem:[%s9309_s8 + $0x398] sm:$0xf]  ;;  %5930 = vmatpush.bf16.msra.mxu3 %v8774_v41  ;;  %v6331_v38 = vld [vmem:[%s9309_s8 + $0xa0] sm:$0xf] }
 0x332   : > { %5819 = vmatmul.bf16.vlgmr.msrb.gmra.mxu3 %v6328_v40  ;;  %v8425_v40 = vld [vmem:[%s9309_s8 + $0x454] sm:$0xf0] }
 0x334   : > { %v5568_v39 = vpop.f32.mrf.mxu2  ;;  %v5514_v47 = vpop.f32.mrf.mxu0 }
 0x335   : > { %v5596_v62 = vpop.f32.mrf.mxu3  ;;  %v5569_v50 = vadd.f32 %v5568_v39, %v5541_v45  ;;  %v5542_v46 = vpop.f32.mrf.mxu1  ;;  %v5515_v60 = vadd.f32 %v5514_v47, %v9994_v0  ;;  %v8758_v39 = vld [vmem:[%s9307_s7 + $0xa40] sm:$0xff]  ;;  %6035 = vmatpush.bf16.msrb.mxu3 %v8813_v58 }
 0x336   : > { %5874 = vmatpush.bf16.msra.mxu1 %v8758_v39  ;;  %v8307_v39 = vld [vmem:[%s9309_s8 + $0xac] sm:$0xf] }
 0x337   : > { %v10058_v56 = vadd.f32 %v5596_v62, %v5569_v50  ;;  %v5543_v5 = vadd.f32 %v5542_v46, %v5515_v60  ;;  %v6708_v46 = vor.u32 %v8425_v40, %v6707_v52  ;;  %v8330_v52 = vld [vmem:[%s9309_s8 + $0x15c] sm:$0xf0]  ;;  %v8787_v40 = vld [vmem:[%s9307_s7 + $0xb28] sm:$0xff] }
 0x33c   : > { %v5570_v0 = vpop.f32.mrf.mxu2  ;;  %v5517_v24 = vpop.f32.mrf.mxu0 }
 0x33d   : > { %v5598_v59 = vpop.f32.mrf.mxu3  ;;  %v5571_v18 = vadd.f32 %v5570_v0, %v5543_v5  ;;  %v5545_v10 = vpop.f32.mrf.mxu1  ;;  %v5518_v26 = vadd.f32 %v5517_v24, %v10001_v20  ;;  %v8805_v5 = vld [vmem:[%s9307_s7 + $0xbb8] sm:$0xff]  ;;  %v8804_v24 = vld [vmem:[%s9307_s7 + $0xbb0] sm:$0xff] }
 0x33e   : > { %6007 = vmatpush.bf16.msrb.mxu2 %v8805_v5  ;;  %v8789_v0 = vld [vmem:[%s9307_s7 + $0xb38] sm:$0xff] }
 0x33f   : > { %v10073_v17 = vadd.f32 %v5598_v59, %v5571_v18  ;;  %v5546_v23 = vadd.f32 %v5545_v10, %v5518_v26  ;;  %5740 = vmatmul.bf16.gmra.mxu0 %v6508_v14  ;;  %v2019_v14 = vunpack.c.l.b16 %v753_v12  ;;  %v8797_v18 = vld [vmem:[%s9307_s7 + $0xb78] sm:$0xff]  ;;  %v8812_v10 = vld [vmem:[%s9307_s7 + $0xbf0] sm:$0xff] }
 0x340   : > { %5768 = vmatmul.bf16.gmra.mxu1 %v6512_v9  ;;  %v2020_v9 = vunpack.c.h.b16 %v753_v12  ;;  %5951 = vmatpush.bf16.msrb.mxu0 %v8789_v0  ;;  %v8809_v12 = vld [vmem:[%s9307_s7 + $0xbd8] sm:$0xff] }
 0x341   : > { %5796 = vmatmul.bf16.gmra.mxu2 %v6516_v25  ;;  %v2021_v25 = vunpack.c.l.b16 %v754_v3  ;;  %5979 = vmatpush.bf16.msrb.mxu1 %v8797_v18  ;;  %v2211_v19 = vpack.c.b16 %v2019_v14, %v2019_v14  ;;  %v6523_v18 = vld [vmem:[%s9309_s8 + $0x220] sm:$0xf] }
 0x342   : > { %5824 = vmatmul.bf16.gmra.mxu3 %v6520_v11  ;;  %v2022_v11 = vunpack.c.h.b16 %v754_v3  ;;  %6008 = vmatpush.bf16.msrb.mxu2 %v8804_v24  ;;  %v8378_v24 = vld [vmem:[%s9309_s8 + $0x2dc] sm:$0xf0] }
 0x343   : > { %6036 = vmatpush.bf16.msrb.mxu3 %v8812_v10  ;;  %v8785_v10 = vld [vmem:[%s9307_s7 + $0xb18] sm:$0xff] }
 0x344   : > { %v5573_v20 = vpop.f32.mrf.mxu2  ;;  %v5519_v33 = vpop.f32.mrf.mxu0 }
 0x345   : > { %v5601_v13 = vpop.f32.mrf.mxu3  ;;  %v5574_v31 = vadd.f32 %v5573_v20, %v5546_v23  ;;  %v5547_v27 = vpop.f32.mrf.mxu1  ;;  %v5520_v36 = vadd.f32 %v5519_v33, %v10018_v51  ;;  %v6709_v51 = vld [vmem:[%s9309_s8 + $0x458] sm:$0xf0]  ;;  %v2212_v23 = vpack.c.b16 %v2020_v9, %v2020_v9  ;;  %v2213_v20 = vpack.c.b16 %v2021_v25, %v2021_v25  ;;  %5980 = vmatpush.bf16.msrb.mxu1 %v8796_v42 }
 0x346   : > { %v6712_v60 = vor.u32 %v8401_v30, %v6709_v51  ;;  %6009 = vmatpush.bf16.msrb.mxu2 %v8803_v28  ;;  %v8795_v30 = vld [vmem:[%s9307_s7 + $0xb68] sm:$0xff]  ;;  %v8802_v51 = vld [vmem:[%s9307_s7 + $0xba0] sm:$0xff] }
 0x347   : > { %v10080_v37 = vadd.f32 %v5601_v13, %v5574_v31  ;;  %v5548_v44 = vadd.f32 %v5547_v27, %v5520_v36  ;;  %v2214_v13 = vpack.c.b16 %v2022_v11, %v2022_v11  ;;  %v8788_v27 = vld [vmem:[%s9307_s7 + $0xb30] sm:$0xff]  ;;  %6037 = vmatpush.bf16.msrb.mxu3 %v8811_v43  ;;  %v8793_v11 = vld [vmem:[%s9307_s7 + $0xb58] sm:$0xff] }
 0x348   : > { %5952 = vmatpush.bf16.msrb.mxu0 %v8788_v27 }
 0x349   : > { %5981 = vmatpush.bf16.msrb.mxu1 %v8795_v30 }
 0x34a   : > { %6010 = vmatpush.bf16.msrb.mxu2 %v8802_v51 }
 0x34c   : > { %v5575_v53 = vpop.f32.mrf.mxu2  ;;  %v5522_v50 = vpop.f32.mrf.mxu0  ;;  %5953 = vmatpush.bf16.msrb.mxu0 %v8787_v40  ;;  %v8807_v40 = vld [vmem:[%s9307_s7 + $0xbc8] sm:$0xff] }
 0x34d   : > { %v5603_v45 = vpop.f32.mrf.mxu3  ;;  %v5576_v62 = vadd.f32 %v5575_v53, %v5548_v44  ;;  %v5550_v47 = vpop.f32.mrf.mxu1  ;;  %v5523_v1 = vadd.f32 %v5522_v50, %v10025_v49  ;;  %v8810_v53 = vld [vmem:[%s9307_s7 + $0xbe0] sm:$0xff] }
 0x34e   : > { %6038 = vmatpush.bf16.msrb.mxu3 %v8810_v53 }
 0x34f   : > { %v10097_v4 = vadd.f32 %v5603_v45, %v5576_v62  ;;  %v5551_v57 = vadd.f32 %v5550_v47, %v5523_v1  ;;  %5745 = vmatmul.bf16.gmra.mxu0 %v6700_v54  ;;  %v8306_v45 = vld [vmem:[%s9309_s8 + $0xa4] sm:$0xf]  ;;  %v6341_v62 = vld [vmem:[%s9309_s8 + $0x168] sm:$0xf0] }
 0x350   : > { %5773 = vmatmul.bf16.gmra.mxu1 %v6704_v55  ;;  %v6333_v54 = vld [vmem:[%s9309_s8 + $0x160] sm:$0xf0]  ;;  %v6339_v55 = vld [vmem:[%s9309_s8 + $0xa8] sm:$0xf]  ;;  %v6344_v58 = vor.u32 %v8307_v39, %v6341_v62 }
 0x351   : > { %5801 = vmatmul.bf16.gmra.mxu2 %v6708_v46  ;;  %v6332_v46 = vor.u32 %v8330_v52, %v6331_v38  ;;  %v6340_v5 = vor.u32 %v8331_v61, %v6339_v55  ;;  %v8792_v38 = vld [vmem:[%s9307_s7 + $0xb50] sm:$0xff]  ;;  %v8799_v52 = vld [vmem:[%s9307_s7 + $0xb88] sm:$0xff]  ;;  %v8798_v62 = vld [vmem:[%s9307_s7 + $0xb80] sm:$0xff] }
 0x352   : > { %5829 = vmatmul.bf16.gmra.mxu3 %v6712_v60  ;;  %v6336_v60 = vor.u32 %v8306_v45, %v6333_v54  ;;  %v8783_v61 = vld [vmem:[%s9307_s7 + $0xb08] sm:$0xff] }
 0x353   : > { %6039 = vmatpush.bf16.msrb.mxu3 %v8809_v12  ;;  %v8791_v39 = vld [vmem:[%s9307_s7 + $0xb48] sm:$0xff]  ;;  %v8782_v12 = vld [vmem:[%s9307_s7 + $0xb00] sm:$0xff] }
 0x354   : > { %v5578_v49 = vpop.f32.mrf.mxu2  ;;  %v5524_v8 = vpop.f32.mrf.mxu0 }
 0x355   : > { %v5606_v6 = vpop.f32.mrf.mxu3  ;;  %v5579_v63 = vadd.f32 %v5578_v49, %v5551_v57  ;;  %v5552_v7 = vpop.f32.mrf.mxu1  ;;  %v5525_v15 = vadd.f32 %v5524_v8, %v10032_v16  ;;  %v8794_v8 = vld [vmem:[%s9307_s7 + $0xb60] sm:$0xff] }
 0x356   : > { %5982 = vmatpush.bf16.msrb.mxu1 %v8794_v8 }
 0x357   : > { %v10104_v2 = vadd.f32 %v5606_v6, %v5579_v63  ;;  %v5553_v59 = vadd.f32 %v5552_v7, %v5525_v15  ;;  %v8786_v6 = vld [vmem:[%s9307_s7 + $0xb20] sm:$0xff]  ;;  %v8801_v7 = vld [vmem:[%s9307_s7 + $0xb98] sm:$0xff] }
 0x358   : > { %5954 = vmatpush.bf16.msrb.mxu0 %v8786_v6  ;;  %6011 = vmatpush.bf16.msrb.mxu2 %v8801_v7 }
 0x35a   : > { %5983 = vmatpush.bf16.msrb.mxu1 %v8793_v11 }
 0x35c   : > { %v5580_v26 = vpop.f32.mrf.mxu2  ;;  %v5527_v32 = vpop.f32.mrf.mxu0  ;;  %5955 = vmatpush.bf16.msrb.mxu0 %v8785_v10 }
 0x35d   : > { %v5608_v16 = vpop.f32.mrf.mxu3  ;;  %v5581_v21 = vadd.f32 %v5580_v26, %v5553_v59  ;;  %v5555_v22 = vpop.f32.mrf.mxu1  ;;  %v5528_v31 = vadd.f32 %v5527_v32, %v10038_v29  ;;  %v8800_v26 = vld [vmem:[%s9307_s7 + $0xb90] sm:$0xff]  ;;  %v8379_v32 = vld [vmem:[%s9309_s8 + $0x2e4] sm:$0xf0] }
 0x35e   : > { %6012 = vmatpush.bf16.msrb.mxu2 %v8800_v26  ;;  %5984 = vmatpush.bf16.msrb.mxu1 %v8792_v38 }
 0x35f   : > { %v10111_v33 = vadd.f32 %v5608_v16, %v5581_v21  ;;  %v5556_v36 = vadd.f32 %v5555_v22, %v5528_v31  ;;  %5750 = vmatmul.bf16.gmra.mxu0 %v2211_v19  ;;  %v8808_v16 = vld [vmem:[%s9307_s7 + $0xbd0] sm:$0xff]  ;;  %v8354_v19 = vld [vmem:[%s9309_s8 + $0x224] sm:$0xf]  ;;  %v6531_v21 = vld [vmem:[%s9309_s8 + $0x228] sm:$0xf]  ;;  %v6524_v31 = vor.u32 %v8378_v24, %v6523_v18 }
 0x360   : > { %5778 = vmatmul.bf16.gmra.mxu1 %v2212_v23  ;;  %v6525_v23 = vld [vmem:[%s9309_s8 + $0x2e0] sm:$0xf0]  ;;  %v8355_v22 = vld [vmem:[%s9309_s8 + $0x22c] sm:$0xf]  ;;  %6040 = vmatpush.bf16.msrb.mxu3 %v8808_v16  ;;  %v6532_v43 = vor.u32 %v8379_v32, %v6531_v21 }
 0x361   : > { %5806 = vmatmul.bf16.gmra.mxu2 %v2213_v20  ;;  %v6533_v20 = vld [vmem:[%s9309_s8 + $0x2e8] sm:$0xf0]  ;;  %v6528_v27 = vor.u32 %v8354_v19, %v6525_v23  ;;  %v755_v23 = vld [vmem:[%s9309_s8 + $0x520] sm:$0x11] }
 0x362   : > { %5834 = vmatmul.bf16.gmra.mxu3 %v2214_v13  ;;  %6013 = vmatpush.bf16.msrb.mxu2 %v8799_v52  ;;  %v756_v32 = vld [vmem:[%s9309_s8 + $0x528] sm:$0x11] }
 0x363   : > { %5985 = vmatpush.bf16.msrb.mxu1 %v8791_v39  ;;  %v6349_v39 = vld [vmem:[%s9309_s8 + $0x170] sm:$0xf0] }
 0x364   : > { %v5583_v29 = vpop.f32.mrf.mxu2  ;;  %v5529_v34 = vpop.f32.mrf.mxu0  ;;  %6041 = vmatpush.bf16.msrb.mxu3 %v8807_v40 }
 0x365   : > { %v5611_v44 = vpop.f32.mrf.mxu3  ;;  %v5584_v35 = vadd.f32 %v5583_v29, %v5556_v36  ;;  %v5557_v41 = vpop.f32.mrf.mxu1  ;;  %v6536_v29 = vor.u32 %v8355_v22, %v6533_v20  ;;  %v8784_v34 = vld [vmem:[%s9307_s7 + $0xb10] sm:$0xff]  ;;  %v2023_v20 = vunpack.c.l.b16 %v755_v23 }
 0x366   : > { %5956 = vmatpush.bf16.msrb.mxu0 %v8784_v34  ;;  %6014 = vmatpush.bf16.msrb.mxu2 %v8798_v62  ;;  %v6355_v62 = vld [vmem:[%s9309_s8 + $0xb8] sm:$0xf] }
 0x367   : > { %v10117_v48 = vadd.f32 %v5611_v44, %v5584_v35 }
 0x36a   : > { %5957 = vmatpush.bf16.msrb.mxu0 %v8783_v61  ;;  %v8308_v61 = vld [vmem:[%s9309_s8 + $0xb4] sm:$0xf] }
 0x36c   : > { %v5585_v50 = vpop.f32.mrf.mxu2  ;;  %v5624_v1 = vpop.f32.mrf.mxu0 }
 0x36d   : > { %v5613_v47 = vpop.f32.mrf.mxu3  ;;  %v5652_v57 = vpop.f32.mrf.mxu1  ;;  %v5625_v49 = vadd.f32 %v5624_v1, %v10058_v56  ;;  %v8402_v1 = vld [vmem:[%s9309_s8 + $0x3a4] sm:$0xf] }
 0x36e   : > { %v6715_v47 = vld [vmem:[%s9309_s8 + $0x3a0] sm:$0xf]  ;;  %5958 = vmatpush.bf16.msrb.mxu0 %v8782_v12 }
 0x36f   : > { %v5653_v63 = vadd.f32 %v5652_v57, %v5625_v49  ;;  %5847 = vmatmul.bf16.vlgmr.msra.gmra.mxu0 %v6332_v46  ;;  %v8426_v46 = vld [vmem:[%s9309_s8 + $0x45c] sm:$0xf0]  ;;  %v6717_v57 = vld [vmem:[%s9309_s8 + $0x460] sm:$0xf0]  ;;  %v8403_v49 = vld [vmem:[%s9309_s8 + $0x3ac] sm:$0xf] }
 0x370   : > { %5875 = vmatmul.bf16.vlgmr.msra.gmra.mxu1 %v6336_v60  ;;  %v8806_v60 = vld [vmem:[%s9307_s7 + $0xbc0] sm:$0xff]  ;;  %v6716_v8 = vor.u32 %v8426_v46, %v6715_v47  ;;  %v6720_v7 = vor.u32 %v8402_v1, %v6717_v57  ;;  %v8309_v47 = vld [vmem:[%s9309_s8 + $0xbc] sm:$0xf] }
 0x371   : > { %5903 = vmatmul.bf16.vlgmr.msra.gmra.mxu2 %v6340_v5  ;;  %v6723_v5 = vld [vmem:[%s9309_s8 + $0x3a8] sm:$0xf]  ;;  %6042 = vmatpush.bf16.msrb.mxu3 %v8806_v60  ;;  %v6357_v46 = vld [vmem:[%s9309_s8 + $0x178] sm:$0xf0] }
 0x372   : > { %5931 = vmatmul.bf16.vlgmr.msra.gmra.mxu3 %v6344_v58  ;;  %v8427_v58 = vld [vmem:[%s9309_s8 + $0x464] sm:$0xf0] }
 0x374   : > { %v5680_v56 = vpop.f32.mrf.mxu2  ;;  %v5626_v0 = vpop.f32.mrf.mxu0 }
 0x375   : > { %v5708_v15 = vpop.f32.mrf.mxu3  ;;  %v5681_v3 = vadd.f32 %v5680_v56, %v5653_v63  ;;  %v5654_v59 = vpop.f32.mrf.mxu1  ;;  %v5627_v14 = vadd.f32 %v5626_v0, %v10073_v17  ;;  %v8790_v56 = vld [vmem:[%s9307_s7 + $0xb40] sm:$0xff] }
 0x376   : > { %5986 = vmatpush.bf16.msrb.mxu1 %v8790_v56 }
 0x377   : > { %v10137_v9 = vadd.f32 %v5708_v15, %v5681_v3  ;;  %v5655_v25 = vadd.f32 %v5654_v59, %v5627_v14  ;;  %v6724_v59 = vor.u32 %v8427_v58, %v6723_v5  ;;  %v6352_v5 = vor.u32 %v8308_v61, %v6349_v39 }
 0x37c   : > { %v5682_v17 = vpop.f32.mrf.mxu2  ;;  %v5629_v42 = vpop.f32.mrf.mxu0 }
 0x37d   : > { %v5710_v13 = vpop.f32.mrf.mxu3  ;;  %v5683_v36 = vadd.f32 %v5682_v17, %v5655_v25  ;;  %v5657_v28 = vpop.f32.mrf.mxu1  ;;  %v5630_v44 = vadd.f32 %v5629_v42, %v10080_v37  ;;  %v2024_v17 = vunpack.c.h.b16 %v755_v23  ;;  %v2215_v42 = vpack.c.b16 %v2023_v20, %v2023_v20 }
 0x37f   : > { %v10152_v35 = vadd.f32 %v5710_v13, %v5683_v36  ;;  %v5658_v41 = vadd.f32 %v5657_v28, %v5630_v44  ;;  %5852 = vmatmul.bf16.gmra.mxu0 %v6524_v31  ;;  %v2025_v13 = vunpack.c.l.b16 %v756_v32  ;;  %v2026_v31 = vunpack.c.h.b16 %v756_v32 }
 0x380   : > { %5880 = vmatmul.bf16.gmra.mxu1 %v6528_v27  ;;  %v2216_v28 = vpack.c.b16 %v2024_v17, %v2024_v17 }
 0x381   : > { %5908 = vmatmul.bf16.gmra.mxu2 %v6532_v43  ;;  %v2217_v34 = vpack.c.b16 %v2025_v13, %v2025_v13 }
 0x382   : > { %5936 = vmatmul.bf16.gmra.mxu3 %v6536_v29 }
 0x384   : > { %v5685_v37 = vpop.f32.mrf.mxu2  ;;  %v5631_v53 = vpop.f32.mrf.mxu0 }
 0x385   : > { %v5713_v30 = vpop.f32.mrf.mxu3  ;;  %v5686_v51 = vadd.f32 %v5685_v37, %v5658_v41  ;;  %v5659_v45 = vpop.f32.mrf.mxu1  ;;  %v5632_v54 = vadd.f32 %v5631_v53, %v10097_v4  ;;  %v6725_v4 = vld [vmem:[%s9309_s8 + $0x468] sm:$0xf0]  ;;  %v2218_v41 = vpack.c.b16 %v2026_v31, %v2026_v31 }
 0x386   : > { %v6728_v14 = vor.u32 %v8403_v49, %v6725_v4 }
 0x387   : > { %v10159_v55 = vadd.f32 %v5713_v30, %v5686_v51  ;;  %v5660_v50 = vadd.f32 %v5659_v45, %v5632_v54  ;;  %v8332_v54 = vld [vmem:[%s9309_s8 + $0x16c] sm:$0xf0] }
 0x38c   : > { %v5687_v6 = vpop.f32.mrf.mxu2  ;;  %v5634_v3 = vpop.f32.mrf.mxu0 }
 0x38d   : > { %v5715_v63 = vpop.f32.mrf.mxu3  ;;  %v5688_v15 = vadd.f32 %v5687_v6, %v5660_v50  ;;  %v5662_v0 = vpop.f32.mrf.mxu1  ;;  %v5635_v18 = vadd.f32 %v5634_v3, %v10104_v2  ;;  %v8333_v50 = vld [vmem:[%s9309_s8 + $0x174] sm:$0xf0]  ;;  %v6360_v6 = vor.u32 %v8309_v47, %v6357_v46 }
 0x38e   : > { %v6356_v4 = vor.u32 %v8333_v50, %v6355_v62 }
 0x38f   : > { %v10176_v24 = vadd.f32 %v5715_v63, %v5688_v15  ;;  %v5663_v10 = vadd.f32 %v5662_v0, %v5635_v18  ;;  %5857 = vmatmul.bf16.gmra.mxu0 %v6716_v8  ;;  %v8380_v18 = vld [vmem:[%s9309_s8 + $0x2ec] sm:$0xf0] }
 0x390   : > { %5885 = vmatmul.bf16.gmra.mxu1 %v6720_v7 }
 0x391   : > { %5913 = vmatmul.bf16.gmra.mxu2 %v6724_v59 }
 0x392   : > { %5941 = vmatmul.bf16.gmra.mxu3 %v6728_v14  ;;  %v6539_v14 = vld [vmem:[%s9309_s8 + $0x230] sm:$0xf] }
 0x393   : > { %v6540_v32 = vor.u32 %v8380_v18, %v6539_v14 }
 0x394   : > { %v5690_v25 = vpop.f32.mrf.mxu2  ;;  %v5636_v16 = vpop.f32.mrf.mxu0 }
 0x395   : > { %v5718_v11 = vpop.f32.mrf.mxu3  ;;  %v5691_v26 = vadd.f32 %v5690_v25, %v5663_v10  ;;  %v5664_v19 = vpop.f32.mrf.mxu1  ;;  %v5637_v21 = vadd.f32 %v5636_v16, %v10111_v33  ;;  %v8356_v10 = vld [vmem:[%s9309_s8 + $0x234] sm:$0xf]  ;;  %v8357_v16 = vld [vmem:[%s9309_s8 + $0x23c] sm:$0xf] }
 0x396   : > { %v6541_v25 = vld [vmem:[%s9309_s8 + $0x2f0] sm:$0xf0] }
 0x397   : > { %v10181_v2 = vadd.f32 %v5718_v11, %v5691_v26  ;;  %v5665_v22 = vadd.f32 %v5664_v19, %v5637_v21  ;;  %v6547_v11 = vld [vmem:[%s9309_s8 + $0x238] sm:$0xf]  ;;  %v6549_v19 = vld [vmem:[%s9309_s8 + $0x2f8] sm:$0xf0] }
 0x398   : > { %v8381_v26 = vld [vmem:[%s9309_s8 + $0x2f4] sm:$0xf0] }
 0x399   : > { %v6548_v31 = vor.u32 %v8381_v26, %v6547_v11 }
 0x39c   : > { %v5692_v27 = vpop.f32.mrf.mxu2  ;;  %v5639_v29 = vpop.f32.mrf.mxu0 }
 0x39d   : > { %v5720_v36 = vpop.f32.mrf.mxu3  ;;  %v5693_v43 = vadd.f32 %v5692_v27, %v5665_v22  ;;  %v5667_v44 = vpop.f32.mrf.mxu1  ;;  %v5640_v33 = vadd.f32 %v5639_v29, %v10117_v48  ;;  %v6347_v48 = vld [vmem:[%s9309_s8 + $0xb0] sm:$0xf]  ;;  %v6544_v22 = vor.u32 %v8356_v10, %v6541_v25 }
 0x39e   : > { %v6348_v57 = vor.u32 %v8332_v54, %v6347_v48  ;;  %v8405_v48 = vld [vmem:[%s9309_s8 + $0x3bc] sm:$0xf] }
 0x39f   : > { %v10184_v38 = vadd.f32 %v5720_v36, %v5693_v43  ;;  %v5668_v52 = vadd.f32 %v5667_v44, %v5640_v33  ;;  %5862 = vmatmul.bf16.gmra.mxu0 %v2215_v42  ;;  %v6741_v54 = vld [vmem:[%s9309_s8 + $0x478] sm:$0xf0] }
 0x3a0   : > { %5890 = vmatmul.bf16.gmra.mxu1 %v2216_v28 }
 0x3a1   : > { %5918 = vmatmul.bf16.gmra.mxu2 %v2217_v34 }
 0x3a2   : > { %5946 = vmatmul.bf16.gmra.mxu3 %v2218_v41 }
 0x3a4   : > { %v5695_v40 = vpop.f32.mrf.mxu2  ;;  %v5641_v51 = vpop.f32.mrf.mxu0 }
 0x3a5   : > { %v5723_v37 = vpop.f32.mrf.mxu3  ;;  %v5696_v30 = vadd.f32 %v5695_v40, %v5668_v52  ;;  %v5669_v53 = vpop.f32.mrf.mxu1  ;;  %v6731_v52 = vld [vmem:[%s9309_s8 + $0x3b0] sm:$0xf]  ;;  %v6739_v51 = vld [vmem:[%s9309_s8 + $0x3b8] sm:$0xf] }
 0x3a6   : > { %v8428_v40 = vld [vmem:[%s9309_s8 + $0x46c] sm:$0xf0]  ;;  %v8429_v53 = vld [vmem:[%s9309_s8 + $0x474] sm:$0xf0] }
 0x3a7   : > { %v10186_v45 = vadd.f32 %v5723_v37, %v5696_v30  ;;  %v8404_v37 = vld [vmem:[%s9309_s8 + $0x3b4] sm:$0xf]  ;;  %v6732_v62 = vor.u32 %v8428_v40, %v6731_v52 }
 0x3a8   : > { %v6733_v30 = vld [vmem:[%s9309_s8 + $0x470] sm:$0xf0] }
 0x3a9   : > { %v6736_v50 = vor.u32 %v8404_v37, %v6733_v30 }
 0x3ac   : > { %v5697_v60 = vpop.f32.mrf.mxu2  ;;  %v5736_v58 = vpop.f32.mrf.mxu0 }
 0x3ad   : > { %v5725_v1 = vpop.f32.mrf.mxu3  ;;  %v5764_v49 = vpop.f32.mrf.mxu1  ;;  %v5737_v63 = vadd.f32 %v5736_v58, %v10137_v9 }
 0x3ae   : > { %v6744_v1 = vor.u32 %v8405_v48, %v6741_v54 }
 0x3af   : > { %v5765_v8 = vadd.f32 %v5764_v49, %v5737_v63  ;;  %5959 = vmatmul.bf16.vlgmr.msrb.gmra.mxu0 %v6348_v57 }
 0x3b0   : > { %5987 = vmatmul.bf16.vlgmr.msrb.gmra.mxu1 %v6352_v5 }
 0x3b1   : > { %6015 = vmatmul.bf16.vlgmr.msrb.gmra.mxu2 %v6356_v4 }
 0x3b2   : > { %6043 = vmatmul.bf16.vlgmr.msrb.gmra.mxu3 %v6360_v6 }
 0x3b4   : > { %v5792_v7 = vpop.f32.mrf.mxu2  ;;  %v5738_v15 = vpop.f32.mrf.mxu0 }
 0x3b5   : > { %v5820_v12 = vpop.f32.mrf.mxu3  ;;  %v5793_v56 = vadd.f32 %v5792_v7, %v5765_v8  ;;  %v5766_v3 = vpop.f32.mrf.mxu1  ;;  %v5739_v0 = vadd.f32 %v5738_v15, %v10152_v35  ;;  %v6552_v35 = vor.u32 %v8357_v16, %v6549_v19  ;;  %v757_v7 = vld [vmem:[%s9309_s8 + $0x530] sm:$0x11] }
 0x3b7   : > { %v10198_v59 = vadd.f32 %v5820_v12, %v5793_v56  ;;  %v5767_v9 = vadd.f32 %v5766_v3, %v5739_v0  ;;  %v758_v56 = vld [vmem:[%s9309_s8 + $0x538] sm:$0x11]  ;;  %v2028_v0 = vunpack.c.h.b16 %v757_v7 }
 0x3b8   : > { %v2030_v14 = vunpack.c.h.b16 %v758_v56 }
 0x3b9   : > { %v2220_v11 = vpack.c.b16 %v2028_v0, %v2028_v0 }
 0x3bc   : > { %v5794_v23 = vpop.f32.mrf.mxu2  ;;  %v5741_v17 = vpop.f32.mrf.mxu0 }
 0x3bd   : > { %v5822_v21 = vpop.f32.mrf.mxu3  ;;  %v5795_v20 = vadd.f32 %v5794_v23, %v5767_v9  ;;  %v5769_v13 = vpop.f32.mrf.mxu1  ;;  %v5742_v27 = vadd.f32 %v5741_v17, %v10159_v55  ;;  %v2029_v9 = vunpack.c.l.b16 %v758_v56 }
 0x3bf   : > { %v10209_v36 = vadd.f32 %v5822_v21, %v5795_v20  ;;  %v5770_v42 = vadd.f32 %v5769_v13, %v5742_v27  ;;  %5964 = vmatmul.bf16.gmra.mxu0 %v6540_v32  ;;  %v2221_v23 = vpack.c.b16 %v2029_v9, %v2029_v9  ;;  %v2222_v21 = vpack.c.b16 %v2030_v14, %v2030_v14 }
 0x3c0   : > { %5992 = vmatmul.bf16.gmra.mxu1 %v6544_v22 }
 0x3c1   : > { %6020 = vmatmul.bf16.gmra.mxu2 %v6548_v31 }
 0x3c2   : > { %6048 = vmatmul.bf16.gmra.mxu3 %v6552_v35 }
 0x3c4   : > { %v5797_v28 = vpop.f32.mrf.mxu2  ;;  %v5743_v44 = vpop.f32.mrf.mxu0 }
 0x3c5   : > { %v5825_v43 = vpop.f32.mrf.mxu3  ;;  %v5798_v29 = vadd.f32 %v5797_v28, %v5770_v42  ;;  %v5771_v34 = vpop.f32.mrf.mxu1  ;;  %v5744_v55 = vadd.f32 %v5743_v44, %v10176_v24  ;;  %v6740_v24 = vor.u32 %v8429_v53, %v6739_v51 }
 0x3c7   : > { %v10212_v41 = vadd.f32 %v5825_v43, %v5798_v29  ;;  %v5772_v33 = vadd.f32 %v5771_v34, %v5744_v55 }
 0x3cc   : > { %v5799_v61 = vpop.f32.mrf.mxu2  ;;  %v5746_v46 = vpop.f32.mrf.mxu0 }
 0x3cd   : > { %v5827_v39 = vpop.f32.mrf.mxu3  ;;  %v5800_v47 = vadd.f32 %v5799_v61, %v5772_v33  ;;  %v5774_v60 = vpop.f32.mrf.mxu1  ;;  %v5747_v57 = vadd.f32 %v5746_v46, %v10181_v2  ;;  %v2027_v2 = vunpack.c.l.b16 %v757_v7 }
 0x3cf   : > { %v10223_v5 = vadd.f32 %v5827_v39, %v5800_v47  ;;  %v5775_v58 = vadd.f32 %v5774_v60, %v5747_v57  ;;  %5969 = vmatmul.bf16.gmra.mxu0 %v6732_v62  ;;  %v2219_v25 = vpack.c.b16 %v2027_v2, %v2027_v2 }
 0x3d0   : > { %5997 = vmatmul.bf16.gmra.mxu1 %v6736_v50 }
 0x3d1   : > { %6025 = vmatmul.bf16.gmra.mxu2 %v6740_v24 }
 0x3d2   : > { %6053 = vmatmul.bf16.gmra.mxu3 %v6744_v1 }
 0x3d4   : > { %v5802_v49 = vpop.f32.mrf.mxu2  ;;  %v5748_v63 = vpop.f32.mrf.mxu0 }
 0x3d5   : > { %v5830_v4 = vpop.f32.mrf.mxu3  ;;  %v5803_v6 = vadd.f32 %v5802_v49, %v5775_v58  ;;  %v5776_v8 = vpop.f32.mrf.mxu1  ;;  %v5749_v12 = vadd.f32 %v5748_v63, %v10184_v38 }
 0x3d7   : > { %v10228_v15 = vadd.f32 %v5830_v4, %v5803_v6  ;;  %v5777_v3 = vadd.f32 %v5776_v8, %v5749_v12 }
 0x3dc   : > { %v5804_v18 = vpop.f32.mrf.mxu2  ;;  %v5751_v16 = vpop.f32.mrf.mxu0 }
 0x3dd   : > { %v5832_v10 = vpop.f32.mrf.mxu3  ;;  %v5805_v26 = vadd.f32 %v5804_v18, %v5777_v3  ;;  %v5779_v19 = vpop.f32.mrf.mxu1  ;;  %v5752_v32 = vadd.f32 %v5751_v16, %v10186_v45 }
 0x3df   : > { %v10231_v38 = vadd.f32 %v5832_v10, %v5805_v26  ;;  %v5780_v22 = vadd.f32 %v5779_v19, %v5752_v32  ;;  %5974 = vmatmul.bf16.gmra.mxu0 %v2219_v25 }
 0x3e0   : > { %6002 = vmatmul.bf16.gmra.mxu1 %v2220_v11 }
 0x3e1   : > { %6030 = vmatmul.bf16.gmra.mxu2 %v2221_v23 }
 0x3e2   : > { %6058 = vmatmul.bf16.gmra.mxu3 %v2222_v21 }
 0x3e4   : > { %v5807_v20 = vpop.f32.mrf.mxu2  ;;  %v5753_v31 = vpop.f32.mrf.mxu0 }
 0x3e5   : > { %v5835_v17 = vpop.f32.mrf.mxu3  ;;  %v5808_v13 = vadd.f32 %v5807_v20, %v5780_v22  ;;  %v5781_v35 = vpop.f32.mrf.mxu1 }
 0x3e7   : > { %v10233_v27 = vadd.f32 %v5835_v17, %v5808_v13 }
 0x3ec   : > { %v5809_v42 = vpop.f32.mrf.mxu2  ;;  %v5848_v43 = vpop.f32.mrf.mxu0 }
 0x3ed   : > { %v5837_v28 = vpop.f32.mrf.mxu3  ;;  %v5876_v29 = vpop.f32.mrf.mxu1  ;;  %v5849_v49 = vadd.f32 %v5848_v43, %v10198_v59 }
 0x3ef   : > { %v5877_v7 = vadd.f32 %v5876_v29, %v5849_v49 }
 0x3f4   : > { %v5904_v44 = vpop.f32.mrf.mxu2  ;;  %v5850_v34 = vpop.f32.mrf.mxu0 }
 0x3f5   : > { %v5932_v45 = vpop.f32.mrf.mxu3  ;;  %v5878_v55 = vpop.f32.mrf.mxu1  ;;  %v5905_v12 = vadd.f32 %v5904_v44, %v5877_v7  ;;  %v5851_v56 = vadd.f32 %v5850_v34, %v10209_v36  ;;  %v584_v36 = vld [vmem:[%s10341_s3] sm:$0xff]  ;;  %v585_v34 = vld [vmem:[%s10341_s3 + $0x8] sm:$0xff] }
 0x3f7   : > { %v5933_v0 = vadd.f32 %v5932_v45, %v5905_v12  ;;  %v5879_v18 = vadd.f32 %v5878_v55, %v5851_v56 }
 0x3fc   : > { %v5906_v33 = vpop.f32.mrf.mxu2  ;;  %v5853_v40 = vpop.f32.mrf.mxu0 }
 0x3fd   : > { %v5934_v52 = vpop.f32.mrf.mxu3  ;;  %v5881_v37 = vpop.f32.mrf.mxu1  ;;  %v5907_v25 = vadd.f32 %v5906_v33, %v5879_v18  ;;  %v5854_v59 = vadd.f32 %v5853_v40, %v10212_v41 }
 0x3ff   : > { %v5935_v19 = vadd.f32 %v5934_v52, %v5907_v25  ;;  %v5882_v22 = vadd.f32 %v5881_v37, %v5854_v59 }
 0x404   : > { %v5909_v30 = vpop.f32.mrf.mxu2  ;;  %v5855_v53 = vpop.f32.mrf.mxu0 }
 0x405   : > { %v5937_v51 = vpop.f32.mrf.mxu3  ;;  %v5883_v48 = vpop.f32.mrf.mxu1  ;;  %v5910_v13 = vadd.f32 %v5909_v30, %v5882_v22  ;;  %v5856_v35 = vadd.f32 %v5855_v53, %v10223_v5 }
 0x407   : > { %v5938_v43 = vadd.f32 %v5937_v51, %v5910_v13  ;;  %v5884_v55 = vadd.f32 %v5883_v48, %v5856_v35  ;;  %v586_v48 = vld [vmem:[%s10341_s3 + $0x10] sm:$0xff] }
 0x40c   : > { %v5911_v54 = vpop.f32.mrf.mxu2  ;;  %v5858_v39 = vpop.f32.mrf.mxu0 }
 0x40d   : > { %v5939_v61 = vpop.f32.mrf.mxu3  ;;  %v10235_v62 = vpop.f32.mrf.mxu1  ;;  %v5912_v5 = vadd.f32 %v5911_v54, %v5884_v55  ;;  %v5859_v37 = vadd.f32 %v5858_v39, %v10228_v15  ;;  %v590_v55 = vld [vmem:[%s10341_s3 + $0x30] sm:$0x3] }
 0x40f   : > { %v5940_v49 = vadd.f32 %v5939_v61, %v5912_v5  ;;  %v5887_v54 = vadd.f32 %v10235_v62, %v5859_v37 }
 0x414   : > { %v10237_v50 = vpop.f32.mrf.mxu2  ;;  %v10241_v46 = vpop.f32.mrf.mxu0 }
 0x415   : > { %v10239_v47 = vpop.f32.mrf.mxu3  ;;  %v10243_v60 = vpop.f32.mrf.mxu1  ;;  %v5915_v39 = vadd.f32 %v10237_v50, %v5887_v54  ;;  %v587_v50 = vld [vmem:[%s10341_s3 + $0x18] sm:$0xff] }
 0x41c   : > { %v10245_v24 = vpop.f32.mrf.mxu2  ;;  %v10249_v57 = vpop.f32.mrf.mxu0 }
 0x41d   : > { %v10247_v1 = vpop.f32.mrf.mxu3  ;;  %v10251_v58 = vpop.f32.mrf.mxu1 }
 0x424   : > { %v10254_v4 = vpop.f32.mrf.mxu2  ;;  %v5865_v63 = vpop.f32.mrf.mxu0 }
 0x425   : > { %v10256_v6 = vpop.f32.mrf.mxu3  ;;  %v5893_v8 = vpop.f32.mrf.mxu1 }
 0x42c   : > { %v5921_v3 = vpop.f32.mrf.mxu2  ;;  %v5960_v9 = vpop.f32.mrf.mxu0 }
 0x42d   : > { %v5949_v2 = vpop.f32.mrf.mxu3  ;;  %v5988_v14 = vpop.f32.mrf.mxu1  ;;  %v5961_v10 = vadd.f32 %v5960_v9, %v5933_v0  ;;  %v5861_v3 = vadd.f32 %v10241_v46, %v10231_v38  ;;  %v5943_v9 = vadd.f32 %v10239_v47, %v5915_v39 }
 0x42f   : > { %v5989_v11 = vadd.f32 %v5988_v14, %v5961_v10  ;;  %v5889_v10 = vadd.f32 %v10243_v60, %v5861_v3 }
 0x431   : > { %v5917_v25 = vadd.f32 %v10245_v24, %v5889_v10  ;;  %v588_v24 = vld [vmem:[%s10341_s3 + $0x20] sm:$0xff] }
 0x434   : > { %v6016_v26 = vpop.f32.mrf.mxu2  ;;  %v5962_v21 = vpop.f32.mrf.mxu0 }
 0x435   : > { %v6044_v16 = vpop.f32.mrf.mxu3  ;;  %v6017_v23 = vadd.f32 %v6016_v26, %v5989_v11  ;;  %v5990_v32 = vpop.f32.mrf.mxu1  ;;  %v5963_v17 = vadd.f32 %v5962_v21, %v5935_v19  ;;  %v5864_v11 = vadd.f32 %v10249_v57, %v10233_v27  ;;  %v5945_v19 = vadd.f32 %v10247_v1, %v5917_v25 }
 0x437   : > { %v6045_v20 = vadd.f32 %v6044_v16, %v6017_v23  ;;  %v5991_v41 = vadd.f32 %v5990_v32, %v5963_v17  ;;  %v5892_v32 = vadd.f32 %v10251_v58, %v5864_v11  ;;  %v589_v58 = vld [vmem:[%s10341_s3 + $0x28] sm:$0xff] }
 0x439   : > { %v6063_v31 = vadd.f32 %v6045_v20, %v584_v36  ;;  %v5920_v36 = vadd.f32 %v10254_v4, %v5892_v32 }
 0x43b   : > { %6071 = vst.msk [vmem:[%s10341_s3] sm:$0xff] %vm6070_vm2, %v6063_v31  ;;  %v5948_v13 = vadd.f32 %v10256_v6, %v5920_v36 }
 0x43c   : > { %v6018_v42 = vpop.f32.mrf.mxu2  ;;  %v5965_v44 = vpop.f32.mrf.mxu0 }
 0x43d   : > { %v6046_v28 = vpop.f32.mrf.mxu3  ;;  %v6019_v29 = vadd.f32 %v6018_v42, %v5991_v41  ;;  %v5993_v45 = vpop.f32.mrf.mxu1  ;;  %v5966_v52 = vadd.f32 %v5965_v44, %v5938_v43 }
 0x43f   : > { %v6047_v33 = vadd.f32 %v6046_v28, %v6019_v29  ;;  %v5994_v30 = vadd.f32 %v5993_v45, %v5966_v52 }
 0x441   : > { %v6064_v40 = vadd.f32 %v6047_v33, %v585_v34 }
 0x443   : > { %6072 = vst.msk [vmem:[%s10341_s3 + $0x8] sm:$0xff] %vm6070_vm2, %v6064_v40 }
 0x444   : > { %v6021_v51 = vpop.f32.mrf.mxu2  ;;  %v5967_v8 = vpop.f32.mrf.mxu0 }
 0x445   : > { %v6049_v53 = vpop.f32.mrf.mxu3  ;;  %v6022_v63 = vadd.f32 %v6021_v51, %v5994_v30  ;;  %v5995_v7 = vpop.f32.mrf.mxu1  ;;  %v5968_v15 = vadd.f32 %v5967_v8, %v5940_v49 }
 0x447   : > { %v6050_v12 = vadd.f32 %v6049_v53, %v6022_v63  ;;  %v5996_v61 = vadd.f32 %v5995_v7, %v5968_v15 }
 0x449   : > { %v6065_v56 = vadd.f32 %v6050_v12, %v586_v48 }
 0x44b   : > { %6073 = vst.msk [vmem:[%s10341_s3 + $0x10] sm:$0xff] %vm6070_vm2, %v6065_v56 }
 0x44c   : > { %v6023_v2 = vpop.f32.mrf.mxu2  ;;  %v5970_v62 = vpop.f32.mrf.mxu0 }
 0x44d   : > { %v6051_v0 = vpop.f32.mrf.mxu3  ;;  %v6024_v14 = vadd.f32 %v6023_v2, %v5996_v61  ;;  %v5998_v18 = vpop.f32.mrf.mxu1  ;;  %v5971_v46 = vadd.f32 %v5970_v62, %v5943_v9 }
 0x44f   : > { %v6052_v38 = vadd.f32 %v6051_v0, %v6024_v14  ;;  %v5999_v47 = vadd.f32 %v5998_v18, %v5971_v46 }
 0x451   : > { %v6066_v59 = vadd.f32 %v6052_v38, %v587_v50 }
 0x453   : > { %6074 = vst.msk [vmem:[%s10341_s3 + $0x18] sm:$0xff] %vm6070_vm2, %v6066_v59 }
 0x454   : > { %v6026_v26 = vpop.f32.mrf.mxu2  ;;  %v5972_v60 = vpop.f32.mrf.mxu0 }
 0x455   : > { %v6054_v16 = vpop.f32.mrf.mxu3  ;;  %v6027_v23 = vadd.f32 %v6026_v26, %v5999_v47  ;;  %v6000_v21 = vpop.f32.mrf.mxu1  ;;  %v5973_v57 = vadd.f32 %v5972_v60, %v5945_v19 }
 0x457   : > { %v6055_v27 = vadd.f32 %v6054_v16, %v6027_v23  ;;  %v6001_v1 = vadd.f32 %v6000_v21, %v5973_v57 }
 0x459   : > { %v6067_v22 = vadd.f32 %v6055_v27, %v588_v24 }
 0x45b   : > { %6075 = vst.msk [vmem:[%s10341_s3 + $0x20] sm:$0xff] %vm6070_vm2, %v6067_v22 }
 0x45c   : > { %v6028_v20 = vpop.f32.mrf.mxu2  ;;  %v5975_v35 = vpop.f32.mrf.mxu0 }
 0x45d   : > { %v6056_v17 = vpop.f32.mrf.mxu3  ;;  %v6029_v31 = vadd.f32 %v6028_v20, %v6001_v1  ;;  %v6003_v41 = vpop.f32.mrf.mxu1  ;;  %v5976_v4 = vadd.f32 %v5975_v35, %v5948_v13 }
 0x45f   : > { %v6057_v42 = vadd.f32 %v6056_v17, %v6029_v31  ;;  %v6004_v43 = vadd.f32 %v6003_v41, %v5976_v4 }
 0x461   : > { %v6068_v28 = vadd.f32 %v6057_v42, %v589_v58 }
 0x463   : > { %6076 = vst.msk [vmem:[%s10341_s3 + $0x28] sm:$0xff] %vm6070_vm2, %v6068_v28 }
 0x464   : > { %v6031_v29 = vpop.f32.mrf.mxu2  ;;  %v5977_v6 = vpop.f32.mrf.mxu0 }
 0x465   : > { %v6059_v44 = vpop.f32.mrf.mxu3  ;;  %v6032_v45 = vadd.f32 %v6031_v29, %v6004_v43  ;;  %v6005_v34 = vpop.f32.mrf.mxu1 }
 0x467   : > { %v6060_v33 = vadd.f32 %v6059_v44, %v6032_v45 }
 0x469   : > { %v6069_v52 = vadd.f32 %v6060_v33, %v590_v55 }
 0x46b   : > { %6078 = vst.msk [vmem:[%s10341_s3 + $0x30] sm:$0x3] %vm6077_vm3, %v6069_v52 }
 0x46c   : > { %v6033_v5 = vpop.f32.mrf.mxu2 }
 0x46d   : > { %v6061_v40 = vpop.f32.mrf.mxu3 }
 0x46e PF: > { %s13_s16 = sadd.s32 1, %s8895_s16   ;;  %s10342_s12 = smov %s8883_s13 }
 0x46f   : > { %p10_p11 = scmp.ge.s32.totalorder %s13_s16, 4   ;;  %s10343_s13 = smov %s8952_s20 }
 0x470   : > { %s10344_s14 = smov %s8891_s15  ;;  %s10345_s15 = smov %s10347_s17 }
 0x471   :  { %12 = sbr.rel (!%p10_p11) target bundleno = 3 (0x3), region = 97 }

</bundles_post_ra>
